<compile_context>
chip_gen: v7x
topology: tpu7x:2x2x1
jax: 0.10.0
libtpu: 0.0.40
codegen_flags: <defaults>
</compile_context>

<pallas_src>
import functools

import numpy as np

import jax
import jax.numpy as jnp
from jax.experimental import pallas as pl
from jax.experimental.pallas import tpu as pltpu


# ---------------------------------------------------------------------------
# Pallas kernel: one full D2 block per invocation
# ---------------------------------------------------------------------------
def _d2_block_kernel(*refs, k, L, last_N, W, eps):
    """Fused D2 block.

    refs (in order):
      a_ref    : (Cin0, P) f32   input activation (pixels on lanes)
      mask_ref : (L*9, P) f32    per-(layer, tap) validity masks
      w_refs   : for i in range(L), for j in range(L-i): (k, 9*Cin_i) bf16
      g/b refs : for i in range(L): gamma (k,1) f32, beta (k,1) f32
      out_ref  : (k*min(L,last_N), P) f32
      slab_ref : (9*max_cin, P) f32 VMEM scratch (tap slab, reused per layer)
    """
    it = iter(refs)
    a_ref = next(it)
    mask_ref = next(it)
    w_refs = [[next(it) for _ in range(L - i)] for i in range(L)]
    gb_refs = [(next(it), next(it)) for _ in range(L)]
    out_ref = next(it)
    slab_ref = next(it)

    P = a_ref.shape[1]
    inv_p = 1.0 / P

    cur = a_ref[...]                     # (Cin0, P) f32, stays in VMEM/vregs
    skips = []                           # list of (k, P) f32
    outputs = []

    for i in range(L):
        d = 2 ** i
        cin = cur.shape[0]
        n_chunks = L - i

        # Build the 9 dilated taps in-kernel: lane roll (XLU) + boundary mask,
        # staged into the slab scratch with K order (tap, channel).
        for ky in range(3):
            dy = (ky - 1) * d
            for kx in range(3):
                dx = (kx - 1) * d
                t = ky * 3 + kx
                off = dy * W + dx        # flat-pixel offset of this tap
                shifted = cur if off == 0 else pltpu.roll(
                    cur, shift=(-off) % P, axis=1)
                m = mask_ref[pl.ds(i * 9 + t, 1), :]          # (1, P)
                slab_ref[pl.ds(t * cin, cin), :] = shifted * m

        slab = slab_ref[pl.ds(0, 9 * cin), :].astype(jnp.bfloat16)

        # Dilated 3x3 conv: one MXU matmul (K = 9*Cin) per k-channel chunk,
        # bf16 operands, f32 accumulation.
        chunks = [
            jnp.dot(w_refs[i][j][...], slab, preferred_element_type=jnp.float32)
            for j in range(n_chunks)
        ]

        # Dense skip wiring (matches torch: chunk, pop first skip, add rest).
        main = chunks[0]
        if i > 0:
            main = main + skips[0]
            skips = [s + c for s, c in zip(skips[1:], chunks[1:])]
        else:
            skips = chunks[1:]

        # Training-mode BatchNorm (biased batch variance, two-pass) + ReLU.
        g_ref, b_ref = gb_refs[i]
        mean = jnp.sum(main, axis=1, keepdims=True) * inv_p
        cent = main - mean
        var = jnp.sum(cent * cent, axis=1, keepdims=True) * inv_p
        scale = g_ref[...] * jax.lax.rsqrt(var + eps)
        act = jnp.maximum(cent * scale + b_ref[...], 0.0)

        outputs.append(act)
        cur = act

    assert len(skips) == 0               # mirrors the torch assert (static)

    outs = outputs[-last_N:] if (last_N > 1 and L > 1) else [outputs[-1]]
    for j, o in enumerate(outs):
        out_ref[pl.ds(j * k, k), :] = o


# ---------------------------------------------------------------------------
# Wrapper around pallas_call (one call per D2 block)
# ---------------------------------------------------------------------------
def d2_block_pallas(a_cp, weights, gammas, betas, masks, *, k, L, last_N, W):
    cin0, P = a_cp.shape
    max_cin = max(cin0, k)
    n_out = k * min(L, last_N)

    args = [a_cp, masks]
    for i in range(L):
        for j in range(L - i):
            args.append(weights[i][j])
    for i in range(L):
        args.extend((gammas[i], betas[i]))

    vmem = pl.BlockSpec(memory_space=pltpu.MemorySpace.VMEM)
    kern = functools.partial(_d2_block_kernel, k=k, L=L, last_N=last_N,
                             W=W, eps=1e-5)
    return pl.pallas_call(
        kern,
        out_shape=jax.ShapeDtypeStruct((n_out, P), jnp.float32),
        in_specs=[vmem] * len(args),
        out_specs=vmem,
        scratch_shapes=[pltpu.VMEM((9 * max_cin, P), jnp.float32)],
    )(*args)


# ---------------------------------------------------------------------------
# JAX/NumPy glue: tap masks, weight layout, D3 orchestration, param init
# ---------------------------------------------------------------------------
def make_tap_masks(N, H, W, L):
    """(L*9, P) f32 validity masks for each (dilation layer, 3x3 tap)."""
    P = N * H * W
    p = np.arange(P)
    yy = (p % (H * W)) // W
    xx = p % W
    rows = []
    for i in range(L):
        d = 2 ** i
        for ky in range(3):
            for kx in range(3):
                dy, dx = (ky - 1) * d, (kx - 1) * d
                valid = ((yy + dy >= 0) & (yy + dy < H) &
                         (xx + dx >= 0) & (xx + dx < W))
                rows.append(valid.astype(np.float32))
    return jnp.asarray(np.stack(rows, axis=0))


def _prep_conv_weight(w_oihw, k):
    """OIHW -> per-chunk (k, 9*Cin) bf16 with K order (tap, channel)."""
    cout, cin = w_oihw.shape[:2]
    w2 = jnp.transpose(w_oihw, (0, 2, 3, 1)).reshape(cout, 9 * cin)
    return [w2[j * k:(j + 1) * k, :].astype(jnp.bfloat16)
            for j in range(cout // k)]


def d3_forward(params, x_cp, masks, *, k, L, last_N, W):
    raw = [x_cp]
    cur = x_cp
    for p in params:
        inp = jnp.concatenate(raw, axis=0) if len(raw) > 1 else cur
        cur = d2_block_pallas(inp, p["w"], p["gamma"], p["beta"], masks,
                              k=k, L=L, last_N=last_N, W=W)
        raw.append(cur)
    return jnp.concatenate(raw, axis=0)


def init_d3_params(key, in_channels, M, k, L, last_N):
    params = []
    cin_block = in_channels
    for _ in range(M):
        ws, gs, bs = [], [], []
        for i in range(L):
            cin = cin_block if i == 0 else k
            cout = k * (L - i)
            key, sub = jax.random.split(key)
            w = (jax.random.normal(sub, (cout, cin, 3, 3), jnp.float32)
                 * (1.0 / np.sqrt(9.0 * cin)))
            ws.append(_prep_conv_weight(w, k))
            gs.append(jnp.ones((k, 1), jnp.float32))    # BN default weight
            bs.append(jnp.zeros((k, 1), jnp.float32))   # BN default bias
        params.append({"w": ws, "gamma": gs, "beta": bs})
        cin_block += k * min(L, last_N)
    return params, key
# TODO(synk): eval-mode BN (running-stats affine) would fold to a single
# per-channel scale/shift; training-mode batch statistics are implemented here
# to match the reference module's default forward.


# ---------------------------------------------------------------------------
# Main
# ---------------------------------------------------------------------------
if __name__ == "__main__":
    # Module hyper-parameters (small, consistent with the PyTorch module)
    in_channels = 4
    M = 2           # number of D2 blocks inside the D3 block
    k = 4           # growth rate
    L = 3           # layers per D2 block (dilations 1, 2, 4)
    last_N = 3      # default last_n_layers

    N, H, W = 2, 16, 16
    P = N * H * W

    key = jax.random.PRNGKey(0)
    key, xkey = jax.random.split(key)
    # PyTorch-style NCHW input, re-laid-out once to the channels-major
    # pixel-matrix kernel layout (C, N*H*W) -> pixels on TPU lanes.
    x_nchw = jax.random.normal(xkey, (N, in_channels, H, W), jnp.float32)
    x_cp = jnp.transpose(x_nchw, (1, 0, 2, 3)).reshape(in_channels, P)

    d3_params, key = init_d3_params(key, in_channels, M, k, L, last_N)
    masks = make_tap_masks(N, H, W, L)

    fwd = jax.jit(functools.partial(d3_forward, k=k, L=L, last_N=last_N, W=W))
    out_cp = fwd(d3_params, x_cp, masks)
    jax.block_until_ready(out_cp)
    out_nchw = jnp.transpose(out_cp.reshape(-1, N, H, W), (1, 0, 2, 3))

    expected_c = in_channels + M * k * min(L, last_N)
    assert out_nchw.shape == (N, expected_c, H, W), out_nchw.shape
    assert bool(jnp.all(jnp.isfinite(out_nchw)))
    print("KERNEL_OK")
</pallas_src>

<mosaic_0001>
module attributes {stable_mosaic.version = 11 : i64} {
  func.func @_d2_block_kernel(%arg0: memref<4x512xf32, #tpu.memory_space<vmem>>, %arg1: memref<27x512xf32, #tpu.memory_space<vmem>>, %arg2: memref<4x36xbf16, #tpu.memory_space<vmem>>, %arg3: memref<4x36xbf16, #tpu.memory_space<vmem>>, %arg4: memref<4x36xbf16, #tpu.memory_space<vmem>>, %arg5: memref<4x36xbf16, #tpu.memory_space<vmem>>, %arg6: memref<4x36xbf16, #tpu.memory_space<vmem>>, %arg7: memref<4x36xbf16, #tpu.memory_space<vmem>>, %arg8: memref<4x1xf32, #tpu.memory_space<vmem>>, %arg9: memref<4x1xf32, #tpu.memory_space<vmem>>, %arg10: memref<4x1xf32, #tpu.memory_space<vmem>>, %arg11: memref<4x1xf32, #tpu.memory_space<vmem>>, %arg12: memref<4x1xf32, #tpu.memory_space<vmem>>, %arg13: memref<4x1xf32, #tpu.memory_space<vmem>>, %arg14: memref<12x512xf32, #tpu.memory_space<vmem>>, %arg15: memref<36x512xf32, #tpu.memory_space<vmem>>) attributes {dimension_semantics = [], scalar_prefetch = 0 : i64, scratch_operands = 1 : i64, tpu.core_type = #tpu.core_type<tc>} {
    %c0 = arith.constant 0 : index
    %c0_0 = arith.constant 0 : index
    %0 = vector.load %arg0[%c0, %c0_0] : memref<4x512xf32, #tpu.memory_space<vmem>>, vector<4x512xf32>
    %c17_i32 = arith.constant 17 : i32
    %1 = tpu.dynamic_rotate %0 by %c17_i32 dim 1 : vector<4x512xf32>, i32 -> vector<4x512xf32>
    %c0_1 = arith.constant 0 : index
    %c0_2 = arith.constant 0 : index
    %2 = vector.load %arg1[%c0_1, %c0_2] : memref<27x512xf32, #tpu.memory_space<vmem>>, vector<1x512xf32>
    %3 = vector.broadcast %2 : vector<1x512xf32> to vector<4x512xf32>
    %4 = arith.mulf %1, %3 : vector<4x512xf32>
    %c0_3 = arith.constant 0 : index
    %c0_4 = arith.constant 0 : index
    %5 = vector.load %arg15[%c0_3, %c0_4] : memref<36x512xf32, #tpu.memory_space<vmem>>, vector<4x512xf32>
    tpu.vector_store %arg15[%c0_3, %c0_4], %4 {strides = array<i32>} : memref<36x512xf32, #tpu.memory_space<vmem>>, vector<4x512xf32>,
    %c16_i32 = arith.constant 16 : i32
    %6 = tpu.dynamic_rotate %0 by %c16_i32 dim 1 : vector<4x512xf32>, i32 -> vector<4x512xf32>
    %c1 = arith.constant 1 : index
    %c0_5 = arith.constant 0 : index
    %7 = vector.load %arg1[%c1, %c0_5] : memref<27x512xf32, #tpu.memory_space<vmem>>, vector<1x512xf32>
    %8 = vector.broadcast %7 : vector<1x512xf32> to vector<4x512xf32>
    %9 = arith.mulf %6, %8 : vector<4x512xf32>
    %c4 = arith.constant 4 : index
    %c0_6 = arith.constant 0 : index
    %10 = vector.load %arg15[%c4, %c0_6] : memref<36x512xf32, #tpu.memory_space<vmem>>, vector<4x512xf32>
    tpu.vector_store %arg15[%c4, %c0_6], %9 {strides = array<i32>} : memref<36x512xf32, #tpu.memory_space<vmem>>, vector<4x512xf32>,
    %c15_i32 = arith.constant 15 : i32
    %11 = tpu.dynamic_rotate %0 by %c15_i32 dim 1 : vector<4x512xf32>, i32 -> vector<4x512xf32>
    %c2 = arith.constant 2 : index
    %c0_7 = arith.constant 0 : index
    %12 = vector.load %arg1[%c2, %c0_7] : memref<27x512xf32, #tpu.memory_space<vmem>>, vector<1x512xf32>
    %13 = vector.broadcast %12 : vector<1x512xf32> to vector<4x512xf32>
    %14 = arith.mulf %11, %13 : vector<4x512xf32>
    %c8 = arith.constant 8 : index
    %c0_8 = arith.constant 0 : index
    %15 = vector.load %arg15[%c8, %c0_8] : memref<36x512xf32, #tpu.memory_space<vmem>>, vector<4x512xf32>
    tpu.vector_store %arg15[%c8, %c0_8], %14 {strides = array<i32>} : memref<36x512xf32, #tpu.memory_space<vmem>>, vector<4x512xf32>,
    %c1_i32 = arith.constant 1 : i32
    %16 = tpu.dynamic_rotate %0 by %c1_i32 dim 1 : vector<4x512xf32>, i32 -> vector<4x512xf32>
    %c3 = arith.constant 3 : index
    %c0_9 = arith.constant 0 : index
    %17 = vector.load %arg1[%c3, %c0_9] : memref<27x512xf32, #tpu.memory_space<vmem>>, vector<1x512xf32>
    %18 = vector.broadcast %17 : vector<1x512xf32> to vector<4x512xf32>
    %19 = arith.mulf %16, %18 : vector<4x512xf32>
    %c12 = arith.constant 12 : index
    %c0_10 = arith.constant 0 : index
    %20 = vector.load %arg15[%c12, %c0_10] : memref<36x512xf32, #tpu.memory_space<vmem>>, vector<4x512xf32>
    tpu.vector_store %arg15[%c12, %c0_10], %19 {strides = array<i32>} : memref<36x512xf32, #tpu.memory_space<vmem>>, vector<4x512xf32>,
    %c4_11 = arith.constant 4 : index
    %c0_12 = arith.constant 0 : index
    %21 = vector.load %arg1[%c4_11, %c0_12] : memref<27x512xf32, #tpu.memory_space<vmem>>, vector<1x512xf32>
    %22 = vector.broadcast %21 : vector<1x512xf32> to vector<4x512xf32>
    %23 = arith.mulf %0, %22 : vector<4x512xf32>
    %c16 = arith.constant 16 : index
    %c0_13 = arith.constant 0 : index
    %24 = vector.load %arg15[%c16, %c0_13] : memref<36x512xf32, #tpu.memory_space<vmem>>, vector<4x512xf32>
    tpu.vector_store %arg15[%c16, %c0_13], %23 {strides = array<i32>} : memref<36x512xf32, #tpu.memory_space<vmem>>, vector<4x512xf32>,
    %c511_i32 = arith.constant 511 : i32
    %25 = tpu.dynamic_rotate %0 by %c511_i32 dim 1 : vector<4x512xf32>, i32 -> vector<4x512xf32>
    %c5 = arith.constant 5 : index
    %c0_14 = arith.constant 0 : index
    %26 = vector.load %arg1[%c5, %c0_14] : memref<27x512xf32, #tpu.memory_space<vmem>>, vector<1x512xf32>
    %27 = vector.broadcast %26 : vector<1x512xf32> to vector<4x512xf32>
    %28 = arith.mulf %25, %27 : vector<4x512xf32>
    %c20 = arith.constant 20 : index
    %c0_15 = arith.constant 0 : index
    %29 = vector.load %arg15[%c20, %c0_15] : memref<36x512xf32, #tpu.memory_space<vmem>>, vector<4x512xf32>
    tpu.vector_store %arg15[%c20, %c0_15], %28 {strides = array<i32>} : memref<36x512xf32, #tpu.memory_space<vmem>>, vector<4x512xf32>,
    %c497_i32 = arith.constant 497 : i32
    %30 = tpu.dynamic_rotate %0 by %c497_i32 dim 1 : vector<4x512xf32>, i32 -> vector<4x512xf32>
    %c6 = arith.constant 6 : index
    %c0_16 = arith.constant 0 : index
    %31 = vector.load %arg1[%c6, %c0_16] : memref<27x512xf32, #tpu.memory_space<vmem>>, vector<1x512xf32>
    %32 = vector.broadcast %31 : vector<1x512xf32> to vector<4x512xf32>
    %33 = arith.mulf %30, %32 : vector<4x512xf32>
    %c24 = arith.constant 24 : index
    %c0_17 = arith.constant 0 : index
    %34 = vector.load %arg15[%c24, %c0_17] : memref<36x512xf32, #tpu.memory_space<vmem>>, vector<4x512xf32>
    tpu.vector_store %arg15[%c24, %c0_17], %33 {strides = array<i32>} : memref<36x512xf32, #tpu.memory_space<vmem>>, vector<4x512xf32>,
    %c496_i32 = arith.constant 496 : i32
    %35 = tpu.dynamic_rotate %0 by %c496_i32 dim 1 : vector<4x512xf32>, i32 -> vector<4x512xf32>
    %c7 = arith.constant 7 : index
    %c0_18 = arith.constant 0 : index
    %36 = vector.load %arg1[%c7, %c0_18] : memref<27x512xf32, #tpu.memory_space<vmem>>, vector<1x512xf32>
    %37 = vector.broadcast %36 : vector<1x512xf32> to vector<4x512xf32>
    %38 = arith.mulf %35, %37 : vector<4x512xf32>
    %c28 = arith.constant 28 : index
    %c0_19 = arith.constant 0 : index
    %39 = vector.load %arg15[%c28, %c0_19] : memref<36x512xf32, #tpu.memory_space<vmem>>, vector<4x512xf32>
    tpu.vector_store %arg15[%c28, %c0_19], %38 {strides = array<i32>} : memref<36x512xf32, #tpu.memory_space<vmem>>, vector<4x512xf32>,
    %c495_i32 = arith.constant 495 : i32
    %40 = tpu.dynamic_rotate %0 by %c495_i32 dim 1 : vector<4x512xf32>, i32 -> vector<4x512xf32>
    %c8_20 = arith.constant 8 : index
    %c0_21 = arith.constant 0 : index
    %41 = vector.load %arg1[%c8_20, %c0_21] : memref<27x512xf32, #tpu.memory_space<vmem>>, vector<1x512xf32>
    %42 = vector.broadcast %41 : vector<1x512xf32> to vector<4x512xf32>
    %43 = arith.mulf %40, %42 : vector<4x512xf32>
    %c32 = arith.constant 32 : index
    %c0_22 = arith.constant 0 : index
    %44 = vector.load %arg15[%c32, %c0_22] : memref<36x512xf32, #tpu.memory_space<vmem>>, vector<4x512xf32>
    tpu.vector_store %arg15[%c32, %c0_22], %43 {strides = array<i32>} : memref<36x512xf32, #tpu.memory_space<vmem>>, vector<4x512xf32>,
    %c0_23 = arith.constant 0 : index
    %c0_24 = arith.constant 0 : index
    %45 = vector.load %arg15[%c0_23, %c0_24] : memref<36x512xf32, #tpu.memory_space<vmem>>, vector<36x512xf32>
    %46 = arith.truncf %45 : vector<36x512xf32> to vector<36x512xbf16>
    %c0_25 = arith.constant 0 : index
    %c0_26 = arith.constant 0 : index
    %47 = vector.load %arg2[%c0_25, %c0_26] : memref<4x36xbf16, #tpu.memory_space<vmem>>, vector<4x36xbf16>
    %cst = arith.constant dense<0.000000e+00> : vector<4x512xf32>
    %48 = tpu.matmul %47, %46, %cst {dimension_numbers = #tpu.dot_dimension_numbers<[1], [0], [0], [1], [0, 0, 1, 1], [], []>} : vector<4x36xbf16>, vector<36x512xbf16>, vector<4x512xf32> -> vector<4x512xf32>
    %c0_27 = arith.constant 0 : index
    %c0_28 = arith.constant 0 : index
    %49 = vector.load %arg3[%c0_27, %c0_28] : memref<4x36xbf16, #tpu.memory_space<vmem>>, vector<4x36xbf16>
    %cst_29 = arith.constant dense<0.000000e+00> : vector<4x512xf32>
    %50 = tpu.matmul %49, %46, %cst_29 {dimension_numbers = #tpu.dot_dimension_numbers<[1], [0], [0], [1], [0, 0, 1, 1], [], []>} : vector<4x36xbf16>, vector<36x512xbf16>, vector<4x512xf32> -> vector<4x512xf32>
    %c0_30 = arith.constant 0 : index
    %c0_31 = arith.constant 0 : index
    %51 = vector.load %arg4[%c0_30, %c0_31] : memref<4x36xbf16, #tpu.memory_space<vmem>>, vector<4x36xbf16>
    %cst_32 = arith.constant dense<0.000000e+00> : vector<4x512xf32>
    %52 = tpu.matmul %51, %46, %cst_32 {dimension_numbers = #tpu.dot_dimension_numbers<[1], [0], [0], [1], [0, 0, 1, 1], [], []>} : vector<4x36xbf16>, vector<36x512xbf16>, vector<4x512xf32> -> vector<4x512xf32>
    %cst_33 = arith.constant dense<0.000000e+00> : vector<4xf32>
    %53 = vector.multi_reduction <add>, %48, %cst_33 [1] : vector<4x512xf32> to vector<4xf32>
    %54 = vector.shape_cast %53 : vector<4xf32> to vector<4x1xf32>
    %cst_34 = arith.constant 0.001953125 : f32
    %55 = vector.broadcast %cst_34 : f32 to vector<4x1xf32>
    %56 = arith.mulf %54, %55 : vector<4x1xf32>
    %57 = vector.broadcast %56 : vector<4x1xf32> to vector<4x512xf32>
    %58 = arith.subf %48, %57 : vector<4x512xf32>
    %59 = arith.mulf %58, %58 : vector<4x512xf32>
    %cst_35 = arith.constant dense<0.000000e+00> : vector<4xf32>
    %60 = vector.multi_reduction <add>, %59, %cst_35 [1] : vector<4x512xf32> to vector<4xf32>
    %61 = vector.shape_cast %60 : vector<4xf32> to vector<4x1xf32>
    %cst_36 = arith.constant 0.001953125 : f32
    %62 = vector.broadcast %cst_36 : f32 to vector<4x1xf32>
    %63 = arith.mulf %61, %62 : vector<4x1xf32>
    %c0_37 = arith.constant 0 : index
    %c0_38 = arith.constant 0 : index
    %64 = vector.load %arg8[%c0_37, %c0_38] : memref<4x1xf32, #tpu.memory_space<vmem>>, vector<4x1xf32>
    %cst_39 = arith.constant 9.99999974E-6 : f32
    %65 = vector.broadcast %cst_39 : f32 to vector<4x1xf32>
    %66 = arith.addf %63, %65 : vector<4x1xf32>
    %67 = math.rsqrt %66 : vector<4x1xf32>
    %68 = arith.mulf %64, %67 : vector<4x1xf32>
    %69 = vector.broadcast %68 : vector<4x1xf32> to vector<4x512xf32>
    %70 = arith.mulf %58, %69 : vector<4x512xf32>
    %c0_40 = arith.constant 0 : index
    %c0_41 = arith.constant 0 : index
    %71 = vector.load %arg9[%c0_40, %c0_41] : memref<4x1xf32, #tpu.memory_space<vmem>>, vector<4x1xf32>
    %72 = vector.broadcast %71 : vector<4x1xf32> to vector<4x512xf32>
    %73 = arith.addf %70, %72 : vector<4x512xf32>
    %cst_42 = arith.constant 0.000000e+00 : f32
    %74 = vector.broadcast %cst_42 : f32 to vector<4x512xf32>
    %75 = arith.maximumf %73, %74 : vector<4x512xf32>
    %c34_i32 = arith.constant 34 : i32
    %76 = tpu.dynamic_rotate %75 by %c34_i32 dim 1 : vector<4x512xf32>, i32 -> vector<4x512xf32>
    %c9 = arith.constant 9 : index
    %c0_43 = arith.constant 0 : index
    %77 = vector.load %arg1[%c9, %c0_43] : memref<27x512xf32, #tpu.memory_space<vmem>>, vector<1x512xf32>
    %78 = vector.broadcast %77 : vector<1x512xf32> to vector<4x512xf32>
    %79 = arith.mulf %76, %78 : vector<4x512xf32>
    %c0_44 = arith.constant 0 : index
    %c0_45 = arith.constant 0 : index
    %80 = vector.load %arg15[%c0_44, %c0_45] : memref<36x512xf32, #tpu.memory_space<vmem>>, vector<4x512xf32>
    tpu.vector_store %arg15[%c0_44, %c0_45], %79 {strides = array<i32>} : memref<36x512xf32, #tpu.memory_space<vmem>>, vector<4x512xf32>,
    %c32_i32 = arith.constant 32 : i32
    %81 = tpu.dynamic_rotate %75 by %c32_i32 dim 1 : vector<4x512xf32>, i32 -> vector<4x512xf32>
    %c10 = arith.constant 10 : index
    %c0_46 = arith.constant 0 : index
    %82 = vector.load %arg1[%c10, %c0_46] : memref<27x512xf32, #tpu.memory_space<vmem>>, vector<1x512xf32>
    %83 = vector.broadcast %82 : vector<1x512xf32> to vector<4x512xf32>
    %84 = arith.mulf %81, %83 : vector<4x512xf32>
    %c4_47 = arith.constant 4 : index
    %c0_48 = arith.constant 0 : index
    %85 = vector.load %arg15[%c4_47, %c0_48] : memref<36x512xf32, #tpu.memory_space<vmem>>, vector<4x512xf32>
    tpu.vector_store %arg15[%c4_47, %c0_48], %84 {strides = array<i32>} : memref<36x512xf32, #tpu.memory_space<vmem>>, vector<4x512xf32>,
    %c30_i32 = arith.constant 30 : i32
    %86 = tpu.dynamic_rotate %75 by %c30_i32 dim 1 : vector<4x512xf32>, i32 -> vector<4x512xf32>
    %c11 = arith.constant 11 : index
    %c0_49 = arith.constant 0 : index
    %87 = vector.load %arg1[%c11, %c0_49] : memref<27x512xf32, #tpu.memory_space<vmem>>, vector<1x512xf32>
    %88 = vector.broadcast %87 : vector<1x512xf32> to vector<4x512xf32>
    %89 = arith.mulf %86, %88 : vector<4x512xf32>
    %c8_50 = arith.constant 8 : index
    %c0_51 = arith.constant 0 : index
    %90 = vector.load %arg15[%c8_50, %c0_51] : memref<36x512xf32, #tpu.memory_space<vmem>>, vector<4x512xf32>
    tpu.vector_store %arg15[%c8_50, %c0_51], %89 {strides = array<i32>} : memref<36x512xf32, #tpu.memory_space<vmem>>, vector<4x512xf32>,
    %c2_i32 = arith.constant 2 : i32
    %91 = tpu.dynamic_rotate %75 by %c2_i32 dim 1 : vector<4x512xf32>, i32 -> vector<4x512xf32>
    %c12_52 = arith.constant 12 : index
    %c0_53 = arith.constant 0 : index
    %92 = vector.load %arg1[%c12_52, %c0_53] : memref<27x512xf32, #tpu.memory_space<vmem>>, vector<1x512xf32>
    %93 = vector.broadcast %92 : vector<1x512xf32> to vector<4x512xf32>
    %94 = arith.mulf %91, %93 : vector<4x512xf32>
    %c12_54 = arith.constant 12 : index
    %c0_55 = arith.constant 0 : index
    %95 = vector.load %arg15[%c12_54, %c0_55] : memref<36x512xf32, #tpu.memory_space<vmem>>, vector<4x512xf32>
    tpu.vector_store %arg15[%c12_54, %c0_55], %94 {strides = array<i32>} : memref<36x512xf32, #tpu.memory_space<vmem>>, vector<4x512xf32>,
    %c13 = arith.constant 13 : index
    %c0_56 = arith.constant 0 : index
    %96 = vector.load %arg1[%c13, %c0_56] : memref<27x512xf32, #tpu.memory_space<vmem>>, vector<1x512xf32>
    %97 = vector.broadcast %96 : vector<1x512xf32> to vector<4x512xf32>
    %98 = arith.mulf %75, %97 : vector<4x512xf32>
    %c16_57 = arith.constant 16 : index
    %c0_58 = arith.constant 0 : index
    %99 = vector.load %arg15[%c16_57, %c0_58] : memref<36x512xf32, #tpu.memory_space<vmem>>, vector<4x512xf32>
    tpu.vector_store %arg15[%c16_57, %c0_58], %98 {strides = array<i32>} : memref<36x512xf32, #tpu.memory_space<vmem>>, vector<4x512xf32>,
    %c510_i32 = arith.constant 510 : i32
    %100 = tpu.dynamic_rotate %75 by %c510_i32 dim 1 : vector<4x512xf32>, i32 -> vector<4x512xf32>
    %c14 = arith.constant 14 : index
    %c0_59 = arith.constant 0 : index
    %101 = vector.load %arg1[%c14, %c0_59] : memref<27x512xf32, #tpu.memory_space<vmem>>, vector<1x512xf32>
    %102 = vector.broadcast %101 : vector<1x512xf32> to vector<4x512xf32>
    %103 = arith.mulf %100, %102 : vector<4x512xf32>
    %c20_60 = arith.constant 20 : index
    %c0_61 = arith.constant 0 : index
    %104 = vector.load %arg15[%c20_60, %c0_61] : memref<36x512xf32, #tpu.memory_space<vmem>>, vector<4x512xf32>
    tpu.vector_store %arg15[%c20_60, %c0_61], %103 {strides = array<i32>} : memref<36x512xf32, #tpu.memory_space<vmem>>, vector<4x512xf32>,
    %c482_i32 = arith.constant 482 : i32
    %105 = tpu.dynamic_rotate %75 by %c482_i32 dim 1 : vector<4x512xf32>, i32 -> vector<4x512xf32>
    %c15 = arith.constant 15 : index
    %c0_62 = arith.constant 0 : index
    %106 = vector.load %arg1[%c15, %c0_62] : memref<27x512xf32, #tpu.memory_space<vmem>>, vector<1x512xf32>
    %107 = vector.broadcast %106 : vector<1x512xf32> to vector<4x512xf32>
    %108 = arith.mulf %105, %107 : vector<4x512xf32>
    %c24_63 = arith.constant 24 : index
    %c0_64 = arith.constant 0 : index
    %109 = vector.load %arg15[%c24_63, %c0_64] : memref<36x512xf32, #tpu.memory_space<vmem>>, vector<4x512xf32>
    tpu.vector_store %arg15[%c24_63, %c0_64], %108 {strides = array<i32>} : memref<36x512xf32, #tpu.memory_space<vmem>>, vector<4x512xf32>,
    %c480_i32 = arith.constant 480 : i32
    %110 = tpu.dynamic_rotate %75 by %c480_i32 dim 1 : vector<4x512xf32>, i32 -> vector<4x512xf32>
    %c16_65 = arith.constant 16 : index
    %c0_66 = arith.constant 0 : index
    %111 = vector.load %arg1[%c16_65, %c0_66] : memref<27x512xf32, #tpu.memory_space<vmem>>, vector<1x512xf32>
    %112 = vector.broadcast %111 : vector<1x512xf32> to vector<4x512xf32>
    %113 = arith.mulf %110, %112 : vector<4x512xf32>
    %c28_67 = arith.constant 28 : index
    %c0_68 = arith.constant 0 : index
    %114 = vector.load %arg15[%c28_67, %c0_68] : memref<36x512xf32, #tpu.memory_space<vmem>>, vector<4x512xf32>
    tpu.vector_store %arg15[%c28_67, %c0_68], %113 {strides = array<i32>} : memref<36x512xf32, #tpu.memory_space<vmem>>, vector<4x512xf32>,
    %c478_i32 = arith.constant 478 : i32
    %115 = tpu.dynamic_rotate %75 by %c478_i32 dim 1 : vector<4x512xf32>, i32 -> vector<4x512xf32>
    %c17 = arith.constant 17 : index
    %c0_69 = arith.constant 0 : index
    %116 = vector.load %arg1[%c17, %c0_69] : memref<27x512xf32, #tpu.memory_space<vmem>>, vector<1x512xf32>
    %117 = vector.broadcast %116 : vector<1x512xf32> to vector<4x512xf32>
    %118 = arith.mulf %115, %117 : vector<4x512xf32>
    %c32_70 = arith.constant 32 : index
    %c0_71 = arith.constant 0 : index
    %119 = vector.load %arg15[%c32_70, %c0_71] : memref<36x512xf32, #tpu.memory_space<vmem>>, vector<4x512xf32>
    tpu.vector_store %arg15[%c32_70, %c0_71], %118 {strides = array<i32>} : memref<36x512xf32, #tpu.memory_space<vmem>>, vector<4x512xf32>,
    %c0_72 = arith.constant 0 : index
    %c0_73 = arith.constant 0 : index
    %120 = vector.load %arg15[%c0_72, %c0_73] : memref<36x512xf32, #tpu.memory_space<vmem>>, vector<36x512xf32>
    %121 = arith.truncf %120 : vector<36x512xf32> to vector<36x512xbf16>
    %c0_74 = arith.constant 0 : index
    %c0_75 = arith.constant 0 : index
    %122 = vector.load %arg5[%c0_74, %c0_75] : memref<4x36xbf16, #tpu.memory_space<vmem>>, vector<4x36xbf16>
    %cst_76 = arith.constant dense<0.000000e+00> : vector<4x512xf32>
    %123 = tpu.matmul %122, %121, %cst_76 {dimension_numbers = #tpu.dot_dimension_numbers<[1], [0], [0], [1], [0, 0, 1, 1], [], []>} : vector<4x36xbf16>, vector<36x512xbf16>, vector<4x512xf32> -> vector<4x512xf32>
    %c0_77 = arith.constant 0 : index
    %c0_78 = arith.constant 0 : index
    %124 = vector.load %arg6[%c0_77, %c0_78] : memref<4x36xbf16, #tpu.memory_space<vmem>>, vector<4x36xbf16>
    %cst_79 = arith.constant dense<0.000000e+00> : vector<4x512xf32>
    %125 = tpu.matmul %124, %121, %cst_79 {dimension_numbers = #tpu.dot_dimension_numbers<[1], [0], [0], [1], [0, 0, 1, 1], [], []>} : vector<4x36xbf16>, vector<36x512xbf16>, vector<4x512xf32> -> vector<4x512xf32>
    %126 = arith.addf %123, %50 : vector<4x512xf32>
    %127 = arith.addf %52, %125 : vector<4x512xf32>
    %cst_80 = arith.constant dense<0.000000e+00> : vector<4xf32>
    %128 = vector.multi_reduction <add>, %126, %cst_80 [1] : vector<4x512xf32> to vector<4xf32>
    %129 = vector.shape_cast %128 : vector<4xf32> to vector<4x1xf32>
    %cst_81 = arith.constant 0.001953125 : f32
    %130 = vector.broadcast %cst_81 : f32 to vector<4x1xf32>
    %131 = arith.mulf %129, %130 : vector<4x1xf32>
    %132 = vector.broadcast %131 : vector<4x1xf32> to vector<4x512xf32>
    %133 = arith.subf %126, %132 : vector<4x512xf32>
    %134 = arith.mulf %133, %133 : vector<4x512xf32>
    %cst_82 = arith.constant dense<0.000000e+00> : vector<4xf32>
    %135 = vector.multi_reduction <add>, %134, %cst_82 [1] : vector<4x512xf32> to vector<4xf32>
    %136 = vector.shape_cast %135 : vector<4xf32> to vector<4x1xf32>
    %cst_83 = arith.constant 0.001953125 : f32
    %137 = vector.broadcast %cst_83 : f32 to vector<4x1xf32>
    %138 = arith.mulf %136, %137 : vector<4x1xf32>
    %c0_84 = arith.constant 0 : index
    %c0_85 = arith.constant 0 : index
    %139 = vector.load %arg10[%c0_84, %c0_85] : memref<4x1xf32, #tpu.memory_space<vmem>>, vector<4x1xf32>
    %cst_86 = arith.constant 9.99999974E-6 : f32
    %140 = vector.broadcast %cst_86 : f32 to vector<4x1xf32>
    %141 = arith.addf %138, %140 : vector<4x1xf32>
    %142 = math.rsqrt %141 : vector<4x1xf32>
    %143 = arith.mulf %139, %142 : vector<4x1xf32>
    %144 = vector.broadcast %143 : vector<4x1xf32> to vector<4x512xf32>
    %145 = arith.mulf %133, %144 : vector<4x512xf32>
    %c0_87 = arith.constant 0 : index
    %c0_88 = arith.constant 0 : index
    %146 = vector.load %arg11[%c0_87, %c0_88] : memref<4x1xf32, #tpu.memory_space<vmem>>, vector<4x1xf32>
    %147 = vector.broadcast %146 : vector<4x1xf32> to vector<4x512xf32>
    %148 = arith.addf %145, %147 : vector<4x512xf32>
    %cst_89 = arith.constant 0.000000e+00 : f32
    %149 = vector.broadcast %cst_89 : f32 to vector<4x512xf32>
    %150 = arith.maximumf %148, %149 : vector<4x512xf32>
    %c68_i32 = arith.constant 68 : i32
    %151 = tpu.dynamic_rotate %150 by %c68_i32 dim 1 : vector<4x512xf32>, i32 -> vector<4x512xf32>
    %c18 = arith.constant 18 : index
    %c0_90 = arith.constant 0 : index
    %152 = vector.load %arg1[%c18, %c0_90] : memref<27x512xf32, #tpu.memory_space<vmem>>, vector<1x512xf32>
    %153 = vector.broadcast %152 : vector<1x512xf32> to vector<4x512xf32>
    %154 = arith.mulf %151, %153 : vector<4x512xf32>
    %c0_91 = arith.constant 0 : index
    %c0_92 = arith.constant 0 : index
    %155 = vector.load %arg15[%c0_91, %c0_92] : memref<36x512xf32, #tpu.memory_space<vmem>>, vector<4x512xf32>
    tpu.vector_store %arg15[%c0_91, %c0_92], %154 {strides = array<i32>} : memref<36x512xf32, #tpu.memory_space<vmem>>, vector<4x512xf32>,
    %c64_i32 = arith.constant 64 : i32
    %156 = tpu.dynamic_rotate %150 by %c64_i32 dim 1 : vector<4x512xf32>, i32 -> vector<4x512xf32>
    %c19 = arith.constant 19 : index
    %c0_93 = arith.constant 0 : index
    %157 = vector.load %arg1[%c19, %c0_93] : memref<27x512xf32, #tpu.memory_space<vmem>>, vector<1x512xf32>
    %158 = vector.broadcast %157 : vector<1x512xf32> to vector<4x512xf32>
    %159 = arith.mulf %156, %158 : vector<4x512xf32>
    %c4_94 = arith.constant 4 : index
    %c0_95 = arith.constant 0 : index
    %160 = vector.load %arg15[%c4_94, %c0_95] : memref<36x512xf32, #tpu.memory_space<vmem>>, vector<4x512xf32>
    tpu.vector_store %arg15[%c4_94, %c0_95], %159 {strides = array<i32>} : memref<36x512xf32, #tpu.memory_space<vmem>>, vector<4x512xf32>,
    %c60_i32 = arith.constant 60 : i32
    %161 = tpu.dynamic_rotate %150 by %c60_i32 dim 1 : vector<4x512xf32>, i32 -> vector<4x512xf32>
    %c20_96 = arith.constant 20 : index
    %c0_97 = arith.constant 0 : index
    %162 = vector.load %arg1[%c20_96, %c0_97] : memref<27x512xf32, #tpu.memory_space<vmem>>, vector<1x512xf32>
    %163 = vector.broadcast %162 : vector<1x512xf32> to vector<4x512xf32>
    %164 = arith.mulf %161, %163 : vector<4x512xf32>
    %c8_98 = arith.constant 8 : index
    %c0_99 = arith.constant 0 : index
    %165 = vector.load %arg15[%c8_98, %c0_99] : memref<36x512xf32, #tpu.memory_space<vmem>>, vector<4x512xf32>
    tpu.vector_store %arg15[%c8_98, %c0_99], %164 {strides = array<i32>} : memref<36x512xf32, #tpu.memory_space<vmem>>, vector<4x512xf32>,
    %c4_i32 = arith.constant 4 : i32
    %166 = tpu.dynamic_rotate %150 by %c4_i32 dim 1 : vector<4x512xf32>, i32 -> vector<4x512xf32>
    %c21 = arith.constant 21 : index
    %c0_100 = arith.constant 0 : index
    %167 = vector.load %arg1[%c21, %c0_100] : memref<27x512xf32, #tpu.memory_space<vmem>>, vector<1x512xf32>
    %168 = vector.broadcast %167 : vector<1x512xf32> to vector<4x512xf32>
    %169 = arith.mulf %166, %168 : vector<4x512xf32>
    %c12_101 = arith.constant 12 : index
    %c0_102 = arith.constant 0 : index
    %170 = vector.load %arg15[%c12_101, %c0_102] : memref<36x512xf32, #tpu.memory_space<vmem>>, vector<4x512xf32>
    tpu.vector_store %arg15[%c12_101, %c0_102], %169 {strides = array<i32>} : memref<36x512xf32, #tpu.memory_space<vmem>>, vector<4x512xf32>,
    %c22 = arith.constant 22 : index
    %c0_103 = arith.constant 0 : index
    %171 = vector.load %arg1[%c22, %c0_103] : memref<27x512xf32, #tpu.memory_space<vmem>>, vector<1x512xf32>
    %172 = vector.broadcast %171 : vector<1x512xf32> to vector<4x512xf32>
    %173 = arith.mulf %150, %172 : vector<4x512xf32>
    %c16_104 = arith.constant 16 : index
    %c0_105 = arith.constant 0 : index
    %174 = vector.load %arg15[%c16_104, %c0_105] : memref<36x512xf32, #tpu.memory_space<vmem>>, vector<4x512xf32>
    tpu.vector_store %arg15[%c16_104, %c0_105], %173 {strides = array<i32>} : memref<36x512xf32, #tpu.memory_space<vmem>>, vector<4x512xf32>,
    %c508_i32 = arith.constant 508 : i32
    %175 = tpu.dynamic_rotate %150 by %c508_i32 dim 1 : vector<4x512xf32>, i32 -> vector<4x512xf32>
    %c23 = arith.constant 23 : index
    %c0_106 = arith.constant 0 : index
    %176 = vector.load %arg1[%c23, %c0_106] : memref<27x512xf32, #tpu.memory_space<vmem>>, vector<1x512xf32>
    %177 = vector.broadcast %176 : vector<1x512xf32> to vector<4x512xf32>
    %178 = arith.mulf %175, %177 : vector<4x512xf32>
    %c20_107 = arith.constant 20 : index
    %c0_108 = arith.constant 0 : index
    %179 = vector.load %arg15[%c20_107, %c0_108] : memref<36x512xf32, #tpu.memory_space<vmem>>, vector<4x512xf32>
    tpu.vector_store %arg15[%c20_107, %c0_108], %178 {strides = array<i32>} : memref<36x512xf32, #tpu.memory_space<vmem>>, vector<4x512xf32>,
    %c452_i32 = arith.constant 452 : i32
    %180 = tpu.dynamic_rotate %150 by %c452_i32 dim 1 : vector<4x512xf32>, i32 -> vector<4x512xf32>
    %c24_109 = arith.constant 24 : index
    %c0_110 = arith.constant 0 : index
    %181 = vector.load %arg1[%c24_109, %c0_110] : memref<27x512xf32, #tpu.memory_space<vmem>>, vector<1x512xf32>
    %182 = vector.broadcast %181 : vector<1x512xf32> to vector<4x512xf32>
    %183 = arith.mulf %180, %182 : vector<4x512xf32>
    %c24_111 = arith.constant 24 : index
    %c0_112 = arith.constant 0 : index
    %184 = vector.load %arg15[%c24_111, %c0_112] : memref<36x512xf32, #tpu.memory_space<vmem>>, vector<4x512xf32>
    tpu.vector_store %arg15[%c24_111, %c0_112], %183 {strides = array<i32>} : memref<36x512xf32, #tpu.memory_space<vmem>>, vector<4x512xf32>,
    %c448_i32 = arith.constant 448 : i32
    %185 = tpu.dynamic_rotate %150 by %c448_i32 dim 1 : vector<4x512xf32>, i32 -> vector<4x512xf32>
    %c25 = arith.constant 25 : index
    %c0_113 = arith.constant 0 : index
    %186 = vector.load %arg1[%c25, %c0_113] : memref<27x512xf32, #tpu.memory_space<vmem>>, vector<1x512xf32>
    %187 = vector.broadcast %186 : vector<1x512xf32> to vector<4x512xf32>
    %188 = arith.mulf %185, %187 : vector<4x512xf32>
    %c28_114 = arith.constant 28 : index
    %c0_115 = arith.constant 0 : index
    %189 = vector.load %arg15[%c28_114, %c0_115] : memref<36x512xf32, #tpu.memory_space<vmem>>, vector<4x512xf32>
    tpu.vector_store %arg15[%c28_114, %c0_115], %188 {strides = array<i32>} : memref<36x512xf32, #tpu.memory_space<vmem>>, vector<4x512xf32>,
    %c444_i32 = arith.constant 444 : i32
    %190 = tpu.dynamic_rotate %150 by %c444_i32 dim 1 : vector<4x512xf32>, i32 -> vector<4x512xf32>
    %c26 = arith.constant 26 : index
    %c0_116 = arith.constant 0 : index
    %191 = vector.load %arg1[%c26, %c0_116] : memref<27x512xf32, #tpu.memory_space<vmem>>, vector<1x512xf32>
    %192 = vector.broadcast %191 : vector<1x512xf32> to vector<4x512xf32>
    %193 = arith.mulf %190, %192 : vector<4x512xf32>
    %c32_117 = arith.constant 32 : index
    %c0_118 = arith.constant 0 : index
    %194 = vector.load %arg15[%c32_117, %c0_118] : memref<36x512xf32, #tpu.memory_space<vmem>>, vector<4x512xf32>
    tpu.vector_store %arg15[%c32_117, %c0_118], %193 {strides = array<i32>} : memref<36x512xf32, #tpu.memory_space<vmem>>, vector<4x512xf32>,
    %c0_119 = arith.constant 0 : index
    %c0_120 = arith.constant 0 : index
    %195 = vector.load %arg15[%c0_119, %c0_120] : memref<36x512xf32, #tpu.memory_space<vmem>>, vector<36x512xf32>
    %196 = arith.truncf %195 : vector<36x512xf32> to vector<36x512xbf16>
    %c0_121 = arith.constant 0 : index
    %c0_122 = arith.constant 0 : index
    %197 = vector.load %arg7[%c0_121, %c0_122] : memref<4x36xbf16, #tpu.memory_space<vmem>>, vector<4x36xbf16>
    %cst_123 = arith.constant dense<0.000000e+00> : vector<4x512xf32>
    %198 = tpu.matmul %197, %196, %cst_123 {dimension_numbers = #tpu.dot_dimension_numbers<[1], [0], [0], [1], [0, 0, 1, 1], [], []>} : vector<4x36xbf16>, vector<36x512xbf16>, vector<4x512xf32> -> vector<4x512xf32>
    %199 = arith.addf %198, %127 : vector<4x512xf32>
    %cst_124 = arith.constant dense<0.000000e+00> : vector<4xf32>
    %200 = vector.multi_reduction <add>, %199, %cst_124 [1] : vector<4x512xf32> to vector<4xf32>
    %201 = vector.shape_cast %200 : vector<4xf32> to vector<4x1xf32>
    %cst_125 = arith.constant 0.001953125 : f32
    %202 = vector.broadcast %cst_125 : f32 to vector<4x1xf32>
    %203 = arith.mulf %201, %202 : vector<4x1xf32>
    %204 = vector.broadcast %203 : vector<4x1xf32> to vector<4x512xf32>
    %205 = arith.subf %199, %204 : vector<4x512xf32>
    %206 = arith.mulf %205, %205 : vector<4x512xf32>
    %cst_126 = arith.constant dense<0.000000e+00> : vector<4xf32>
    %207 = vector.multi_reduction <add>, %206, %cst_126 [1] : vector<4x512xf32> to vector<4xf32>
    %208 = vector.shape_cast %207 : vector<4xf32> to vector<4x1xf32>
    %cst_127 = arith.constant 0.001953125 : f32
    %209 = vector.broadcast %cst_127 : f32 to vector<4x1xf32>
    %210 = arith.mulf %208, %209 : vector<4x1xf32>
    %c0_128 = arith.constant 0 : index
    %c0_129 = arith.constant 0 : index
    %211 = vector.load %arg12[%c0_128, %c0_129] : memref<4x1xf32, #tpu.memory_space<vmem>>, vector<4x1xf32>
    %cst_130 = arith.constant 9.99999974E-6 : f32
    %212 = vector.broadcast %cst_130 : f32 to vector<4x1xf32>
    %213 = arith.addf %210, %212 : vector<4x1xf32>
    %214 = math.rsqrt %213 : vector<4x1xf32>
    %215 = arith.mulf %211, %214 : vector<4x1xf32>
    %216 = vector.broadcast %215 : vector<4x1xf32> to vector<4x512xf32>
    %217 = arith.mulf %205, %216 : vector<4x512xf32>
    %c0_131 = arith.constant 0 : index
    %c0_132 = arith.constant 0 : index
    %218 = vector.load %arg13[%c0_131, %c0_132] : memref<4x1xf32, #tpu.memory_space<vmem>>, vector<4x1xf32>
    %219 = vector.broadcast %218 : vector<4x1xf32> to vector<4x512xf32>
    %220 = arith.addf %217, %219 : vector<4x512xf32>
    %cst_133 = arith.constant 0.000000e+00 : f32
    %221 = vector.broadcast %cst_133 : f32 to vector<4x512xf32>
    %222 = arith.maximumf %220, %221 : vector<4x512xf32>
    %c0_134 = arith.constant 0 : index
    %c0_135 = arith.constant 0 : index
    %223 = vector.load %arg14[%c0_134, %c0_135] : memref<12x512xf32, #tpu.memory_space<vmem>>, vector<4x512xf32>
    tpu.vector_store %arg14[%c0_134, %c0_135], %75 {strides = array<i32>} : memref<12x512xf32, #tpu.memory_space<vmem>>, vector<4x512xf32>,
    %c4_136 = arith.constant 4 : index
    %c0_137 = arith.constant 0 : index
    %224 = vector.load %arg14[%c4_136, %c0_137] : memref<12x512xf32, #tpu.memory_space<vmem>>, vector<4x512xf32>
    tpu.vector_store %arg14[%c4_136, %c0_137], %150 {strides = array<i32>} : memref<12x512xf32, #tpu.memory_space<vmem>>, vector<4x512xf32>,
    %c8_138 = arith.constant 8 : index
    %c0_139 = arith.constant 0 : index
    %225 = vector.load %arg14[%c8_138, %c0_139] : memref<12x512xf32, #tpu.memory_space<vmem>>, vector<4x512xf32>
    tpu.vector_store %arg14[%c8_138, %c0_139], %222 {strides = array<i32>} : memref<12x512xf32, #tpu.memory_space<vmem>>, vector<4x512xf32>,
    return
  }
}

module attributes {stable_mosaic.version = 11 : i64} {
  func.func @_d2_block_kernel(%arg0: memref<16x512xf32, #tpu.memory_space<vmem>>, %arg1: memref<27x512xf32, #tpu.memory_space<vmem>>, %arg2: memref<4x144xbf16, #tpu.memory_space<vmem>>, %arg3: memref<4x144xbf16, #tpu.memory_space<vmem>>, %arg4: memref<4x144xbf16, #tpu.memory_space<vmem>>, %arg5: memref<4x36xbf16, #tpu.memory_space<vmem>>, %arg6: memref<4x36xbf16, #tpu.memory_space<vmem>>, %arg7: memref<4x36xbf16, #tpu.memory_space<vmem>>, %arg8: memref<4x1xf32, #tpu.memory_space<vmem>>, %arg9: memref<4x1xf32, #tpu.memory_space<vmem>>, %arg10: memref<4x1xf32, #tpu.memory_space<vmem>>, %arg11: memref<4x1xf32, #tpu.memory_space<vmem>>, %arg12: memref<4x1xf32, #tpu.memory_space<vmem>>, %arg13: memref<4x1xf32, #tpu.memory_space<vmem>>, %arg14: memref<12x512xf32, #tpu.memory_space<vmem>>, %arg15: memref<144x512xf32, #tpu.memory_space<vmem>>) attributes {dimension_semantics = [], scalar_prefetch = 0 : i64, scratch_operands = 1 : i64, tpu.core_type = #tpu.core_type<tc>} {
    %c0 = arith.constant 0 : index
    %c0_0 = arith.constant 0 : index
    %0 = vector.load %arg0[%c0, %c0_0] : memref<16x512xf32, #tpu.memory_space<vmem>>, vector<16x512xf32>
    %c17_i32 = arith.constant 17 : i32
    %1 = tpu.dynamic_rotate %0 by %c17_i32 dim 1 : vector<16x512xf32>, i32 -> vector<16x512xf32>
    %c0_1 = arith.constant 0 : index
    %c0_2 = arith.constant 0 : index
    %2 = vector.load %arg1[%c0_1, %c0_2] : memref<27x512xf32, #tpu.memory_space<vmem>>, vector<1x512xf32>
    %3 = vector.broadcast %2 : vector<1x512xf32> to vector<16x512xf32>
    %4 = arith.mulf %1, %3 : vector<16x512xf32>
    %c0_3 = arith.constant 0 : index
    %c0_4 = arith.constant 0 : index
    %5 = vector.load %arg15[%c0_3, %c0_4] : memref<144x512xf32, #tpu.memory_space<vmem>>, vector<16x512xf32>
    tpu.vector_store %arg15[%c0_3, %c0_4], %4 {strides = array<i32>} : memref<144x512xf32, #tpu.memory_space<vmem>>, vector<16x512xf32>,
    %c16_i32 = arith.constant 16 : i32
    %6 = tpu.dynamic_rotate %0 by %c16_i32 dim 1 : vector<16x512xf32>, i32 -> vector<16x512xf32>
    %c1 = arith.constant 1 : index
    %c0_5 = arith.constant 0 : index
    %7 = vector.load %arg1[%c1, %c0_5] : memref<27x512xf32, #tpu.memory_space<vmem>>, vector<1x512xf32>
    %8 = vector.broadcast %7 : vector<1x512xf32> to vector<16x512xf32>
    %9 = arith.mulf %6, %8 : vector<16x512xf32>
    %c16 = arith.constant 16 : index
    %c0_6 = arith.constant 0 : index
    %10 = vector.load %arg15[%c16, %c0_6] : memref<144x512xf32, #tpu.memory_space<vmem>>, vector<16x512xf32>
    tpu.vector_store %arg15[%c16, %c0_6], %9 {strides = array<i32>} : memref<144x512xf32, #tpu.memory_space<vmem>>, vector<16x512xf32>,
    %c15_i32 = arith.constant 15 : i32
    %11 = tpu.dynamic_rotate %0 by %c15_i32 dim 1 : vector<16x512xf32>, i32 -> vector<16x512xf32>
    %c2 = arith.constant 2 : index
    %c0_7 = arith.constant 0 : index
    %12 = vector.load %arg1[%c2, %c0_7] : memref<27x512xf32, #tpu.memory_space<vmem>>, vector<1x512xf32>
    %13 = vector.broadcast %12 : vector<1x512xf32> to vector<16x512xf32>
    %14 = arith.mulf %11, %13 : vector<16x512xf32>
    %c32 = arith.constant 32 : index
    %c0_8 = arith.constant 0 : index
    %15 = vector.load %arg15[%c32, %c0_8] : memref<144x512xf32, #tpu.memory_space<vmem>>, vector<16x512xf32>
    tpu.vector_store %arg15[%c32, %c0_8], %14 {strides = array<i32>} : memref<144x512xf32, #tpu.memory_space<vmem>>, vector<16x512xf32>,
    %c1_i32 = arith.constant 1 : i32
    %16 = tpu.dynamic_rotate %0 by %c1_i32 dim 1 : vector<16x512xf32>, i32 -> vector<16x512xf32>
    %c3 = arith.constant 3 : index
    %c0_9 = arith.constant 0 : index
    %17 = vector.load %arg1[%c3, %c0_9] : memref<27x512xf32, #tpu.memory_space<vmem>>, vector<1x512xf32>
    %18 = vector.broadcast %17 : vector<1x512xf32> to vector<16x512xf32>
    %19 = arith.mulf %16, %18 : vector<16x512xf32>
    %c48 = arith.constant 48 : index
    %c0_10 = arith.constant 0 : index
    %20 = vector.load %arg15[%c48, %c0_10] : memref<144x512xf32, #tpu.memory_space<vmem>>, vector<16x512xf32>
    tpu.vector_store %arg15[%c48, %c0_10], %19 {strides = array<i32>} : memref<144x512xf32, #tpu.memory_space<vmem>>, vector<16x512xf32>,
    %c4 = arith.constant 4 : index
    %c0_11 = arith.constant 0 : index
    %21 = vector.load %arg1[%c4, %c0_11] : memref<27x512xf32, #tpu.memory_space<vmem>>, vector<1x512xf32>
    %22 = vector.broadcast %21 : vector<1x512xf32> to vector<16x512xf32>
    %23 = arith.mulf %0, %22 : vector<16x512xf32>
    %c64 = arith.constant 64 : index
    %c0_12 = arith.constant 0 : index
    %24 = vector.load %arg15[%c64, %c0_12] : memref<144x512xf32, #tpu.memory_space<vmem>>, vector<16x512xf32>
    tpu.vector_store %arg15[%c64, %c0_12], %23 {strides = array<i32>} : memref<144x512xf32, #tpu.memory_space<vmem>>, vector<16x512xf32>,
    %c511_i32 = arith.constant 511 : i32
    %25 = tpu.dynamic_rotate %0 by %c511_i32 dim 1 : vector<16x512xf32>, i32 -> vector<16x512xf32>
    %c5 = arith.constant 5 : index
    %c0_13 = arith.constant 0 : index
    %26 = vector.load %arg1[%c5, %c0_13] : memref<27x512xf32, #tpu.memory_space<vmem>>, vector<1x512xf32>
    %27 = vector.broadcast %26 : vector<1x512xf32> to vector<16x512xf32>
    %28 = arith.mulf %25, %27 : vector<16x512xf32>
    %c80 = arith.constant 80 : index
    %c0_14 = arith.constant 0 : index
    %29 = vector.load %arg15[%c80, %c0_14] : memref<144x512xf32, #tpu.memory_space<vmem>>, vector<16x512xf32>
    tpu.vector_store %arg15[%c80, %c0_14], %28 {strides = array<i32>} : memref<144x512xf32, #tpu.memory_space<vmem>>, vector<16x512xf32>,
    %c497_i32 = arith.constant 497 : i32
    %30 = tpu.dynamic_rotate %0 by %c497_i32 dim 1 : vector<16x512xf32>, i32 -> vector<16x512xf32>
    %c6 = arith.constant 6 : index
    %c0_15 = arith.constant 0 : index
    %31 = vector.load %arg1[%c6, %c0_15] : memref<27x512xf32, #tpu.memory_space<vmem>>, vector<1x512xf32>
    %32 = vector.broadcast %31 : vector<1x512xf32> to vector<16x512xf32>
    %33 = arith.mulf %30, %32 : vector<16x512xf32>
    %c96 = arith.constant 96 : index
    %c0_16 = arith.constant 0 : index
    %34 = vector.load %arg15[%c96, %c0_16] : memref<144x512xf32, #tpu.memory_space<vmem>>, vector<16x512xf32>
    tpu.vector_store %arg15[%c96, %c0_16], %33 {strides = array<i32>} : memref<144x512xf32, #tpu.memory_space<vmem>>, vector<16x512xf32>,
    %c496_i32 = arith.constant 496 : i32
    %35 = tpu.dynamic_rotate %0 by %c496_i32 dim 1 : vector<16x512xf32>, i32 -> vector<16x512xf32>
    %c7 = arith.constant 7 : index
    %c0_17 = arith.constant 0 : index
    %36 = vector.load %arg1[%c7, %c0_17] : memref<27x512xf32, #tpu.memory_space<vmem>>, vector<1x512xf32>
    %37 = vector.broadcast %36 : vector<1x512xf32> to vector<16x512xf32>
    %38 = arith.mulf %35, %37 : vector<16x512xf32>
    %c112 = arith.constant 112 : index
    %c0_18 = arith.constant 0 : index
    %39 = vector.load %arg15[%c112, %c0_18] : memref<144x512xf32, #tpu.memory_space<vmem>>, vector<16x512xf32>
    tpu.vector_store %arg15[%c112, %c0_18], %38 {strides = array<i32>} : memref<144x512xf32, #tpu.memory_space<vmem>>, vector<16x512xf32>,
    %c495_i32 = arith.constant 495 : i32
    %40 = tpu.dynamic_rotate %0 by %c495_i32 dim 1 : vector<16x512xf32>, i32 -> vector<16x512xf32>
    %c8 = arith.constant 8 : index
    %c0_19 = arith.constant 0 : index
    %41 = vector.load %arg1[%c8, %c0_19] : memref<27x512xf32, #tpu.memory_space<vmem>>, vector<1x512xf32>
    %42 = vector.broadcast %41 : vector<1x512xf32> to vector<16x512xf32>
    %43 = arith.mulf %40, %42 : vector<16x512xf32>
    %c128 = arith.constant 128 : index
    %c0_20 = arith.constant 0 : index
    %44 = vector.load %arg15[%c128, %c0_20] : memref<144x512xf32, #tpu.memory_space<vmem>>, vector<16x512xf32>
    tpu.vector_store %arg15[%c128, %c0_20], %43 {strides = array<i32>} : memref<144x512xf32, #tpu.memory_space<vmem>>, vector<16x512xf32>,
    %c0_21 = arith.constant 0 : index
    %c0_22 = arith.constant 0 : index
    %45 = vector.load %arg15[%c0_21, %c0_22] : memref<144x512xf32, #tpu.memory_space<vmem>>, vector<144x512xf32>
    %46 = arith.truncf %45 : vector<144x512xf32> to vector<144x512xbf16>
    %c0_23 = arith.constant 0 : index
    %c0_24 = arith.constant 0 : index
    %47 = vector.load %arg2[%c0_23, %c0_24] : memref<4x144xbf16, #tpu.memory_space<vmem>>, vector<4x144xbf16>
    %cst = arith.constant dense<0.000000e+00> : vector<4x512xf32>
    %48 = tpu.matmul %47, %46, %cst {dimension_numbers = #tpu.dot_dimension_numbers<[1], [0], [0], [1], [0, 0, 1, 1], [], []>} : vector<4x144xbf16>, vector<144x512xbf16>, vector<4x512xf32> -> vector<4x512xf32>
    %c0_25 = arith.constant 0 : index
    %c0_26 = arith.constant 0 : index
    %49 = vector.load %arg3[%c0_25, %c0_26] : memref<4x144xbf16, #tpu.memory_space<vmem>>, vector<4x144xbf16>
    %cst_27 = arith.constant dense<0.000000e+00> : vector<4x512xf32>
    %50 = tpu.matmul %49, %46, %cst_27 {dimension_numbers = #tpu.dot_dimension_numbers<[1], [0], [0], [1], [0, 0, 1, 1], [], []>} : vector<4x144xbf16>, vector<144x512xbf16>, vector<4x512xf32> -> vector<4x512xf32>
    %c0_28 = arith.constant 0 : index
    %c0_29 = arith.constant 0 : index
    %51 = vector.load %arg4[%c0_28, %c0_29] : memref<4x144xbf16, #tpu.memory_space<vmem>>, vector<4x144xbf16>
    %cst_30 = arith.constant dense<0.000000e+00> : vector<4x512xf32>
    %52 = tpu.matmul %51, %46, %cst_30 {dimension_numbers = #tpu.dot_dimension_numbers<[1], [0], [0], [1], [0, 0, 1, 1], [], []>} : vector<4x144xbf16>, vector<144x512xbf16>, vector<4x512xf32> -> vector<4x512xf32>
    %cst_31 = arith.constant dense<0.000000e+00> : vector<4xf32>
    %53 = vector.multi_reduction <add>, %48, %cst_31 [1] : vector<4x512xf32> to vector<4xf32>
    %54 = vector.shape_cast %53 : vector<4xf32> to vector<4x1xf32>
    %cst_32 = arith.constant 0.001953125 : f32
    %55 = vector.broadcast %cst_32 : f32 to vector<4x1xf32>
    %56 = arith.mulf %54, %55 : vector<4x1xf32>
    %57 = vector.broadcast %56 : vector<4x1xf32> to vector<4x512xf32>
    %58 = arith.subf %48, %57 : vector<4x512xf32>
    %59 = arith.mulf %58, %58 : vector<4x512xf32>
    %cst_33 = arith.constant dense<0.000000e+00> : vector<4xf32>
    %60 = vector.multi_reduction <add>, %59, %cst_33 [1] : vector<4x512xf32> to vector<4xf32>
    %61 = vector.shape_cast %60 : vector<4xf32> to vector<4x1xf32>
    %cst_34 = arith.constant 0.001953125 : f32
    %62 = vector.broadcast %cst_34 : f32 to vector<4x1xf32>
    %63 = arith.mulf %61, %62 : vector<4x1xf32>
    %c0_35 = arith.constant 0 : index
    %c0_36 = arith.constant 0 : index
    %64 = vector.load %arg8[%c0_35, %c0_36] : memref<4x1xf32, #tpu.memory_space<vmem>>, vector<4x1xf32>
    %cst_37 = arith.constant 9.99999974E-6 : f32
    %65 = vector.broadcast %cst_37 : f32 to vector<4x1xf32>
    %66 = arith.addf %63, %65 : vector<4x1xf32>
    %67 = math.rsqrt %66 : vector<4x1xf32>
    %68 = arith.mulf %64, %67 : vector<4x1xf32>
    %69 = vector.broadcast %68 : vector<4x1xf32> to vector<4x512xf32>
    %70 = arith.mulf %58, %69 : vector<4x512xf32>
    %c0_38 = arith.constant 0 : index
    %c0_39 = arith.constant 0 : index
    %71 = vector.load %arg9[%c0_38, %c0_39] : memref<4x1xf32, #tpu.memory_space<vmem>>, vector<4x1xf32>
    %72 = vector.broadcast %71 : vector<4x1xf32> to vector<4x512xf32>
    %73 = arith.addf %70, %72 : vector<4x512xf32>
    %cst_40 = arith.constant 0.000000e+00 : f32
    %74 = vector.broadcast %cst_40 : f32 to vector<4x512xf32>
    %75 = arith.maximumf %73, %74 : vector<4x512xf32>
    %c34_i32 = arith.constant 34 : i32
    %76 = tpu.dynamic_rotate %75 by %c34_i32 dim 1 : vector<4x512xf32>, i32 -> vector<4x512xf32>
    %c9 = arith.constant 9 : index
    %c0_41 = arith.constant 0 : index
    %77 = vector.load %arg1[%c9, %c0_41] : memref<27x512xf32, #tpu.memory_space<vmem>>, vector<1x512xf32>
    %78 = vector.broadcast %77 : vector<1x512xf32> to vector<4x512xf32>
    %79 = arith.mulf %76, %78 : vector<4x512xf32>
    %c0_42 = arith.constant 0 : index
    %c0_43 = arith.constant 0 : index
    %80 = vector.load %arg15[%c0_42, %c0_43] : memref<144x512xf32, #tpu.memory_space<vmem>>, vector<4x512xf32>
    tpu.vector_store %arg15[%c0_42, %c0_43], %79 {strides = array<i32>} : memref<144x512xf32, #tpu.memory_space<vmem>>, vector<4x512xf32>,
    %c32_i32 = arith.constant 32 : i32
    %81 = tpu.dynamic_rotate %75 by %c32_i32 dim 1 : vector<4x512xf32>, i32 -> vector<4x512xf32>
    %c10 = arith.constant 10 : index
    %c0_44 = arith.constant 0 : index
    %82 = vector.load %arg1[%c10, %c0_44] : memref<27x512xf32, #tpu.memory_space<vmem>>, vector<1x512xf32>
    %83 = vector.broadcast %82 : vector<1x512xf32> to vector<4x512xf32>
    %84 = arith.mulf %81, %83 : vector<4x512xf32>
    %c4_45 = arith.constant 4 : index
    %c0_46 = arith.constant 0 : index
    %85 = vector.load %arg15[%c4_45, %c0_46] : memref<144x512xf32, #tpu.memory_space<vmem>>, vector<4x512xf32>
    tpu.vector_store %arg15[%c4_45, %c0_46], %84 {strides = array<i32>} : memref<144x512xf32, #tpu.memory_space<vmem>>, vector<4x512xf32>,
    %c30_i32 = arith.constant 30 : i32
    %86 = tpu.dynamic_rotate %75 by %c30_i32 dim 1 : vector<4x512xf32>, i32 -> vector<4x512xf32>
    %c11 = arith.constant 11 : index
    %c0_47 = arith.constant 0 : index
    %87 = vector.load %arg1[%c11, %c0_47] : memref<27x512xf32, #tpu.memory_space<vmem>>, vector<1x512xf32>
    %88 = vector.broadcast %87 : vector<1x512xf32> to vector<4x512xf32>
    %89 = arith.mulf %86, %88 : vector<4x512xf32>
    %c8_48 = arith.constant 8 : index
    %c0_49 = arith.constant 0 : index
    %90 = vector.load %arg15[%c8_48, %c0_49] : memref<144x512xf32, #tpu.memory_space<vmem>>, vector<4x512xf32>
    tpu.vector_store %arg15[%c8_48, %c0_49], %89 {strides = array<i32>} : memref<144x512xf32, #tpu.memory_space<vmem>>, vector<4x512xf32>,
    %c2_i32 = arith.constant 2 : i32
    %91 = tpu.dynamic_rotate %75 by %c2_i32 dim 1 : vector<4x512xf32>, i32 -> vector<4x512xf32>
    %c12 = arith.constant 12 : index
    %c0_50 = arith.constant 0 : index
    %92 = vector.load %arg1[%c12, %c0_50] : memref<27x512xf32, #tpu.memory_space<vmem>>, vector<1x512xf32>
    %93 = vector.broadcast %92 : vector<1x512xf32> to vector<4x512xf32>
    %94 = arith.mulf %91, %93 : vector<4x512xf32>
    %c12_51 = arith.constant 12 : index
    %c0_52 = arith.constant 0 : index
    %95 = vector.load %arg15[%c12_51, %c0_52] : memref<144x512xf32, #tpu.memory_space<vmem>>, vector<4x512xf32>
    tpu.vector_store %arg15[%c12_51, %c0_52], %94 {strides = array<i32>} : memref<144x512xf32, #tpu.memory_space<vmem>>, vector<4x512xf32>,
    %c13 = arith.constant 13 : index
    %c0_53 = arith.constant 0 : index
    %96 = vector.load %arg1[%c13, %c0_53] : memref<27x512xf32, #tpu.memory_space<vmem>>, vector<1x512xf32>
    %97 = vector.broadcast %96 : vector<1x512xf32> to vector<4x512xf32>
    %98 = arith.mulf %75, %97 : vector<4x512xf32>
    %c16_54 = arith.constant 16 : index
    %c0_55 = arith.constant 0 : index
    %99 = vector.load %arg15[%c16_54, %c0_55] : memref<144x512xf32, #tpu.memory_space<vmem>>, vector<4x512xf32>
    tpu.vector_store %arg15[%c16_54, %c0_55], %98 {strides = array<i32>} : memref<144x512xf32, #tpu.memory_space<vmem>>, vector<4x512xf32>,
    %c510_i32 = arith.constant 510 : i32
    %100 = tpu.dynamic_rotate %75 by %c510_i32 dim 1 : vector<4x512xf32>, i32 -> vector<4x512xf32>
    %c14 = arith.constant 14 : index
    %c0_56 = arith.constant 0 : index
    %101 = vector.load %arg1[%c14, %c0_56] : memref<27x512xf32, #tpu.memory_space<vmem>>, vector<1x512xf32>
    %102 = vector.broadcast %101 : vector<1x512xf32> to vector<4x512xf32>
    %103 = arith.mulf %100, %102 : vector<4x512xf32>
    %c20 = arith.constant 20 : index
    %c0_57 = arith.constant 0 : index
    %104 = vector.load %arg15[%c20, %c0_57] : memref<144x512xf32, #tpu.memory_space<vmem>>, vector<4x512xf32>
    tpu.vector_store %arg15[%c20, %c0_57], %103 {strides = array<i32>} : memref<144x512xf32, #tpu.memory_space<vmem>>, vector<4x512xf32>,
    %c482_i32 = arith.constant 482 : i32
    %105 = tpu.dynamic_rotate %75 by %c482_i32 dim 1 : vector<4x512xf32>, i32 -> vector<4x512xf32>
    %c15 = arith.constant 15 : index
    %c0_58 = arith.constant 0 : index
    %106 = vector.load %arg1[%c15, %c0_58] : memref<27x512xf32, #tpu.memory_space<vmem>>, vector<1x512xf32>
    %107 = vector.broadcast %106 : vector<1x512xf32> to vector<4x512xf32>
    %108 = arith.mulf %105, %107 : vector<4x512xf32>
    %c24 = arith.constant 24 : index
    %c0_59 = arith.constant 0 : index
    %109 = vector.load %arg15[%c24, %c0_59] : memref<144x512xf32, #tpu.memory_space<vmem>>, vector<4x512xf32>
    tpu.vector_store %arg15[%c24, %c0_59], %108 {strides = array<i32>} : memref<144x512xf32, #tpu.memory_space<vmem>>, vector<4x512xf32>,
    %c480_i32 = arith.constant 480 : i32
    %110 = tpu.dynamic_rotate %75 by %c480_i32 dim 1 : vector<4x512xf32>, i32 -> vector<4x512xf32>
    %c16_60 = arith.constant 16 : index
    %c0_61 = arith.constant 0 : index
    %111 = vector.load %arg1[%c16_60, %c0_61] : memref<27x512xf32, #tpu.memory_space<vmem>>, vector<1x512xf32>
    %112 = vector.broadcast %111 : vector<1x512xf32> to vector<4x512xf32>
    %113 = arith.mulf %110, %112 : vector<4x512xf32>
    %c28 = arith.constant 28 : index
    %c0_62 = arith.constant 0 : index
    %114 = vector.load %arg15[%c28, %c0_62] : memref<144x512xf32, #tpu.memory_space<vmem>>, vector<4x512xf32>
    tpu.vector_store %arg15[%c28, %c0_62], %113 {strides = array<i32>} : memref<144x512xf32, #tpu.memory_space<vmem>>, vector<4x512xf32>,
    %c478_i32 = arith.constant 478 : i32
    %115 = tpu.dynamic_rotate %75 by %c478_i32 dim 1 : vector<4x512xf32>, i32 -> vector<4x512xf32>
    %c17 = arith.constant 17 : index
    %c0_63 = arith.constant 0 : index
    %116 = vector.load %arg1[%c17, %c0_63] : memref<27x512xf32, #tpu.memory_space<vmem>>, vector<1x512xf32>
    %117 = vector.broadcast %116 : vector<1x512xf32> to vector<4x512xf32>
    %118 = arith.mulf %115, %117 : vector<4x512xf32>
    %c32_64 = arith.constant 32 : index
    %c0_65 = arith.constant 0 : index
    %119 = vector.load %arg15[%c32_64, %c0_65] : memref<144x512xf32, #tpu.memory_space<vmem>>, vector<4x512xf32>
    tpu.vector_store %arg15[%c32_64, %c0_65], %118 {strides = array<i32>} : memref<144x512xf32, #tpu.memory_space<vmem>>, vector<4x512xf32>,
    %c0_66 = arith.constant 0 : index
    %c0_67 = arith.constant 0 : index
    %120 = vector.load %arg15[%c0_66, %c0_67] : memref<144x512xf32, #tpu.memory_space<vmem>>, vector<36x512xf32>
    %121 = arith.truncf %120 : vector<36x512xf32> to vector<36x512xbf16>
    %c0_68 = arith.constant 0 : index
    %c0_69 = arith.constant 0 : index
    %122 = vector.load %arg5[%c0_68, %c0_69] : memref<4x36xbf16, #tpu.memory_space<vmem>>, vector<4x36xbf16>
    %cst_70 = arith.constant dense<0.000000e+00> : vector<4x512xf32>
    %123 = tpu.matmul %122, %121, %cst_70 {dimension_numbers = #tpu.dot_dimension_numbers<[1], [0], [0], [1], [0, 0, 1, 1], [], []>} : vector<4x36xbf16>, vector<36x512xbf16>, vector<4x512xf32> -> vector<4x512xf32>
    %c0_71 = arith.constant 0 : index
    %c0_72 = arith.constant 0 : index
    %124 = vector.load %arg6[%c0_71, %c0_72] : memref<4x36xbf16, #tpu.memory_space<vmem>>, vector<4x36xbf16>
    %cst_73 = arith.constant dense<0.000000e+00> : vector<4x512xf32>
    %125 = tpu.matmul %124, %121, %cst_73 {dimension_numbers = #tpu.dot_dimension_numbers<[1], [0], [0], [1], [0, 0, 1, 1], [], []>} : vector<4x36xbf16>, vector<36x512xbf16>, vector<4x512xf32> -> vector<4x512xf32>
    %126 = arith.addf %123, %50 : vector<4x512xf32>
    %127 = arith.addf %52, %125 : vector<4x512xf32>
    %cst_74 = arith.constant dense<0.000000e+00> : vector<4xf32>
    %128 = vector.multi_reduction <add>, %126, %cst_74 [1] : vector<4x512xf32> to vector<4xf32>
    %129 = vector.shape_cast %128 : vector<4xf32> to vector<4x1xf32>
    %cst_75 = arith.constant 0.001953125 : f32
    %130 = vector.broadcast %cst_75 : f32 to vector<4x1xf32>
    %131 = arith.mulf %129, %130 : vector<4x1xf32>
    %132 = vector.broadcast %131 : vector<4x1xf32> to vector<4x512xf32>
    %133 = arith.subf %126, %132 : vector<4x512xf32>
    %134 = arith.mulf %133, %133 : vector<4x512xf32>
    %cst_76 = arith.constant dense<0.000000e+00> : vector<4xf32>
    %135 = vector.multi_reduction <add>, %134, %cst_76 [1] : vector<4x512xf32> to vector<4xf32>
    %136 = vector.shape_cast %135 : vector<4xf32> to vector<4x1xf32>
    %cst_77 = arith.constant 0.001953125 : f32
    %137 = vector.broadcast %cst_77 : f32 to vector<4x1xf32>
    %138 = arith.mulf %136, %137 : vector<4x1xf32>
    %c0_78 = arith.constant 0 : index
    %c0_79 = arith.constant 0 : index
    %139 = vector.load %arg10[%c0_78, %c0_79] : memref<4x1xf32, #tpu.memory_space<vmem>>, vector<4x1xf32>
    %cst_80 = arith.constant 9.99999974E-6 : f32
    %140 = vector.broadcast %cst_80 : f32 to vector<4x1xf32>
    %141 = arith.addf %138, %140 : vector<4x1xf32>
    %142 = math.rsqrt %141 : vector<4x1xf32>
    %143 = arith.mulf %139, %142 : vector<4x1xf32>
    %144 = vector.broadcast %143 : vector<4x1xf32> to vector<4x512xf32>
    %145 = arith.mulf %133, %144 : vector<4x512xf32>
    %c0_81 = arith.constant 0 : index
    %c0_82 = arith.constant 0 : index
    %146 = vector.load %arg11[%c0_81, %c0_82] : memref<4x1xf32, #tpu.memory_space<vmem>>, vector<4x1xf32>
    %147 = vector.broadcast %146 : vector<4x1xf32> to vector<4x512xf32>
    %148 = arith.addf %145, %147 : vector<4x512xf32>
    %cst_83 = arith.constant 0.000000e+00 : f32
    %149 = vector.broadcast %cst_83 : f32 to vector<4x512xf32>
    %150 = arith.maximumf %148, %149 : vector<4x512xf32>
    %c68_i32 = arith.constant 68 : i32
    %151 = tpu.dynamic_rotate %150 by %c68_i32 dim 1 : vector<4x512xf32>, i32 -> vector<4x512xf32>
    %c18 = arith.constant 18 : index
    %c0_84 = arith.constant 0 : index
    %152 = vector.load %arg1[%c18, %c0_84] : memref<27x512xf32, #tpu.memory_space<vmem>>, vector<1x512xf32>
    %153 = vector.broadcast %152 : vector<1x512xf32> to vector<4x512xf32>
    %154 = arith.mulf %151, %153 : vector<4x512xf32>
    %c0_85 = arith.constant 0 : index
    %c0_86 = arith.constant 0 : index
    %155 = vector.load %arg15[%c0_85, %c0_86] : memref<144x512xf32, #tpu.memory_space<vmem>>, vector<4x512xf32>
    tpu.vector_store %arg15[%c0_85, %c0_86], %154 {strides = array<i32>} : memref<144x512xf32, #tpu.memory_space<vmem>>, vector<4x512xf32>,
    %c64_i32 = arith.constant 64 : i32
    %156 = tpu.dynamic_rotate %150 by %c64_i32 dim 1 : vector<4x512xf32>, i32 -> vector<4x512xf32>
    %c19 = arith.constant 19 : index
    %c0_87 = arith.constant 0 : index
    %157 = vector.load %arg1[%c19, %c0_87] : memref<27x512xf32, #tpu.memory_space<vmem>>, vector<1x512xf32>
    %158 = vector.broadcast %157 : vector<1x512xf32> to vector<4x512xf32>
    %159 = arith.mulf %156, %158 : vector<4x512xf32>
    %c4_88 = arith.constant 4 : index
    %c0_89 = arith.constant 0 : index
    %160 = vector.load %arg15[%c4_88, %c0_89] : memref<144x512xf32, #tpu.memory_space<vmem>>, vector<4x512xf32>
    tpu.vector_store %arg15[%c4_88, %c0_89], %159 {strides = array<i32>} : memref<144x512xf32, #tpu.memory_space<vmem>>, vector<4x512xf32>,
    %c60_i32 = arith.constant 60 : i32
    %161 = tpu.dynamic_rotate %150 by %c60_i32 dim 1 : vector<4x512xf32>, i32 -> vector<4x512xf32>
    %c20_90 = arith.constant 20 : index
    %c0_91 = arith.constant 0 : index
    %162 = vector.load %arg1[%c20_90, %c0_91] : memref<27x512xf32, #tpu.memory_space<vmem>>, vector<1x512xf32>
    %163 = vector.broadcast %162 : vector<1x512xf32> to vector<4x512xf32>
    %164 = arith.mulf %161, %163 : vector<4x512xf32>
    %c8_92 = arith.constant 8 : index
    %c0_93 = arith.constant 0 : index
    %165 = vector.load %arg15[%c8_92, %c0_93] : memref<144x512xf32, #tpu.memory_space<vmem>>, vector<4x512xf32>
    tpu.vector_store %arg15[%c8_92, %c0_93], %164 {strides = array<i32>} : memref<144x512xf32, #tpu.memory_space<vmem>>, vector<4x512xf32>,
    %c4_i32 = arith.constant 4 : i32
    %166 = tpu.dynamic_rotate %150 by %c4_i32 dim 1 : vector<4x512xf32>, i32 -> vector<4x512xf32>
    %c21 = arith.constant 21 : index
    %c0_94 = arith.constant 0 : index
    %167 = vector.load %arg1[%c21, %c0_94] : memref<27x512xf32, #tpu.memory_space<vmem>>, vector<1x512xf32>
    %168 = vector.broadcast %167 : vector<1x512xf32> to vector<4x512xf32>
    %169 = arith.mulf %166, %168 : vector<4x512xf32>
    %c12_95 = arith.constant 12 : index
    %c0_96 = arith.constant 0 : index
    %170 = vector.load %arg15[%c12_95, %c0_96] : memref<144x512xf32, #tpu.memory_space<vmem>>, vector<4x512xf32>
    tpu.vector_store %arg15[%c12_95, %c0_96], %169 {strides = array<i32>} : memref<144x512xf32, #tpu.memory_space<vmem>>, vector<4x512xf32>,
    %c22 = arith.constant 22 : index
    %c0_97 = arith.constant 0 : index
    %171 = vector.load %arg1[%c22, %c0_97] : memref<27x512xf32, #tpu.memory_space<vmem>>, vector<1x512xf32>
    %172 = vector.broadcast %171 : vector<1x512xf32> to vector<4x512xf32>
    %173 = arith.mulf %150, %172 : vector<4x512xf32>
    %c16_98 = arith.constant 16 : index
    %c0_99 = arith.constant 0 : index
    %174 = vector.load %arg15[%c16_98, %c0_99] : memref<144x512xf32, #tpu.memory_space<vmem>>, vector<4x512xf32>
    tpu.vector_store %arg15[%c16_98, %c0_99], %173 {strides = array<i32>} : memref<144x512xf32, #tpu.memory_space<vmem>>, vector<4x512xf32>,
    %c508_i32 = arith.constant 508 : i32
    %175 = tpu.dynamic_rotate %150 by %c508_i32 dim 1 : vector<4x512xf32>, i32 -> vector<4x512xf32>
    %c23 = arith.constant 23 : index
    %c0_100 = arith.constant 0 : index
    %176 = vector.load %arg1[%c23, %c0_100] : memref<27x512xf32, #tpu.memory_space<vmem>>, vector<1x512xf32>
    %177 = vector.broadcast %176 : vector<1x512xf32> to vector<4x512xf32>
    %178 = arith.mulf %175, %177 : vector<4x512xf32>
    %c20_101 = arith.constant 20 : index
    %c0_102 = arith.constant 0 : index
    %179 = vector.load %arg15[%c20_101, %c0_102] : memref<144x512xf32, #tpu.memory_space<vmem>>, vector<4x512xf32>
    tpu.vector_store %arg15[%c20_101, %c0_102], %178 {strides = array<i32>} : memref<144x512xf32, #tpu.memory_space<vmem>>, vector<4x512xf32>,
    %c452_i32 = arith.constant 452 : i32
    %180 = tpu.dynamic_rotate %150 by %c452_i32 dim 1 : vector<4x512xf32>, i32 -> vector<4x512xf32>
    %c24_103 = arith.constant 24 : index
    %c0_104 = arith.constant 0 : index
    %181 = vector.load %arg1[%c24_103, %c0_104] : memref<27x512xf32, #tpu.memory_space<vmem>>, vector<1x512xf32>
    %182 = vector.broadcast %181 : vector<1x512xf32> to vector<4x512xf32>
    %183 = arith.mulf %180, %182 : vector<4x512xf32>
    %c24_105 = arith.constant 24 : index
    %c0_106 = arith.constant 0 : index
    %184 = vector.load %arg15[%c24_105, %c0_106] : memref<144x512xf32, #tpu.memory_space<vmem>>, vector<4x512xf32>
    tpu.vector_store %arg15[%c24_105, %c0_106], %183 {strides = array<i32>} : memref<144x512xf32, #tpu.memory_space<vmem>>, vector<4x512xf32>,
    %c448_i32 = arith.constant 448 : i32
    %185 = tpu.dynamic_rotate %150 by %c448_i32 dim 1 : vector<4x512xf32>, i32 -> vector<4x512xf32>
    %c25 = arith.constant 25 : index
    %c0_107 = arith.constant 0 : index
    %186 = vector.load %arg1[%c25, %c0_107] : memref<27x512xf32, #tpu.memory_space<vmem>>, vector<1x512xf32>
    %187 = vector.broadcast %186 : vector<1x512xf32> to vector<4x512xf32>
    %188 = arith.mulf %185, %187 : vector<4x512xf32>
    %c28_108 = arith.constant 28 : index
    %c0_109 = arith.constant 0 : index
    %189 = vector.load %arg15[%c28_108, %c0_109] : memref<144x512xf32, #tpu.memory_space<vmem>>, vector<4x512xf32>
    tpu.vector_store %arg15[%c28_108, %c0_109], %188 {strides = array<i32>} : memref<144x512xf32, #tpu.memory_space<vmem>>, vector<4x512xf32>,
    %c444_i32 = arith.constant 444 : i32
    %190 = tpu.dynamic_rotate %150 by %c444_i32 dim 1 : vector<4x512xf32>, i32 -> vector<4x512xf32>
    %c26 = arith.constant 26 : index
    %c0_110 = arith.constant 0 : index
    %191 = vector.load %arg1[%c26, %c0_110] : memref<27x512xf32, #tpu.memory_space<vmem>>, vector<1x512xf32>
    %192 = vector.broadcast %191 : vector<1x512xf32> to vector<4x512xf32>
    %193 = arith.mulf %190, %192 : vector<4x512xf32>
    %c32_111 = arith.constant 32 : index
    %c0_112 = arith.constant 0 : index
    %194 = vector.load %arg15[%c32_111, %c0_112] : memref<144x512xf32, #tpu.memory_space<vmem>>, vector<4x512xf32>
    tpu.vector_store %arg15[%c32_111, %c0_112], %193 {strides = array<i32>} : memref<144x512xf32, #tpu.memory_space<vmem>>, vector<4x512xf32>,
    %c0_113 = arith.constant 0 : index
    %c0_114 = arith.constant 0 : index
    %195 = vector.load %arg15[%c0_113, %c0_114] : memref<144x512xf32, #tpu.memory_space<vmem>>, vector<36x512xf32>
    %196 = arith.truncf %195 : vector<36x512xf32> to vector<36x512xbf16>
    %c0_115 = arith.constant 0 : index
    %c0_116 = arith.constant 0 : index
    %197 = vector.load %arg7[%c0_115, %c0_116] : memref<4x36xbf16, #tpu.memory_space<vmem>>, vector<4x36xbf16>
    %cst_117 = arith.constant dense<0.000000e+00> : vector<4x512xf32>
    %198 = tpu.matmul %197, %196, %cst_117 {dimension_numbers = #tpu.dot_dimension_numbers<[1], [0], [0], [1], [0, 0, 1, 1], [], []>} : vector<4x36xbf16>, vector<36x512xbf16>, vector<4x512xf32> -> vector<4x512xf32>
    %199 = arith.addf %198, %127 : vector<4x512xf32>
    %cst_118 = arith.constant dense<0.000000e+00> : vector<4xf32>
    %200 = vector.multi_reduction <add>, %199, %cst_118 [1] : vector<4x512xf32> to vector<4xf32>
    %201 = vector.shape_cast %200 : vector<4xf32> to vector<4x1xf32>
    %cst_119 = arith.constant 0.001953125 : f32
    %202 = vector.broadcast %cst_119 : f32 to vector<4x1xf32>
    %203 = arith.mulf %201, %202 : vector<4x1xf32>
    %204 = vector.broadcast %203 : vector<4x1xf32> to vector<4x512xf32>
    %205 = arith.subf %199, %204 : vector<4x512xf32>
    %206 = arith.mulf %205, %205 : vector<4x512xf32>
    %cst_120 = arith.constant dense<0.000000e+00> : vector<4xf32>
    %207 = vector.multi_reduction <add>, %206, %cst_120 [1] : vector<4x512xf32> to vector<4xf32>
    %208 = vector.shape_cast %207 : vector<4xf32> to vector<4x1xf32>
    %cst_121 = arith.constant 0.001953125 : f32
    %209 = vector.broadcast %cst_121 : f32 to vector<4x1xf32>
    %210 = arith.mulf %208, %209 : vector<4x1xf32>
    %c0_122 = arith.constant 0 : index
    %c0_123 = arith.constant 0 : index
    %211 = vector.load %arg12[%c0_122, %c0_123] : memref<4x1xf32, #tpu.memory_space<vmem>>, vector<4x1xf32>
    %cst_124 = arith.constant 9.99999974E-6 : f32
    %212 = vector.broadcast %cst_124 : f32 to vector<4x1xf32>
    %213 = arith.addf %210, %212 : vector<4x1xf32>
    %214 = math.rsqrt %213 : vector<4x1xf32>
    %215 = arith.mulf %211, %214 : vector<4x1xf32>
    %216 = vector.broadcast %215 : vector<4x1xf32> to vector<4x512xf32>
    %217 = arith.mulf %205, %216 : vector<4x512xf32>
    %c0_125 = arith.constant 0 : index
    %c0_126 = arith.constant 0 : index
    %218 = vector.load %arg13[%c0_125, %c0_126] : memref<4x1xf32, #tpu.memory_space<vmem>>, vector<4x1xf32>
    %219 = vector.broadcast %218 : vector<4x1xf32> to vector<4x512xf32>
    %220 = arith.addf %217, %219 : vector<4x512xf32>
    %cst_127 = arith.constant 0.000000e+00 : f32
    %221 = vector.broadcast %cst_127 : f32 to vector<4x512xf32>
    %222 = arith.maximumf %220, %221 : vector<4x512xf32>
    %c0_128 = arith.constant 0 : index
    %c0_129 = arith.constant 0 : index
    %223 = vector.load %arg14[%c0_128, %c0_129] : memref<12x512xf32, #tpu.memory_space<vmem>>, vector<4x512xf32>
    tpu.vector_store %arg14[%c0_128, %c0_129], %75 {strides = array<i32>} : memref<12x512xf32, #tpu.memory_space<vmem>>, vector<4x512xf32>,
    %c4_130 = arith.constant 4 : index
    %c0_131 = arith.constant 0 : index
    %224 = vector.load %arg14[%c4_130, %c0_131] : memref<12x512xf32, #tpu.memory_space<vmem>>, vector<4x512xf32>
    tpu.vector_store %arg14[%c4_130, %c0_131], %150 {strides = array<i32>} : memref<12x512xf32, #tpu.memory_space<vmem>>, vector<4x512xf32>,
    %c8_132 = arith.constant 8 : index
    %c0_133 = arith.constant 0 : index
    %225 = vector.load %arg14[%c8_132, %c0_133] : memref<12x512xf32, #tpu.memory_space<vmem>>, vector<4x512xf32>
    tpu.vector_store %arg14[%c8_132, %c0_133], %222 {strides = array<i32>} : memref<12x512xf32, #tpu.memory_space<vmem>>, vector<4x512xf32>,
    return
  }
}

</mosaic_0001>

<bundles_post_ra>
// kernel: d3_forward.3
= control target key start
LH: loop header
LB: loop body
LE: loop exit
PB: predicated region body
PF: predicated region fallthrough
CT: control target
= control target key end

     0   :  { %s2471_s17 = smov 17   ;;  %s2472_s30 = smov 16   ;;  %v72_v8 = vlaneseq  ;;  %vm727_vm1 = vcmask 130048   ;;  %vm910_vm9 = vcmask 1043456   ;;  %s3608_s0 = inlined_call_operand.vmem [shape: f32[16,512], index: 0, kind: input, shape index: {}]   ;;  %s3609_s1 = inlined_call_operand.vmem [shape: f32[27,512], index: 1, kind: input, shape index: {}]   ;;  %s3610_s2 = inlined_call_operand.vmem [shape: bf16[4,144], index: 2, kind: input, shape index: {}]   ;;  %s3611_s9 = inlined_call_operand.vmem [shape: f32[4,1], index: 9, kind: input, shape index: {}]   ;;  %s3612_s8 = inlined_call_operand.vmem [shape: f32[4,1], index: 8, kind: input, shape index: {}]   ;;  %s3613_s14 = inlined_call_operand.vmem [shape: f32[12,512], index: 14, kind: output, shape index: {}]   ;;  %s3614_s3 = inlined_call_operand.vmem [shape: bf16[4,144], index: 3, kind: input, shape index: {}]   ;;  %s3615_s6 = inlined_call_operand.vmem [shape: bf16[4,36], index: 6, kind: input, shape index: {}]   ;;  %s3616_s5 = inlined_call_operand.vmem [shape: bf16[4,36], index: 5, kind: input, shape index: {}]   ;;  %s3617_s11 = inlined_call_operand.vmem [shape: f32[4,1], index: 11, kind: input, shape index: {}]   ;;  %s3618_s10 = inlined_call_operand.vmem [shape: f32[4,1], index: 10, kind: input, shape index: {}]   ;;  %s3619_s4 = inlined_call_operand.vmem [shape: bf16[4,144], index: 4, kind: input, shape index: {}]   ;;  %s3620_s7 = inlined_call_operand.vmem [shape: bf16[4,36], index: 7, kind: input, shape index: {}]   ;;  %s3621_s13 = inlined_call_operand.vmem [shape: f32[4,1], index: 13, kind: input, shape index: {}]   ;;  %s3622_s12 = inlined_call_operand.vmem [shape: f32[4,1], index: 12, kind: input, shape index: {}]  }
   0x1   :  { %v2571_v0 = vld [vmem:[%s3608_s0 + $0x8] sm:$0xff]  ;;  %v2576_v1 = vld [vmem:[%s3608_s0] sm:$0xff]  ;;  %v2595_v4 = vld [vmem:[%s3608_s0 + $0x38] sm:$0xff]  ;;  %s2474_s15 = smov 1   ;;  %s2475_s18 = smov 127  }
   0x2   :  { %60 = vrot.lane.b32.xlu1 %v2571_v0, %s2471_s17  ;;  %56 = vrot.lane.b32.xlu0 %v2576_v1, %s2471_s17  ;;  %v2583_v2 = vld [vmem:[%s3608_s0 + $0x28] sm:$0xff]  ;;  %v2588_v3 = vld [vmem:[%s3608_s0 + $0x20] sm:$0xff]  ;;  %v86_v9 = vshrl.u32 %v72_v8, 7  ;;  %s2476_s19 = smov 113   ;;  %s2477_s20 = smov 112   ;;  %v2695_v31 = vand.u32 127, %v72_v8 }
   0x3   :  { %v2600_v5 = vld [vmem:[%s3608_s0 + $0x18] sm:$0xff]  ;;  %v2607_v6 = vld [vmem:[%s3608_s0 + $0x30] sm:$0xff]  ;;  %s2478_s23 = smov 111   ;;  %s2485_s21 = smov 96  }
   0x4   :  { %v2612_v7 = vld [vmem:[%s3608_s0 + $0x10] sm:$0xff]  ;;  %s2473_s0 = smov 15   ;;  %v2634_v10 = vsub.s32 1, %v86_v9  ;;  %v2638_v11 = vsub.s32 0, %v86_v9  ;;  %v2651_v19 = vsub.s32 3, %v86_v9  ;;  %v2655_v21 = vsub.s32 2, %v86_v9 }
   0x5   :  { %v2373_v12 = vld [vmem:[%s3609_s1 + $0x4] ss:$8 sm:$0xf]  ;;  %v83_v32 = vld [vmem:[%s3609_s1] ss:$8 sm:$0xf] }
   0x6   :  { %62 = vrot.lane.b32.xlu1 %v2583_v2, %s2471_s17  ;;  %58 = vrot.lane.b32.xlu0 %v2588_v3, %s2471_s17  ;;  %v323_v13 = vrot.slane %v2373_v12, %v2634_v10  ;;  %v319_v14 = vrot.slane %v2373_v12, %v2638_v11  ;;  %v331_v23 = vrot.slane %v2373_v12, %v2651_v19  ;;  %vm74_vm0 = vcmp.lt.s32.totalorder %v2695_v31, 17  ;;  %v2709_v34 = vld.sshfl [vmem:[%s3610_s2] sm:$0x33 pattern:$0x76325410]  ;;  %s2486_s24 = smov 98  }
   0x7   :  { %v327_v24 = vrot.slane %v2373_v12, %v2655_v21  ;;  %v92_v33 = vrot.slane %v83_v32, %v2634_v10  ;;  %v725_v35 = vcombine.high %v2709_v34, %v2709_v34  ;;  %v88_v44 = vrot.slane %v83_v32, %v2638_v11  ;;  %s2490_s16 = smov 68  }
   0x8   :  { %v337_v15 = vmul.f32 %v323_v13, %v2571_v0  ;;  %v341_v16 = vmul.f32 %v323_v13, %v2583_v2  ;;  %v336_v17 = vmul.f32 %v319_v14, %v2576_v1  ;;  %v340_v18 = vmul.f32 %v319_v14, %v2588_v3 }
   0x9   :  { %v339_v25 = vmul.f32 %v331_v23, %v2600_v5  ;;  %v343_v26 = vmul.f32 %v331_v23, %v2595_v4  ;;  %v338_v27 = vmul.f32 %v327_v24, %v2612_v7  ;;  %v342_v28 = vmul.f32 %v327_v24, %v2607_v6  ;;  %2379 = vmatprep.mubr.msk.bf16.mxu0 %vm727_vm1, %v725_v35 }
   0xa   :  { %70 = vrot.lane.b32.xlu1 %v2595_v4, %s2471_s17  ;;  %68 = vrot.lane.b32.xlu0 %v2600_v5, %s2471_s17  ;;  %v2653_v20 = vpack.c.bf16 %v341_v16, %v337_v15  ;;  %v2657_v22 = vpack.c.bf16 %v340_v18, %v336_v17  ;;  %v96_v50 = vrot.slane %v83_v32, %v2655_v21  ;;  %vm137_vm2 = vcmp.lt.s32.totalorder %v2695_v31, 16 }
   0xb   :  { %v2667_v29 = vpack.c.bf16 %v343_v26, %v339_v25  ;;  %v2671_v30 = vpack.c.bf16 %v342_v28, %v338_v27  ;;  %2380 = vmatprep.mubr.msk.bf16.mxu1 %vm727_vm1, %v725_v35  ;;  %v100_v53 = vrot.slane %v83_v32, %v2651_v19  ;;  %vm201_vm3 = vcmp.lt.s32.totalorder %v2695_v31, 15 }
   0xc   :  { %vm265_vm4 = vcmp.lt.s32.totalorder %v2695_v31, 1  ;;  %vm368_vm5 = vcmp.lt.s32.totalorder %v2695_v31, 127  ;;  %vm432_vm6 = vcmp.lt.s32.totalorder %v2695_v31, 113  ;;  %vm496_vm7 = vcmp.lt.s32.totalorder %v2695_v31, 112 }
   0xd   :  { %vm560_vm8 = vcmp.lt.s32.totalorder %v2695_v31, 111  ;;  %vm1018_vm10 = vcmp.lt.s32.totalorder %v2695_v31, 32  ;;  %vm974_vm11 = vcmp.lt.s32.totalorder %v2695_v31, 34  ;;  %vm1074_vm12 = vcmp.lt.s32.totalorder %v2695_v31, 30 }
   0xe   :  { %66 = vrot.lane.b32.xlu1 %v2607_v6, %s2471_s17  ;;  %64 = vrot.lane.b32.xlu0 %v2612_v7, %s2471_s17  ;;  %vm1118_vm13 = vcmp.lt.s32.totalorder %v2695_v31, 2  ;;  %vm1205_vm14 = vcmp.lt.s32.totalorder %v2695_v31, 126  ;;  %vm1305_vm15 = vcmp.lt.s32.totalorder %v2695_v31, 96  ;;  %s2491_s17 = smov 60  }
  0x12   :  { %123 = vrot.lane.b32.xlu1 %v2588_v3, %s2472_s30  ;;  %121 = vrot.lane.b32.xlu0 %v2576_v1, %s2472_s30 }
  0x16   :  { %127 = vrot.lane.b32.xlu1 %v2583_v2, %s2472_s30  ;;  %125 = vrot.lane.b32.xlu0 %v2571_v0, %s2472_s30 }
  0x1a   :  { %135 = vrot.lane.b32.xlu1 %v2595_v4, %s2472_s30  ;;  %133 = vrot.lane.b32.xlu0 %v2600_v5, %s2472_s30 }
  0x1e   :  { %131 = vrot.lane.b32.xlu1 %v2607_v6, %s2472_s30  ;;  %129 = vrot.lane.b32.xlu0 %v2612_v7, %s2472_s30 }
  0x22   :  { %187 = vrot.lane.b32.xlu1 %v2588_v3, %s2473_s0  ;;  %185 = vrot.lane.b32.xlu0 %v2576_v1, %s2473_s0 }
  0x26   :  { %191 = vrot.lane.b32.xlu1 %v2583_v2, %s2473_s0  ;;  %189 = vrot.lane.b32.xlu0 %v2571_v0, %s2473_s0 }
  0x2a   :  { %199 = vrot.lane.b32.xlu1 %v2595_v4, %s2473_s0  ;;  %197 = vrot.lane.b32.xlu0 %v2600_v5, %s2473_s0 }
  0x2e   :  { %195 = vrot.lane.b32.xlu1 %v2607_v6, %s2473_s0  ;;  %193 = vrot.lane.b32.xlu0 %v2612_v7, %s2473_s0 }
  0x32   :  { %251 = vrot.lane.b32.xlu1 %v2588_v3, %s2474_s15  ;;  %249 = vrot.lane.b32.xlu0 %v2576_v1, %s2474_s15 }
  0x36   :  { %255 = vrot.lane.b32.xlu1 %v2583_v2, %s2474_s15  ;;  %253 = vrot.lane.b32.xlu0 %v2571_v0, %s2474_s15 }
  0x3a   :  { %263 = vrot.lane.b32.xlu1 %v2595_v4, %s2474_s15  ;;  %261 = vrot.lane.b32.xlu0 %v2600_v5, %s2474_s15 }
  0x3e   :  { %259 = vrot.lane.b32.xlu1 %v2607_v6, %s2474_s15  ;;  %257 = vrot.lane.b32.xlu0 %v2612_v7, %s2474_s15  ;;  %s2489_s15 = smov 4  }
  0x42   :  { %358 = vrot.lane.b32.xlu1 %v2583_v2, %s2475_s18  ;;  %356 = vrot.lane.b32.xlu0 %v2571_v0, %s2475_s18 }
  0x46   :  { %362 = vrot.lane.b32.xlu1 %v2607_v6, %s2475_s18  ;;  %360 = vrot.lane.b32.xlu0 %v2612_v7, %s2475_s18 }
  0x4a   :  { %354 = vrot.lane.b32.xlu1 %v2588_v3, %s2475_s18  ;;  %352 = vrot.lane.b32.xlu0 %v2576_v1, %s2475_s18 }
  0x4e   :  { %366 = vrot.lane.b32.xlu1 %v2595_v4, %s2475_s18  ;;  %364 = vrot.lane.b32.xlu0 %v2600_v5, %s2475_s18  ;;  %s2482_s18 = smov 30  }
  0x52   :  { %422 = vrot.lane.b32.xlu1 %v2583_v2, %s2476_s19  ;;  %420 = vrot.lane.b32.xlu0 %v2571_v0, %s2476_s19 }
  0x56   :  { %426 = vrot.lane.b32.xlu1 %v2607_v6, %s2476_s19  ;;  %424 = vrot.lane.b32.xlu0 %v2612_v7, %s2476_s19 }
  0x5a   :  { %418 = vrot.lane.b32.xlu1 %v2588_v3, %s2476_s19  ;;  %416 = vrot.lane.b32.xlu0 %v2576_v1, %s2476_s19 }
  0x5e   :  { %430 = vrot.lane.b32.xlu1 %v2595_v4, %s2476_s19  ;;  %428 = vrot.lane.b32.xlu0 %v2600_v5, %s2476_s19  ;;  %s2483_s19 = smov 2  }
  0x62   :  { %486 = vrot.lane.b32.xlu1 %v2583_v2, %s2477_s20  ;;  %484 = vrot.lane.b32.xlu0 %v2571_v0, %s2477_s20 }
  0x66   :  { %490 = vrot.lane.b32.xlu1 %v2607_v6, %s2477_s20  ;;  %488 = vrot.lane.b32.xlu0 %v2612_v7, %s2477_s20 }
  0x6a   :  { %482 = vrot.lane.b32.xlu1 %v2588_v3, %s2477_s20  ;;  %480 = vrot.lane.b32.xlu0 %v2576_v1, %s2477_s20 }
  0x6e   :  { %494 = vrot.lane.b32.xlu1 %v2595_v4, %s2477_s20  ;;  %492 = vrot.lane.b32.xlu0 %v2600_v5, %s2477_s20  ;;  %s2484_s20 = smov 126  }
  0x72   :  { %550 = vrot.lane.b32.xlu1 %v2583_v2, %s2478_s23  ;;  %548 = vrot.lane.b32.xlu0 %v2571_v0, %s2478_s23 }
  0x74   :  { %v61_v36 = vpop.permute.xlu1 %60  ;;  %v57_v37 = vpop.permute.xlu0 %56 }
  0x75   :  { %v79_v38 = vsel %vm74_vm0, %v57_v37, %v61_v36 }
  0x76   :  { %v106_v39 = vmul.f32 %v92_v33, %v79_v38  ;;  %554 = vrot.lane.b32.xlu1 %v2607_v6, %s2478_s23  ;;  %552 = vrot.lane.b32.xlu0 %v2612_v7, %s2478_s23 }
  0x78   :  { %114 = vst [vmem:[#allocation2 + $0x8] sm:$0xff] %v106_v39  ;;  %v63_v40 = vpop.permute.xlu1 %62  ;;  %v59_v41 = vpop.permute.xlu0 %58 }
  0x79   :  { %v80_v42 = vsel %vm74_vm0, %v59_v41, %v63_v40 }
  0x7a   :  { %v110_v43 = vmul.f32 %v92_v33, %v80_v42  ;;  %546 = vrot.lane.b32.xlu1 %v2588_v3, %s2478_s23  ;;  %544 = vrot.lane.b32.xlu0 %v2576_v1, %s2478_s23  ;;  %v2370_v1 = vld [vmem:[%s3609_s1 + $0x1] ss:$8 sm:$0xf] }
  0x7b   :  { %v156_v6 = vrot.slane %v2370_v1, %v2634_v10  ;;  %v152_v15 = vrot.slane %v2370_v1, %v2638_v11  ;;  %v160_v27 = vrot.slane %v2370_v1, %v2655_v21  ;;  %v164_v28 = vrot.slane %v2370_v1, %v2651_v19 }
  0x7c   :  { %118 = vst [vmem:[#allocation2 + $0x28] sm:$0xff] %v110_v43  ;;  %v71_v45 = vpop.permute.xlu1 %70  ;;  %v69_v46 = vpop.permute.xlu0 %68  ;;  %v2728_v47 = vpack.c.bf16 %v110_v43, %v106_v39 }
  0x7d   :  { %v82_v48 = vsel %vm74_vm0, %v71_v45, %v59_v41  ;;  %v81_v49 = vsel %vm74_vm0, %v69_v46, %v57_v37 }
  0x7e   :  { %v109_v51 = vmul.f32 %v88_v44, %v82_v48  ;;  %v105_v52 = vmul.f32 %v88_v44, %v81_v49  ;;  %558 = vrot.lane.b32.xlu1 %v2595_v4, %s2478_s23  ;;  %556 = vrot.lane.b32.xlu0 %v2600_v5, %s2478_s23  ;;  %v2371_v44 = vld [vmem:[%s3609_s1 + $0x2] ss:$8 sm:$0xf] }
  0x7f   :  { %731 = vmatprep.subr.bf16.mxu0 %v2728_v47 }
  0x80   :  { %117 = vst [vmem:[#allocation2 + $0x20] sm:$0xff] %v109_v51  ;;  %113 = vst [vmem:[#allocation2] sm:$0xff] %v105_v52  ;;  %v67_v54 = vpop.permute.xlu1 %66  ;;  %v65_v55 = vpop.permute.xlu0 %64  ;;  %v2741_v56 = vpack.c.bf16 %v109_v51, %v105_v52 }
  0x81   :  { %v76_v57 = vsel %vm74_vm0, %v67_v54, %v71_v45  ;;  %v78_v58 = vsel %vm74_vm0, %v63_v40, %v67_v54  ;;  %v75_v59 = vsel %vm74_vm0, %v65_v55, %v69_v46  ;;  %v77_v60 = vsel %vm74_vm0, %v61_v36, %v65_v55 }
  0x82   :  { %v111_v61 = vmul.f32 %v96_v50, %v78_v58  ;;  %v112_v62 = vmul.f32 %v100_v53, %v76_v57  ;;  %v107_v63 = vmul.f32 %v96_v50, %v77_v60  ;;  %v108_v0 = vmul.f32 %v100_v53, %v75_v59  ;;  %732 = vmatpush1.bf16.msra.mxu0 %v2741_v56 }
  0x83   :  { %v220_v50 = vrot.slane %v2371_v44, %v2634_v10  ;;  %v216_v58 = vrot.slane %v2371_v44, %v2638_v11  ;;  %vm1261_vm0 = vcmp.lt.s32.totalorder %v2695_v31, 98 }
  0x84   :  { %119 = vst [vmem:[#allocation2 + $0x30] sm:$0xff] %v111_v61  ;;  %120 = vst [vmem:[#allocation2 + $0x38] sm:$0xff] %v112_v62  ;;  %v124_v2 = vpop.permute.xlu1 %123  ;;  %v122_v3 = vpop.permute.xlu0 %121  ;;  %v2755_v4 = vpack.c.bf16 %v112_v62, %v108_v0  ;;  %v2757_v5 = vpack.c.bf16 %v111_v61, %v107_v63 }
  0x85   :  { %115 = vst [vmem:[#allocation2 + $0x10] sm:$0xff] %v107_v63  ;;  %116 = vst [vmem:[#allocation2 + $0x18] sm:$0xff] %v108_v0 }
  0x86   :  { %772 = vmatprep.subr.bf16.mxu1 %v2755_v4 }
  0x87   :  { %773 = vmatpush1.bf16.msra.mxu1 %v2757_v5 }
  0x88   :  { %v128_v7 = vpop.permute.xlu1 %127  ;;  %v126_v8 = vpop.permute.xlu0 %125 }
  0x89   :  { %v143_v9 = vsel %vm137_vm2, %v124_v2, %v128_v7  ;;  %v142_v12 = vsel %vm137_vm2, %v122_v3, %v126_v8 }
  0x8a   :  { %v174_v13 = vmul.f32 %v156_v6, %v143_v9  ;;  %v170_v14 = vmul.f32 %v156_v6, %v142_v12 }
  0x8c   :  { %182 = vst [vmem:[#allocation2 + $0x68] sm:$0xff] %v174_v13  ;;  %178 = vst [vmem:[#allocation2 + $0x48] sm:$0xff] %v170_v14  ;;  %v136_v16 = vpop.permute.xlu1 %135  ;;  %v134_v17 = vpop.permute.xlu0 %133  ;;  %v2768_v18 = vpack.c.bf16 %v174_v13, %v170_v14 }
  0x8d   :  { %v145_v23 = vsel %vm137_vm2, %v136_v16, %v124_v2  ;;  %v144_v24 = vsel %vm137_vm2, %v134_v17, %v122_v3  ;;  %v224_v2 = vrot.slane %v2371_v44, %v2655_v21  ;;  %v228_v3 = vrot.slane %v2371_v44, %v2651_v19 }
  0x8e   :  { %v173_v25 = vmul.f32 %v152_v15, %v145_v23  ;;  %v169_v26 = vmul.f32 %v152_v15, %v144_v24  ;;  %733 = vmatprep.subr.bf16.mxu0 %v2768_v18  ;;  %v2372_v24 = vld [vmem:[%s3609_s1 + $0x3] ss:$8 sm:$0xf] }
  0x90   :  { %181 = vst [vmem:[#allocation2 + $0x60] sm:$0xff] %v173_v25  ;;  %177 = vst [vmem:[#allocation2 + $0x40] sm:$0xff] %v169_v26  ;;  %v132_v32 = vpop.permute.xlu1 %131  ;;  %v130_v33 = vpop.permute.xlu0 %129  ;;  %v2777_v35 = vpack.c.bf16 %v173_v25, %v169_v26 }
  0x91   :  { %v139_v36 = vsel %vm137_vm2, %v132_v32, %v136_v16  ;;  %v141_v37 = vsel %vm137_vm2, %v128_v7, %v132_v32  ;;  %v138_v38 = vsel %vm137_vm2, %v130_v33, %v134_v17  ;;  %v140_v39 = vsel %vm137_vm2, %v126_v8, %v130_v33 }
  0x92   :  { %v175_v40 = vmul.f32 %v160_v27, %v141_v37  ;;  %v176_v41 = vmul.f32 %v164_v28, %v139_v36  ;;  %v171_v42 = vmul.f32 %v160_v27, %v140_v39  ;;  %v172_v43 = vmul.f32 %v164_v28, %v138_v38  ;;  %734 = vmatpush1.bf16.msra.mxu0 %v2777_v35 }
  0x93   :  { %v284_v32 = vrot.slane %v2372_v24, %v2634_v10  ;;  %vm1361_vm2 = vcmp.lt.s32.totalorder %v2695_v31, 94 }
  0x94   :  { %183 = vst [vmem:[#allocation2 + $0x70] sm:$0xff] %v175_v40  ;;  %184 = vst [vmem:[#allocation2 + $0x78] sm:$0xff] %v176_v41  ;;  %v188_v45 = vpop.permute.xlu1 %187  ;;  %v186_v46 = vpop.permute.xlu0 %185  ;;  %v2791_v48 = vpack.c.bf16 %v176_v41, %v172_v43  ;;  %v2793_v49 = vpack.c.bf16 %v175_v40, %v171_v42  ;;  %v280_v41 = vrot.slane %v2372_v24, %v2638_v11 }
  0x95   :  { %179 = vst [vmem:[#allocation2 + $0x50] sm:$0xff] %v171_v42  ;;  %180 = vst [vmem:[#allocation2 + $0x58] sm:$0xff] %v172_v43 }
  0x96   :  { %774 = vmatprep.subr.bf16.mxu1 %v2791_v48 }
  0x97   :  { %775 = vmatpush1.bf16.msra.mxu1 %v2793_v49 }
  0x98   :  { %v192_v51 = vpop.permute.xlu1 %191  ;;  %v190_v52 = vpop.permute.xlu0 %189 }
  0x99   :  { %v207_v53 = vsel %vm201_vm3, %v188_v45, %v192_v51  ;;  %v206_v54 = vsel %vm201_vm3, %v186_v46, %v190_v52 }
  0x9a   :  { %v238_v55 = vmul.f32 %v220_v50, %v207_v53  ;;  %v234_v57 = vmul.f32 %v220_v50, %v206_v54  ;;  %v292_v53 = vrot.slane %v2372_v24, %v2651_v19 }
  0x9c   :  { %242 = vst [vmem:[#allocation2 + $0x88] sm:$0xff] %v234_v57  ;;  %v200_v59 = vpop.permute.xlu1 %199  ;;  %v198_v60 = vpop.permute.xlu0 %197  ;;  %v2804_v61 = vpack.c.bf16 %v238_v55, %v234_v57 }
  0x9d   :  { %v209_v62 = vsel %vm201_vm3, %v200_v59, %v188_v45  ;;  %v208_v63 = vsel %vm201_vm3, %v198_v60, %v186_v46 }
  0x9e   :  { %v237_v0 = vmul.f32 %v216_v58, %v209_v62  ;;  %v233_v1 = vmul.f32 %v216_v58, %v208_v63  ;;  %735 = vmatprep.subr.bf16.mxu0 %v2804_v61 }
  0xa0   :  { %241 = vst [vmem:[#allocation2 + $0x80] sm:$0xff] %v233_v1  ;;  %v196_v6 = vpop.permute.xlu1 %195  ;;  %v194_v7 = vpop.permute.xlu0 %193  ;;  %v2813_v8 = vpack.c.bf16 %v237_v0, %v233_v1 }
  0xa1   :  { %v203_v9 = vsel %vm201_vm3, %v196_v6, %v200_v59  ;;  %v205_v12 = vsel %vm201_vm3, %v192_v51, %v196_v6  ;;  %v202_v13 = vsel %vm201_vm3, %v194_v7, %v198_v60  ;;  %v204_v14 = vsel %vm201_vm3, %v190_v52, %v194_v7 }
  0xa2   :  { %v239_v15 = vmul.f32 %v224_v2, %v205_v12  ;;  %v240_v16 = vmul.f32 %v228_v3, %v203_v9  ;;  %v235_v17 = vmul.f32 %v224_v2, %v204_v14  ;;  %v236_v23 = vmul.f32 %v228_v3, %v202_v13  ;;  %736 = vmatpush1.bf16.msra.mxu0 %v2813_v8  ;;  %v2374_v3 = vld [vmem:[%s3609_s1 + $0x5] ss:$8 sm:$0xf] }
  0xa3   :  { %v288_v52 = vrot.slane %v2372_v24, %v2655_v21  ;;  %v387_v13 = vrot.slane %v2374_v3, %v2634_v10  ;;  %vm1435_vm3 = vcmask 1041408  }
  0xa4   :  { %243 = vst [vmem:[#allocation2 + $0x90] sm:$0xff] %v235_v17  ;;  %244 = vst [vmem:[#allocation2 + $0x98] sm:$0xff] %v236_v23  ;;  %v252_v25 = vpop.permute.xlu1 %251  ;;  %v250_v26 = vpop.permute.xlu0 %249  ;;  %v2827_v27 = vpack.c.bf16 %v240_v16, %v236_v23  ;;  %v2829_v28 = vpack.c.bf16 %v239_v15, %v235_v17 }
  0xa6   :  { %776 = vmatprep.subr.bf16.mxu1 %v2827_v27 }
  0xa7   :  { %777 = vmatpush1.bf16.msra.mxu1 %v2829_v28 }
  0xa8   :  { %v256_v33 = vpop.permute.xlu1 %255  ;;  %v254_v36 = vpop.permute.xlu0 %253 }
  0xa9   :  { %v271_v37 = vsel %vm265_vm4, %v252_v25, %v256_v33  ;;  %v270_v38 = vsel %vm265_vm4, %v250_v26, %v254_v36 }
  0xaa   :  { %v302_v39 = vmul.f32 %v284_v32, %v271_v37  ;;  %v298_v40 = vmul.f32 %v284_v32, %v270_v38 }
  0xac   :  { %v264_v42 = vpop.permute.xlu1 %263  ;;  %v262_v43 = vpop.permute.xlu0 %261  ;;  %v2840_v44 = vpack.c.bf16 %v302_v39, %v298_v40  ;;  %v391_v40 = vrot.slane %v2374_v3, %v2655_v21 }
  0xad   :  { %v273_v45 = vsel %vm265_vm4, %v264_v42, %v252_v25  ;;  %v272_v46 = vsel %vm265_vm4, %v262_v43, %v250_v26  ;;  %v383_v25 = vrot.slane %v2374_v3, %v2638_v11 }
  0xae   :  { %v301_v50 = vmul.f32 %v280_v41, %v273_v45  ;;  %v297_v51 = vmul.f32 %v280_v41, %v272_v46  ;;  %737 = vmatprep.subr.bf16.mxu0 %v2840_v44  ;;  %v395_v41 = vrot.slane %v2374_v3, %v2651_v19 }
  0xb0   :  { %v260_v54 = vpop.permute.xlu1 %259  ;;  %v258_v55 = vpop.permute.xlu0 %257  ;;  %v2849_v57 = vpack.c.bf16 %v301_v50, %v297_v51 }
  0xb1   :  { %v267_v58 = vsel %vm265_vm4, %v260_v54, %v264_v42  ;;  %v269_v59 = vsel %vm265_vm4, %v256_v33, %v260_v54  ;;  %v266_v60 = vsel %vm265_vm4, %v258_v55, %v262_v43  ;;  %v268_v62 = vsel %vm265_vm4, %v254_v36, %v258_v55 }
  0xb2   :  { %v303_v63 = vmul.f32 %v288_v52, %v269_v59  ;;  %v304_v0 = vmul.f32 %v292_v53, %v267_v58  ;;  %v299_v1 = vmul.f32 %v288_v52, %v268_v62  ;;  %v300_v2 = vmul.f32 %v292_v53, %v266_v60  ;;  %738 = vmatpush1.bf16.msra.mxu0 %v2849_v57  ;;  %v2375_v59 = vld [vmem:[%s3609_s1 + $0x6] ss:$8 sm:$0xf] }
  0xb3   :  { %739 = vmatprep.subr.bf16.mxu0 %v2653_v20  ;;  %vm1431_vm4 = vcmask 293888  }
  0xb4   :  { %v359_v6 = vpop.permute.xlu1 %358  ;;  %v357_v7 = vpop.permute.xlu0 %356  ;;  %v2864_v9 = vpack.c.bf16 %v304_v0, %v300_v2  ;;  %v2866_v12 = vpack.c.bf16 %v303_v63, %v299_v1  ;;  %v451_v1 = vrot.slane %v2375_v59, %v2634_v10 }
  0xb6   :  { %778 = vmatprep.subr.bf16.mxu1 %v2864_v9  ;;  %740 = vmatpush1.bf16.msra.mxu0 %v2657_v22 }
  0xb7   :  { %779 = vmatpush1.bf16.msra.mxu1 %v2866_v12 }
  0xb8   :  { %v363_v14 = vpop.permute.xlu1 %362  ;;  %v361_v15 = vpop.permute.xlu0 %360  ;;  %780 = vmatprep.subr.bf16.mxu1 %v2667_v29 }
  0xb9   :  { %v372_v16 = vsel %vm368_vm5, %v359_v6, %v363_v14  ;;  %v371_v17 = vsel %vm368_vm5, %v357_v7, %v361_v15 }
  0xba   :  { %v405_v23 = vmul.f32 %v387_v13, %v372_v16  ;;  %v401_v24 = vmul.f32 %v387_v13, %v371_v17 }
  0xbb   :  { %781 = vmatpush1.bf16.msra.mxu1 %v2671_v30 }
  0xbc   :  { %v355_v26 = vpop.permute.xlu1 %354  ;;  %v353_v32 = vpop.permute.xlu0 %352  ;;  %v2880_v33 = vpack.c.bf16 %v405_v23, %v401_v24 }
  0xbd   :  { %v374_v36 = vsel %vm368_vm5, %v355_v26, %v359_v6  ;;  %v373_v37 = vsel %vm368_vm5, %v353_v32, %v357_v7 }
  0xbe   :  { %v404_v38 = vmul.f32 %v383_v25, %v374_v36  ;;  %v400_v39 = vmul.f32 %v383_v25, %v373_v37  ;;  %741 = vmatprep.subr.bf16.mxu0 %v2880_v33  ;;  %v455_v36 = vrot.slane %v2375_v59, %v2655_v21  ;;  %v459_v37 = vrot.slane %v2375_v59, %v2651_v19 }
  0xc0   :  { %v367_v42 = vpop.permute.xlu1 %366  ;;  %v365_v43 = vpop.permute.xlu0 %364  ;;  %v2889_v45 = vpack.c.bf16 %v404_v38, %v400_v39 }
  0xc1   :  { %v370_v46 = vsel %vm368_vm5, %v363_v14, %v367_v42  ;;  %v376_v50 = vsel %vm368_vm5, %v367_v42, %v355_v26  ;;  %v369_v51 = vsel %vm368_vm5, %v361_v15, %v365_v43  ;;  %v375_v52 = vsel %vm368_vm5, %v365_v43, %v353_v32 }
  0xc2   :  { %v406_v53 = vmul.f32 %v391_v40, %v370_v46  ;;  %v407_v54 = vmul.f32 %v395_v41, %v376_v50  ;;  %v402_v55 = vmul.f32 %v391_v40, %v369_v51  ;;  %v403_v58 = vmul.f32 %v395_v41, %v375_v52  ;;  %742 = vmatpush1.bf16.msra.mxu0 %v2889_v45 }
  0xc3   :  { %v447_v15 = vrot.slane %v2375_v59, %v2638_v11  ;;  %vm1917_vm5 = vcmp.lt.s32.totalorder %v2695_v31, 4 }
  0xc4   :  { %v423_v60 = vpop.permute.xlu1 %422  ;;  %v421_v62 = vpop.permute.xlu0 %420  ;;  %v2903_v63 = vpack.c.bf16 %v407_v54, %v403_v58  ;;  %v2905_v0 = vpack.c.bf16 %v406_v53, %v402_v55  ;;  %v2376_v54 = vld [vmem:[%s3609_s1 + $0x7] ss:$8 sm:$0xf] }
  0xc6   :  { %782 = vmatprep.subr.bf16.mxu1 %v2903_v63 }
  0xc7   :  { %783 = vmatpush1.bf16.msra.mxu1 %v2905_v0 }
  0xc8   :  { %v427_v2 = vpop.permute.xlu1 %426  ;;  %v425_v3 = vpop.permute.xlu0 %424 }
  0xc9   :  { %v436_v6 = vsel %vm432_vm6, %v423_v60, %v427_v2  ;;  %v435_v7 = vsel %vm432_vm6, %v421_v62, %v425_v3 }
  0xca   :  { %v469_v13 = vmul.f32 %v451_v1, %v436_v6  ;;  %v465_v14 = vmul.f32 %v451_v1, %v435_v7 }
  0xcc   :  { %v419_v16 = vpop.permute.xlu1 %418  ;;  %v417_v17 = vpop.permute.xlu0 %416  ;;  %v2916_v23 = vpack.c.bf16 %v469_v13, %v465_v14  ;;  %v511_v14 = vrot.slane %v2376_v54, %v2638_v11 }
  0xcd   :  { %v438_v24 = vsel %vm432_vm6, %v419_v16, %v423_v60  ;;  %v437_v25 = vsel %vm432_vm6, %v417_v17, %v421_v62  ;;  %v515_v62 = vrot.slane %v2376_v54, %v2634_v10 }
  0xce   :  { %v468_v26 = vmul.f32 %v447_v15, %v438_v24  ;;  %v464_v32 = vmul.f32 %v447_v15, %v437_v25  ;;  %743 = vmatprep.subr.bf16.mxu0 %v2916_v23 }
  0xd0   :  { %v431_v38 = vpop.permute.xlu1 %430  ;;  %v429_v39 = vpop.permute.xlu0 %428  ;;  %v2925_v40 = vpack.c.bf16 %v468_v26, %v464_v32 }
  0xd1   :  { %v434_v41 = vsel %vm432_vm6, %v427_v2, %v431_v38  ;;  %v440_v42 = vsel %vm432_vm6, %v431_v38, %v419_v16  ;;  %v433_v43 = vsel %vm432_vm6, %v425_v3, %v429_v39  ;;  %v439_v46 = vsel %vm432_vm6, %v429_v39, %v417_v17 }
  0xd2   :  { %v470_v50 = vmul.f32 %v455_v36, %v434_v41  ;;  %v471_v51 = vmul.f32 %v459_v37, %v440_v42  ;;  %v466_v52 = vmul.f32 %v455_v36, %v433_v43  ;;  %v467_v53 = vmul.f32 %v459_v37, %v439_v46  ;;  %744 = vmatpush1.bf16.msra.mxu0 %v2925_v40 }
  0xd3   :  { %v519_v36 = vrot.slane %v2376_v54, %v2655_v21  ;;  %v523_v37 = vrot.slane %v2376_v54, %v2651_v19  ;;  %vm1773_vm6 = vcmp.lt.s32.totalorder %v2695_v31, 68 }
  0xd4   :  { %v487_v55 = vpop.permute.xlu1 %486  ;;  %v485_v58 = vpop.permute.xlu0 %484  ;;  %v2939_v59 = vpack.c.bf16 %v471_v51, %v467_v53  ;;  %v2941_v60 = vpack.c.bf16 %v470_v50, %v466_v52 }
  0xd6   :  { %3633 = vst [vmem:[#allocation3_spill] sm:$0xff] %v2941_v60  ;;  %784 = vmatprep.subr.bf16.mxu1 %v2939_v59 }
  0xd7   :  { %785 = vmatpush1.bf16.msra.mxu1 %v2941_v60 }
  0xd8   :  { %v491_v1 = vpop.permute.xlu1 %490  ;;  %v489_v2 = vpop.permute.xlu0 %488 }
  0xd9   :  { %v500_v3 = vsel %vm496_vm7, %v487_v55, %v491_v1  ;;  %v499_v6 = vsel %vm496_vm7, %v485_v58, %v489_v2 }
  0xda   :  { %v533_v7 = vmul.f32 %v515_v62, %v500_v3  ;;  %v529_v13 = vmul.f32 %v515_v62, %v499_v6 }
  0xdc   :  { %v483_v15 = vpop.permute.xlu1 %482  ;;  %v481_v16 = vpop.permute.xlu0 %480  ;;  %v2952_v17 = vpack.c.bf16 %v533_v7, %v529_v13 }
  0xdd   :  { %v502_v24 = vsel %vm496_vm7, %v483_v15, %v487_v55  ;;  %v501_v25 = vsel %vm496_vm7, %v481_v16, %v485_v58  ;;  %v2377_v55 = vld [vmem:[%s3609_s1 + $0x20] ss:$8 sm:$0xf] }
  0xde   :  { %v532_v26 = vmul.f32 %v511_v14, %v502_v24  ;;  %v528_v32 = vmul.f32 %v511_v14, %v501_v25  ;;  %745 = vmatprep.subr.bf16.mxu0 %v2952_v17  ;;  %v575_v24 = vrot.slane %v2377_v55, %v2638_v11 }
  0xe0   :  { %v495_v38 = vpop.permute.xlu1 %494  ;;  %v493_v39 = vpop.permute.xlu0 %492  ;;  %v2961_v41 = vpack.c.bf16 %v532_v26, %v528_v32 }
  0xe1   :  { %v498_v42 = vsel %vm496_vm7, %v491_v1, %v495_v38  ;;  %v504_v43 = vsel %vm496_vm7, %v495_v38, %v483_v15  ;;  %v497_v46 = vsel %vm496_vm7, %v489_v2, %v493_v39  ;;  %v503_v50 = vsel %vm496_vm7, %v493_v39, %v481_v16 }
  0xe2   :  { %3634 = vst [vmem:[#allocation4_spill] sm:$0xff] %v2961_v41  ;;  %v534_v51 = vmul.f32 %v519_v36, %v498_v42  ;;  %v535_v52 = vmul.f32 %v523_v37, %v504_v43  ;;  %v530_v53 = vmul.f32 %v519_v36, %v497_v46  ;;  %v531_v54 = vmul.f32 %v523_v37, %v503_v50 }
  0xe3   :  { %746 = vmatpush1.bf16.msra.mxu0 %v2961_v41  ;;  %v579_v2 = vrot.slane %v2377_v55, %v2634_v10  ;;  %v583_v42 = vrot.slane %v2377_v55, %v2655_v21  ;;  %v587_v43 = vrot.slane %v2377_v55, %v2651_v19  ;;  %vm1873_vm7 = vcmp.lt.s32.totalorder %v2695_v31, 60 }
  0xe4   :  { %v551_v58 = vpop.permute.xlu1 %550  ;;  %v549_v62 = vpop.permute.xlu0 %548  ;;  %v2975_v1 = vpack.c.bf16 %v535_v52, %v531_v54  ;;  %v2977_v3 = vpack.c.bf16 %v534_v51, %v530_v53 }
  0xe6   :  { %3635 = vst [vmem:[#allocation5_spill] sm:$0xff] %v2975_v1  ;;  %3636 = vst [vmem:[#allocation6_spill] sm:$0xff] %v2977_v3  ;;  %786 = vmatprep.subr.bf16.mxu1 %v2975_v1 }
  0xe7   :  { %787 = vmatpush1.bf16.msra.mxu1 %v2977_v3 }
  0xe8   :  { %v555_v6 = vpop.permute.xlu1 %554  ;;  %v553_v7 = vpop.permute.xlu0 %552 }
  0xe9   :  { %v564_v13 = vsel %vm560_vm8, %v551_v58, %v555_v6  ;;  %v563_v14 = vsel %vm560_vm8, %v549_v62, %v553_v7 }
  0xea   :  { %v597_v15 = vmul.f32 %v579_v2, %v564_v13  ;;  %v593_v16 = vmul.f32 %v579_v2, %v563_v14 }
  0xec   :  { %v547_v25 = vpop.permute.xlu1 %546  ;;  %v545_v26 = vpop.permute.xlu0 %544  ;;  %v2988_v32 = vpack.c.bf16 %v597_v15, %v593_v16 }
  0xed   :  { %v566_v36 = vsel %vm560_vm8, %v547_v25, %v551_v58  ;;  %v565_v37 = vsel %vm560_vm8, %v545_v26, %v549_v62 }
  0xee   :  { %3637 = vst [vmem:[#allocation7_spill] sm:$0xff] %v2988_v32  ;;  %v596_v38 = vmul.f32 %v575_v24, %v566_v36  ;;  %v592_v39 = vmul.f32 %v575_v24, %v565_v37  ;;  %747 = vmatprep.subr.bf16.mxu0 %v2988_v32 }
  0xf0   :  { %v559_v46 = vpop.permute.xlu1 %558  ;;  %v557_v50 = vpop.permute.xlu0 %556  ;;  %v2997_v51 = vpack.c.bf16 %v596_v38, %v592_v39 }
  0xf1   :  { %v562_v52 = vsel %vm560_vm8, %v555_v6, %v559_v46  ;;  %v568_v53 = vsel %vm560_vm8, %v559_v46, %v547_v25  ;;  %v561_v54 = vsel %vm560_vm8, %v553_v7, %v557_v50  ;;  %v567_v58 = vsel %vm560_vm8, %v557_v50, %v545_v26 }
  0xf2   :  { %3638 = vst [vmem:[#allocation8_spill] sm:$0xff] %v2997_v51  ;;  %v598_v62 = vmul.f32 %v583_v42, %v562_v52  ;;  %v599_v55 = vmul.f32 %v587_v43, %v568_v53  ;;  %v594_v2 = vmul.f32 %v583_v42, %v561_v54  ;;  %v595_v13 = vmul.f32 %v587_v43, %v567_v58 }
  0xf3   :  { %748 = vmatpush1.bf16.msra.mxu0 %v2997_v51  ;;  %vm2004_vm8 = vcmp.lt.s32.totalorder %v2695_v31, 124 }
  0xf4   :  { %827 = vmatprep.subr.bf16.mxu0 %v2728_v47  ;;  %v3009_v14 = vpack.c.bf16 %v599_v55, %v595_v13  ;;  %v3011_v6 = vpack.c.bf16 %v598_v62, %v594_v2 }
  0xf6   :  { %3639 = vst [vmem:[#allocation9_spill] sm:$0xff] %v3009_v14  ;;  %3640 = vst [vmem:[#allocation10_spill] sm:$0xff] %v3011_v6  ;;  %764 = vmatmul.mubr.bf16.vlgmr.msra.gmra.mrb[0].mxu0 %v2709_v34  ;;  %788 = vmatprep.subr.bf16.mxu1 %v3009_v14 }
  0xf7   :  { %828 = vmatpush1.bf16.msra.mxu0 %v2741_v56  ;;  %789 = vmatpush1.bf16.msra.mxu1 %v3011_v6 }
  0xf8   :  { %829 = vmatprep.subr.bf16.mxu0 %v2768_v18  ;;  %868 = vmatprep.subr.bf16.mxu1 %v2755_v4 }
  0xfa   :  { %805 = vmatmul.mubr.bf16.vlgmr.msra.gmra.mrb[0].mxu1 %v2709_v34 }
  0xfb   :  { %830 = vmatpush1.bf16.msra.mxu0 %v2777_v35  ;;  %869 = vmatpush1.bf16.msra.mxu1 %v2757_v5 }
  0xfc   :  { %831 = vmatprep.subr.bf16.mxu0 %v2804_v61  ;;  %870 = vmatprep.subr.bf16.mxu1 %v2791_v48 }
  0xff   :  { %832 = vmatpush1.bf16.msra.mxu0 %v2813_v8  ;;  %871 = vmatpush1.bf16.msra.mxu1 %v2793_v49 }
 0x100   :  { %833 = vmatprep.subr.bf16.mxu0 %v2840_v44  ;;  %872 = vmatprep.subr.bf16.mxu1 %v2827_v27 }
 0x103   :  { %834 = vmatpush1.bf16.msra.mxu0 %v2849_v57  ;;  %873 = vmatpush1.bf16.msra.mxu1 %v2829_v28 }
 0x104   :  { %835 = vmatprep.subr.bf16.mxu0 %v2653_v20  ;;  %874 = vmatprep.subr.bf16.mxu1 %v2864_v9 }
 0x107   :  { %836 = vmatpush1.bf16.msra.mxu0 %v2657_v22  ;;  %875 = vmatpush1.bf16.msra.mxu1 %v2866_v12 }
 0x108   :  { %837 = vmatprep.subr.bf16.mxu0 %v2880_v33  ;;  %876 = vmatprep.subr.bf16.mxu1 %v2667_v29 }
 0x10b   :  { %838 = vmatpush1.bf16.msra.mxu0 %v2889_v45  ;;  %877 = vmatpush1.bf16.msra.mxu1 %v2671_v30 }
 0x10c   :  { %839 = vmatprep.subr.bf16.mxu0 %v2916_v23  ;;  %878 = vmatprep.subr.bf16.mxu1 %v2903_v63 }
 0x10f   :  { %840 = vmatpush1.bf16.msra.mxu0 %v2925_v40  ;;  %879 = vmatpush1.bf16.msra.mxu1 %v2905_v0 }
 0x110   :  { %841 = vmatprep.subr.bf16.mxu0 %v2952_v17  ;;  %880 = vmatprep.subr.bf16.mxu1 %v2939_v59 }
 0x113   :  { %842 = vmatpush1.bf16.msra.mxu0 %v2961_v41  ;;  %881 = vmatpush1.bf16.msra.mxu1 %v2941_v60 }
 0x114   :  { %843 = vmatprep.subr.bf16.mxu0 %v2988_v32  ;;  %882 = vmatprep.subr.bf16.mxu1 %v2975_v1 }
 0x117   :  { %844 = vmatpush1.bf16.msra.mxu0 %v2997_v51  ;;  %883 = vmatpush1.bf16.msra.mxu1 %v2977_v3 }
 0x118   :  { %884 = vmatprep.subr.bf16.mxu1 %v3009_v14 }
 0x11b   :  { %885 = vmatpush1.bf16.msra.mxu1 %v3011_v6 }
 0x1c9   :  { %v765_v34 = vpop.f32.mrb[0].mxu0 }
 0x1ca   :  { %v911_v7 = vsel %vm910_vm9, %v765_v34, 0.0  ;;  %v767_v15 = vpop.f32.mrb[1].mxu0 }
 0x1cb   :  { %v912_v16 = vsel %vm910_vm9, %v767_v15, 0.0  ;;  %v769_v24 = vpop.f32.mrb[2].mxu0 }
 0x1cc   :  { %v913_v25 = vadd.f32 %v912_v16, %v911_v7  ;;  %v770_v26 = vpop.f32.mrb[3].mxu0 }
 0x1cd   :  { %v806_v36 = vpop.f32.mrb[0].mxu1 }
 0x1ce   :  { %v914_v37 = vsel %vm910_vm9, %v806_v36, 0.0  ;;  %v808_v38 = vpop.f32.mrb[1].mxu1 }
 0x1cf   :  { %v915_v39 = vadd.f32 %v914_v37, %v913_v25  ;;  %v916_v42 = vsel %vm910_vm9, %v808_v38, 0.0  ;;  %v810_v43 = vpop.f32.mrb[2].mxu1 }
 0x1d0   :  { %v811_v46 = vpop.f32.mrb[3].mxu1 }
 0x1d1   :  { %v917_v50 = vadd.f32 %v916_v42, %v915_v39 }
 0x1d3   :  { %918 = vadd.xlane.f32.xlu0 %v917_v50  ;;  %v939_v50 = vld [vmem:[%s3612_s8] sm:$0xf]  ;;  %s2480_s8 = smov 34  }
 0x260   :  { %v919_v52 = vpop.xlane.xlu0 %918 }
 0x261   :  { %v920_v53 = vmul.f32 0.001953125, %v919_v52 }
 0x263   :  { %v921_v54 = vsub.f32 %v765_v34, %v920_v53  ;;  %v922_v58 = vsub.f32 %v767_v15, %v920_v53  ;;  %v923_v62 = vsub.f32 %v806_v36, %v920_v53  ;;  %v924_v55 = vsub.f32 %v808_v38, %v920_v53  ;;  %v952_v15 = vld [vmem:[%s3611_s9] sm:$0xf]  ;;  %s2481_s9 = smov 32  }
 0x264   :  { %v3623_v34 = vmov 0  }
 0x265   :  { %v925_v2 = vmul.f32 %v921_v54, %v921_v54  ;;  %v926_v13 = vmul.f32 %v922_v58, %v922_v58  ;;  %v927_v7 = vmul.f32 %v923_v62, %v923_v62  ;;  %v928_v16 = vmul.f32 %v924_v55, %v924_v55  ;;  %2463 = vset.pattern.permute.xlu0 %v3623_v34 }
 0x266   :  { %2464 = vset.pattern.permute.xlu1 %v3623_v34 }
 0x267   :  { %v929_v24 = vsel %vm910_vm9, %v925_v2, 0.0  ;;  %v930_v25 = vsel %vm910_vm9, %v926_v13, 0.0  ;;  %v932_v37 = vsel %vm910_vm9, %v927_v7, 0.0  ;;  %v934_v39 = vsel %vm910_vm9, %v928_v16, 0.0 }
 0x268   :  { %v931_v26 = vadd.f32 %v930_v25, %v929_v24  ;;  %v2388_v2 = vld [vmem:[%s3609_s1 + $0x25] ss:$8 sm:$0xf] }
 0x26a   :  { %v933_v43 = vadd.f32 %v932_v37, %v931_v26  ;;  %v1176_v37 = vrot.slane %v2388_v2, %v2634_v10 }
 0x26c   :  { %v935_v42 = vadd.f32 %v934_v39, %v933_v43  ;;  %v1172_v43 = vrot.slane %v2388_v2, %v2638_v11 }
 0x26e   :  { %936 = vadd.xlane.f32.xlu1 %v935_v42 }
 0x27f   :  { %955 = vperm.xlu1 %2464, %v952_v15  }
 0x2fb   :  { %v937_v36 = vpop.xlane.xlu1 %936 }
 0x2fc   :  { %v938_v38 = vmul.f32 0.001953125, %v937_v36 }
 0x2fe   :  { %v940_v46 = vadd.f32 1e-05, %v938_v38  ;;  %v1184_v38 = vrot.slane %v2388_v2, %v2651_v19 }
 0x2ff   :  { %v956_v7 = vpop.permute.xlu1 %955 }
 0x300   :  { %2465 = vrsqrt.f32 %v940_v46  ;;  %v1180_v46 = vrot.slane %v2388_v2, %v2655_v21  ;;  %v2381_v2 = vld.sshfl [vmem:[%s3614_s3] sm:$0x33 pattern:$0x76325410]  ;;  %s2487_s3 = smov 94  }
 0x30a   :  { %v2466_v52 = vpop.eup %2465 }
 0x30b   :  { %v942_v53 = vmul.f32 %v2466_v52, %v939_v50 }
 0x30d   :  { %945 = vperm.xlu0 %2463, %v942_v53  }
 0x38c   :  { %v946_v13 = vpop.permute.xlu0 %945 }
 0x38d   :  { %v948_v16 = vmul.f32 %v946_v13, %v921_v54  ;;  %v949_v24 = vmul.f32 %v946_v13, %v922_v58  ;;  %v950_v25 = vmul.f32 %v946_v13, %v923_v62  ;;  %v951_v26 = vmul.f32 %v946_v13, %v924_v55 }
 0x38e   :  { %v822_v13 = vcombine.high %v2381_v2, %v2381_v2 }
 0x38f   :  { %v958_v39 = vadd.f32 %v956_v7, %v948_v16  ;;  %v959_v42 = vadd.f32 %v956_v7, %v949_v24  ;;  %v960_v15 = vadd.f32 %v956_v7, %v950_v25  ;;  %v961_v36 = vadd.f32 %v956_v7, %v951_v26  ;;  %v3109_v16 = vld [vmem:[%s3609_s1 + $0x22] ss:$8 sm:$0xf] }
 0x390   :  { %2382 = vmatprep.mubr.msk.bf16.mxu0 %vm727_vm1, %v822_v13  ;;  %2383 = vmatprep.mubr.msk.bf16.mxu1 %vm727_vm1, %v822_v13  ;;  %v3641_v7 = vmov 0   ;;  %v1033_v26 = vrot.slane %v3109_v16, %v2634_v10 }
 0x391   :  { %v962_v50 = vmax.f32 %v958_v39, 0.0  ;;  %v963_v52 = vmax.f32 %v959_v42, 0.0  ;;  %v964_v53 = vmax.f32 %v960_v15, 0.0  ;;  %v965_v34 = vmax.f32 %v961_v36, 0.0  ;;  %860 = vmatmul.mubr.bf16.vlgmr.msra.gmra.mrb[4].mxu0 %v2381_v2  ;;  %901 = vmatmul.mubr.bf16.vlgmr.msra.gmra.mrb[4].mxu1 %v2381_v2 }
 0x392   :  { %1480 = vmatprep.mubr.bf16.mxu0 %v3641_v7  ;;  %1521 = vmatprep.mubr.bf16.mxu1 %v3641_v7  ;;  %v3129_v36 = vld [vmem:[%s3609_s1 + $0x23] ss:$8 sm:$0xf] }
 0x393   :  { %966 = vrot.lane.b32.xlu0 %v962_v50, %s2480_s8  ;;  %1010 = vrot.lane.b32.xlu1 %v962_v50, %s2481_s9  ;;  %v1190_v54 = vmul.f32 %v1176_v37, %v963_v52  ;;  %v1189_v58 = vmul.f32 %v1172_v43, %v962_v50  ;;  %2342 = vst [vmem:[%s3613_s14] sm:$0xf] %v962_v50  ;;  %2343 = vst [vmem:[%s3613_s14 + $0x8] sm:$0xf] %v963_v52 }
 0x394   :  { %2344 = vst [vmem:[%s3613_s14 + $0x10] sm:$0xf] %v964_v53  ;;  %2345 = vst [vmem:[%s3613_s14 + $0x18] sm:$0xf] %v965_v34  ;;  %v1192_v62 = vmul.f32 %v1184_v38, %v965_v34  ;;  %v1191_v55 = vmul.f32 %v1180_v46, %v964_v53  ;;  %v1089_v32 = vrot.slane %v3129_v36, %v2634_v10 }
 0x395   :  { %1194 = vst [vmem:[#allocation2 + $0x48] sm:$0xf] %v1190_v54  ;;  %1193 = vst [vmem:[#allocation2 + $0x40] sm:$0xf] %v1189_v58  ;;  %v1085_v58 = vrot.slane %v3129_v36, %v2638_v11 }
 0x396   :  { %1196 = vst [vmem:[#allocation2 + $0x58] sm:$0xf] %v1192_v62  ;;  %1195 = vst [vmem:[#allocation2 + $0x50] sm:$0xf] %v1191_v55 }
 0x397   :  { %1066 = vrot.lane.b32.xlu0 %v962_v50, %s2482_s18  ;;  %1012 = vrot.lane.b32.xlu1 %v963_v52, %s2481_s9  ;;  %v2384_v37 = vld [vmem:[%s3609_s1 + $0x21] ss:$8 sm:$0xf]  ;;  %v3134_v38 = vld [vmem:[%s3609_s1 + $0x24] ss:$8 sm:$0xf] }
 0x398   :  { %v985_v15 = vrot.slane %v2384_v37, %v2638_v11  ;;  %v1133_v62 = vrot.slane %v3134_v38, %v2634_v10  ;;  %v1129_v3 = vrot.slane %v3134_v38, %v2638_v11 }
 0x39b   :  { %972 = vrot.lane.b32.xlu0 %v965_v34, %s2480_s8  ;;  %1110 = vrot.lane.b32.xlu1 %v962_v50, %s2483_s19 }
 0x39f   :  { %1072 = vrot.lane.b32.xlu0 %v965_v34, %s2482_s18  ;;  %1112 = vrot.lane.b32.xlu1 %v963_v52, %s2483_s19 }
 0x3a3   :  { %1199 = vrot.lane.b32.xlu0 %v963_v52, %s2484_s20  ;;  %1016 = vrot.lane.b32.xlu1 %v965_v34, %s2481_s9 }
 0x3a7   :  { %1299 = vrot.lane.b32.xlu0 %v963_v52, %s2485_s21  ;;  %1116 = vrot.lane.b32.xlu1 %v965_v34, %s2483_s19 }
 0x3ab   :  { %970 = vrot.lane.b32.xlu0 %v964_v53, %s2480_s8  ;;  %968 = vrot.lane.b32.xlu1 %v963_v52, %s2480_s8 }
 0x3af   :  { %1197 = vrot.lane.b32.xlu0 %v962_v50, %s2484_s20  ;;  %1068 = vrot.lane.b32.xlu1 %v963_v52, %s2482_s18 }
 0x3b3   :  { %1255 = vrot.lane.b32.xlu0 %v963_v52, %s2486_s24  ;;  %1014 = vrot.lane.b32.xlu1 %v964_v53, %s2481_s9 }
 0x3b7   :  { %1203 = vrot.lane.b32.xlu0 %v965_v34, %s2484_s20  ;;  %1114 = vrot.lane.b32.xlu1 %v964_v53, %s2483_s19 }
 0x3bb   :  { %1303 = vrot.lane.b32.xlu0 %v965_v34, %s2485_s21  ;;  %1201 = vrot.lane.b32.xlu1 %v964_v53, %s2484_s20  ;;  %s2492_s20 = smov 124  }
 0x3bf   :  { %1353 = vrot.lane.b32.xlu0 %v962_v50, %s2487_s3  ;;  %1301 = vrot.lane.b32.xlu1 %v964_v53, %s2485_s21 }
 0x3c3   :  { %1357 = vrot.lane.b32.xlu0 %v964_v53, %s2487_s3  ;;  %1070 = vrot.lane.b32.xlu1 %v964_v53, %s2482_s18 }
 0x3c7   :  { %1297 = vrot.lane.b32.xlu1 %v962_v50, %s2485_s21 }
 0x3cb   :  { %1257 = vrot.lane.b32.xlu1 %v964_v53, %s2486_s24 }
 0x3cf   :  { %1253 = vrot.lane.b32.xlu1 %v962_v50, %s2486_s24 }
 0x3d3   :  { %1259 = vrot.lane.b32.xlu1 %v965_v34, %s2486_s24 }
 0x3d7   :  { %1355 = vrot.lane.b32.xlu1 %v963_v52, %s2487_s3 }
 0x3db   :  { %1359 = vrot.lane.b32.xlu1 %v965_v34, %s2487_s3 }
 0x405   :  { %v967_v24 = vpop.permute.xlu0 %966  ;;  %v1011_v25 = vpop.permute.xlu1 %1010 }
 0x409   :  { %v3117_v43 = vpop.permute.xlu0 %1066  ;;  %v3119_v39 = vpop.permute.xlu1 %1012 }
 0x40a   :  { %v1021_v34 = vsel %vm1018_vm10, %v1011_v25, %v3119_v39 }
 0x40b   :  { %v1047_v42 = vmul.f32 %v1033_v26, %v1021_v34 }
 0x40d   :  { %v1055_v46 = vrot.slane %v1047_v42, 4  ;;  %v973_v50 = vpop.permute.xlu0 %972  ;;  %v1111_v52 = vpop.permute.xlu1 %1110 }
 0x40e   :  { %v978_v53 = vsel %vm974_vm11, %v973_v50, %v967_v24 }
 0x40f   :  { %1063 = vst [vmem:[#allocation2 + $0x8] sm:$0xf0] %v1055_v46  ;;  %v1002_v54 = vmul.f32 %v985_v15, %v978_v53  ;;  %v1029_v15 = vrot.slane %v3109_v16, %v2638_v11 }
 0x411   :  { %1006 = vst [vmem:[#allocation2] sm:$0xf] %v1002_v54  ;;  %v3144_v55 = vpop.permute.xlu0 %1072  ;;  %v3146_v2 = vpop.permute.xlu1 %1112 }
 0x412   :  { %v1078_v13 = vsel %vm1074_vm12, %v3144_v55, %v3117_v43  ;;  %v1121_v26 = vsel %vm1118_vm13, %v1111_v52, %v3146_v2 }
 0x413   :  { %v1102_v34 = vmul.f32 %v1085_v58, %v1078_v13  ;;  %v1147_v42 = vmul.f32 %v1133_v62, %v1121_v26  ;;  %v997_v26 = vrot.slane %v2384_v37, %v2651_v19 }
 0x415   :  { %1106 = vst [vmem:[#allocation2 + $0x20] sm:$0xf] %v1102_v34  ;;  %v1155_v46 = vrot.slane %v1147_v42, 4  ;;  %v3157_v53 = vpop.permute.xlu0 %1199  ;;  %v1017_v54 = vpop.permute.xlu1 %1016  ;;  %v989_v34 = vrot.slane %v2384_v37, %v2634_v10 }
 0x416   :  { %v1022_v6 = vsel %vm1018_vm10, %v1017_v54, %v1011_v25  ;;  %v993_v25 = vrot.slane %v2384_v37, %v2655_v21 }
 0x417   :  { %1163 = vst [vmem:[#allocation2 + $0x28] sm:$0xf0] %v1155_v46  ;;  %v1046_v14 = vmul.f32 %v1029_v15, %v1022_v6  ;;  %v3173_v6 = vld [vmem:[%s3609_s1 + $0x26] ss:$8 sm:$0xf] }
 0x418   :  { %v1216_v37 = vrot.slane %v3173_v6, %v2638_v11 }
 0x419   :  { %v1054_v51 = vrot.slane %v1046_v14, 4  ;;  %v3163_v1 = vpop.permute.xlu0 %1299  ;;  %v1117_v58 = vpop.permute.xlu1 %1116 }
 0x41a   :  { %v1122_v62 = vsel %vm1118_vm13, %v1117_v58, %v1111_v52 }
 0x41b   :  { %1062 = vst [vmem:[#allocation2] sm:$0xf0] %v1054_v51  ;;  %v1146_v13 = vmul.f32 %v1129_v3, %v1122_v62 }
 0x41d   :  { %v1154_v14 = vrot.slane %v1146_v13, 4  ;;  %v971_v42 = vpop.permute.xlu0 %970  ;;  %v969_v15 = vpop.permute.xlu1 %968 }
 0x41e   :  { %v975_v51 = vsel %vm974_vm11, %v971_v42, %v973_v50  ;;  %v976_v3 = vsel %vm974_vm11, %v969_v15, %v971_v42  ;;  %v977_v52 = vsel %vm974_vm11, %v967_v24, %v969_v15  ;;  %v1041_v42 = vrot.slane %v3109_v16, %v2651_v19 }
 0x41f   :  { %1162 = vst [vmem:[#allocation2 + $0x20] sm:$0xf0] %v1154_v14  ;;  %v1005_v46 = vmul.f32 %v997_v26, %v975_v51  ;;  %v1003_v62 = vmul.f32 %v989_v34, %v977_v52  ;;  %v1004_v13 = vmul.f32 %v993_v25, %v976_v3  ;;  %v1037_v14 = vrot.slane %v3109_v16, %v2655_v21 }
 0x420   :  { %v1137_v16 = vrot.slane %v3134_v38, %v2655_v21 }
 0x421   :  { %1009 = vst [vmem:[#allocation2 + $0x18] sm:$0xf] %v1005_v46  ;;  %1007 = vst [vmem:[#allocation2 + $0x8] sm:$0xf] %v1003_v62  ;;  %v1198_v50 = vpop.permute.xlu0 %1197  ;;  %v3186_v60 = vpop.permute.xlu1 %1068  ;;  %v1141_v62 = vrot.slane %v3134_v38, %v2651_v19 }
 0x422   :  { %1008 = vst [vmem:[#allocation2 + $0x10] sm:$0xf] %v1004_v13  ;;  %v1208_v24 = vsel %vm1205_vm14, %v1198_v50, %v3157_v53  ;;  %v1077_v26 = vsel %vm1074_vm12, %v3117_v43, %v3186_v60 }
 0x423   :  { %v1233_v34 = vmul.f32 %v1216_v37, %v1208_v24  ;;  %v1103_v25 = vmul.f32 %v1089_v32, %v1077_v26  ;;  %v1228_v32 = vrot.slane %v3173_v6, %v2651_v19 }
 0x425   :  { %v1241_v15 = vrot.slane %v1233_v34, 4  ;;  %1107 = vst [vmem:[#allocation2 + $0x28] sm:$0xf] %v1103_v25  ;;  %v3199_v51 = vpop.permute.xlu0 %1255  ;;  %v1015_v3 = vpop.permute.xlu1 %1014 }
 0x426   :  { %v1019_v52 = vsel %vm1018_vm10, %v1015_v3, %v1017_v54  ;;  %v1020_v43 = vsel %vm1018_vm10, %v3119_v39, %v1015_v3  ;;  %v1224_v3 = vrot.slane %v3173_v6, %v2655_v21 }
 0x427   :  { %1249 = vst [vmem:[#allocation2 + $0x40] sm:$0xf0] %v1241_v15  ;;  %v1048_v37 = vmul.f32 %v1037_v14, %v1020_v43  ;;  %v1049_v46 = vmul.f32 %v1041_v42, %v1019_v52  ;;  %v1220_v14 = vrot.slane %v3173_v6, %v2634_v10  ;;  %v1401_v52 = vld [vmem:[#allocation2 + $0x20] sm:$0xff] }
 0x429   :  { %v1056_v13 = vrot.slane %v1048_v37, 4  ;;  %v1057_v24 = vrot.slane %v1049_v46, 4  ;;  %v1204_v26 = vpop.permute.xlu0 %1203  ;;  %v1115_v54 = vpop.permute.xlu1 %1114 }
 0x42a   :  { %v1209_v34 = vsel %vm1205_vm14, %v1204_v26, %v1198_v50  ;;  %v1119_v39 = vsel %vm1118_vm13, %v1115_v54, %v1117_v58  ;;  %v1120_v25 = vsel %vm1118_vm13, %v3146_v2, %v1115_v54  ;;  %v1398_v50 = vld [vmem:[#allocation2 + $0x8] sm:$0xff] }
 0x42b   :  { %1064 = vst [vmem:[#allocation2 + $0x10] sm:$0xf0] %v1056_v13  ;;  %1065 = vst [vmem:[#allocation2 + $0x18] sm:$0xf0] %v1057_v24  ;;  %v1236_v38 = vmul.f32 %v1228_v32, %v1209_v34  ;;  %v1148_v42 = vmul.f32 %v1137_v16, %v1120_v25  ;;  %v1149_v15 = vmul.f32 %v1141_v62, %v1119_v39  ;;  %v1397_v13 = vld [vmem:[#allocation2] sm:$0xff] }
 0x42c   :  { %v1402_v43 = vld [vmem:[#allocation2 + $0x28] sm:$0xff]  ;;  %v3233_v16 = vpack.c.bf16 %v1401_v52, %v1397_v13  ;;  %v1093_v52 = vrot.slane %v3129_v36, %v2655_v21 }
 0x42d   :  { %v2391_v58 = vld [vmem:[%s3609_s1 + $0x40] ss:$8 sm:$0xf]  ;;  %v1244_v37 = vrot.slane %v1236_v38, 4  ;;  %v1156_v2 = vrot.slane %v1148_v42, 4  ;;  %v1157_v46 = vrot.slane %v1149_v15, 4  ;;  %v1202_v54 = vpop.permute.xlu1 %1201  ;;  %v3226_v41 = vpack.c.bf16 %v1402_v43, %v1398_v50 }
 0x42e   :  { %v1206_v32 = vsel %vm1205_vm14, %v1202_v54, %v1204_v26  ;;  %v1207_v6 = vsel %vm1205_vm14, %v3157_v53, %v1202_v54  ;;  %v1320_v34 = vrot.slane %v2391_v58, %v2634_v10  ;;  %v1324_v39 = vrot.slane %v2391_v58, %v2655_v21  ;;  %v1304_v26 = vpop.permute.xlu0 %1303 }
 0x42f   :  { %1252 = vst [vmem:[#allocation2 + $0x58] sm:$0xf0] %v1244_v37  ;;  %1164 = vst [vmem:[#allocation2 + $0x30] sm:$0xf0] %v1156_v2  ;;  %v1234_v62 = vmul.f32 %v1220_v14, %v1207_v6  ;;  %v1235_v24 = vmul.f32 %v1224_v3, %v1206_v32  ;;  %1448 = vmatprep.subr.bf16.mxu0 %v3226_v41  ;;  %v1097_v50 = vrot.slane %v3129_v36, %v2651_v19 }
 0x430   :  { %1165 = vst [vmem:[#allocation2 + $0x38] sm:$0xf0] %v1157_v46  ;;  %1449 = vmatpush1.bf16.msra.mxu0 %v3233_v16  ;;  %v1316_v6 = vrot.slane %v2391_v58, %v2638_v11  ;;  %v2390_v36 = vld [vmem:[%s3609_s1 + $0x27] ss:$8 sm:$0xf] }
 0x431   :  { %v1242_v25 = vrot.slane %v1234_v62, 4  ;;  %v1243_v53 = vrot.slane %v1235_v24, 4  ;;  %v1302_v38 = vpop.permute.xlu1 %1301  ;;  %v1328_v62 = vrot.slane %v2391_v58, %v2651_v19  ;;  %v1276_v58 = vrot.slane %v2390_v36, %v2634_v10 }
 0x432   :  { %v1306_v42 = vsel %vm1305_vm15, %v1302_v38, %v1304_v26  ;;  %v1307_v14 = vsel %vm1305_vm15, %v3163_v1, %v1302_v38 }
 0x433   :  { %1250 = vst [vmem:[#allocation2 + $0x48] sm:$0xf0] %v1242_v25  ;;  %1251 = vst [vmem:[#allocation2 + $0x50] sm:$0xf0] %v1243_v53  ;;  %v1334_v15 = vmul.f32 %v1320_v34, %v1307_v14  ;;  %v1335_v3 = vmul.f32 %v1324_v39, %v1306_v42 }
 0x435   :  { %v1342_v43 = vrot.slane %v1334_v15, 4  ;;  %v1343_v37 = vrot.slane %v1335_v3, 4  ;;  %v1071_v2 = vpop.permute.xlu1 %1070  ;;  %v1400_v15 = vld [vmem:[#allocation2 + $0x18] sm:$0xff]  ;;  %v1399_v3 = vld [vmem:[#allocation2 + $0x10] sm:$0xff] }
 0x436   :  { %v1075_v46 = vsel %vm1074_vm12, %v1071_v2, %v3144_v55  ;;  %v1076_v54 = vsel %vm1074_vm12, %v3186_v60, %v1071_v2 }
 0x437   :  { %1350 = vst [vmem:[#allocation2 + $0x68] sm:$0xf0] %v1342_v43  ;;  %1351 = vst [vmem:[#allocation2 + $0x70] sm:$0xf0] %v1343_v37  ;;  %v1104_v13 = vmul.f32 %v1093_v52, %v1076_v54  ;;  %v1105_v32 = vmul.f32 %v1097_v50, %v1075_v46  ;;  %v1354_v46 = vpop.permute.xlu0 %1353 }
 0x439   :  { %1108 = vst [vmem:[#allocation2 + $0x30] sm:$0xf] %v1104_v13  ;;  %1109 = vst [vmem:[#allocation2 + $0x38] sm:$0xf] %v1105_v32  ;;  %v1298_v24 = vpop.permute.xlu1 %1297  ;;  %v1280_v13 = vrot.slane %v2390_v36, %v2655_v21  ;;  %v1284_v32 = vrot.slane %v2390_v36, %v2651_v19 }
 0x43a   :  { %v1308_v55 = vsel %vm1305_vm15, %v1298_v24, %v3163_v1  ;;  %v1309_v60 = vsel %vm1305_vm15, %v1304_v26, %v1298_v24  ;;  %v1272_v1 = vrot.slane %v2390_v36, %v2638_v11 }
 0x43b   :  { %v1333_v34 = vmul.f32 %v1316_v6, %v1308_v55  ;;  %v1336_v39 = vmul.f32 %v1328_v62, %v1309_v60  ;;  %v2392_v6 = vld [vmem:[%s3609_s1 + $0x41] ss:$8 sm:$0xf] }
 0x43c   :  { %v1372_v36 = vrot.slane %v2392_v6, %v2638_v11 }
 0x43d   :  { %v1341_v25 = vrot.slane %v1333_v34, 4  ;;  %v1344_v53 = vrot.slane %v1336_v39, 4  ;;  %v1258_v38 = vpop.permute.xlu1 %1257  ;;  %v1376_v34 = vrot.slane %v2392_v6, %v2634_v10  ;;  %v1406_v39 = vld [vmem:[#allocation2 + $0x48] sm:$0xff] }
 0x43e   :  { %v1263_v42 = vsel %vm1261_vm0, %v3199_v51, %v1258_v38 }
 0x43f   :  { %1349 = vst [vmem:[#allocation2 + $0x60] sm:$0xf0] %v1341_v25  ;;  %1352 = vst [vmem:[#allocation2 + $0x78] sm:$0xf0] %v1344_v53  ;;  %v1290_v14 = vmul.f32 %v1276_v58, %v1263_v42  ;;  %v1358_v25 = vpop.permute.xlu0 %1357 }
 0x440   :  { %v1404_v26 = vld [vmem:[#allocation2 + $0x38] sm:$0xff]  ;;  %v1403_v52 = vld [vmem:[#allocation2 + $0x30] sm:$0xff] }
 0x441   :  { %1294 = vst [vmem:[#allocation2 + $0x68] sm:$0xf] %v1290_v14  ;;  %v1254_v50 = vpop.permute.xlu1 %1253  ;;  %v3271_v43 = vpack.c.bf16 %v1404_v26, %v1400_v15  ;;  %v3273_v37 = vpack.c.bf16 %v1403_v52, %v1399_v3  ;;  %v1380_v26 = vrot.slane %v2392_v6, %v2655_v21  ;;  %v1384_v3 = vrot.slane %v2392_v6, %v2651_v19  ;;  %v1405_v52 = vld [vmem:[#allocation2 + $0x40] sm:$0xff] }
 0x442   :  { %v1264_v2 = vsel %vm1261_vm0, %v1254_v50, %v3199_v51 }
 0x443   :  { %v1289_v54 = vmul.f32 %v1272_v1, %v1264_v2  ;;  %1489 = vmatprep.subr.bf16.mxu1 %v3271_v43 }
 0x444   :  { %1490 = vmatpush1.bf16.msra.mxu1 %v3273_v37 }
 0x445   :  { %1293 = vst [vmem:[#allocation2 + $0x60] sm:$0xf] %v1289_v54  ;;  %v1260_v62 = vpop.permute.xlu1 %1259 }
 0x446   :  { %v1262_v24 = vsel %vm1261_vm0, %v1258_v38, %v1260_v62  ;;  %v1265_v51 = vsel %vm1261_vm0, %v1260_v62, %v1254_v50 }
 0x447   :  { %v1291_v55 = vmul.f32 %v1280_v13, %v1262_v24  ;;  %v1292_v60 = vmul.f32 %v1284_v32, %v1265_v51  ;;  %v1408_v51 = vld [vmem:[#allocation2 + $0x58] sm:$0xff] }
 0x448   :  { %v1410_v58 = vld [vmem:[#allocation2 + $0x68] sm:$0xff] }
 0x449   :  { %1295 = vst [vmem:[#allocation2 + $0x70] sm:$0xf] %v1291_v55  ;;  %1296 = vst [vmem:[#allocation2 + $0x78] sm:$0xf] %v1292_v60  ;;  %v1356_v53 = vpop.permute.xlu1 %1355  ;;  %v1422_v42 = vpack.c.bf16 %v1410_v58, %v1406_v39  ;;  %v1407_v60 = vld [vmem:[#allocation2 + $0x50] sm:$0xff] }
 0x44a   :  { %v1363_v38 = vsel %vm1361_vm2, %v1356_v53, %v1358_v25  ;;  %v1364_v14 = vsel %vm1361_vm2, %v1354_v46, %v1356_v53 }
 0x44b   :  { %v1389_v1 = vmul.f32 %v1372_v36, %v1364_v14  ;;  %v1390_v15 = vmul.f32 %v1376_v34, %v1363_v38  ;;  %1450 = vmatprep.subr.bf16.mxu0 %v1422_v42  ;;  %v1430_v14 = vld [vmem:[%s3615_s6] sm:$0x3] }
 0x44c   :  { %v1409_v50 = vld [vmem:[#allocation2 + $0x60] sm:$0xff] }
 0x44d   :  { %1393 = vst [vmem:[#allocation2 + $0x80] sm:$0xf] %v1389_v1  ;;  %1394 = vst [vmem:[#allocation2 + $0x88] sm:$0xf] %v1390_v15  ;;  %v1360_v2 = vpop.permute.xlu1 %1359  ;;  %v1421_v54 = vpack.c.bf16 %v1409_v50, %v1405_v52 }
 0x44e   :  { %v1362_v13 = vsel %vm1361_vm2, %v1358_v25, %v1360_v2  ;;  %v1365_v32 = vsel %vm1361_vm2, %v1360_v2, %v1354_v46 }
 0x44f   :  { %v1391_v62 = vmul.f32 %v1380_v26, %v1362_v13  ;;  %v1392_v24 = vmul.f32 %v1384_v3, %v1365_v32  ;;  %1451 = vmatpush1.bf16.msra.mxu0 %v1421_v54 }
 0x450   :  { %v1412_v55 = vld [vmem:[#allocation2 + $0x78] sm:$0xff]  ;;  %v1411_v36 = vld [vmem:[#allocation2 + $0x70] sm:$0xff] }
 0x451   :  { %1395 = vst [vmem:[#allocation2 + $0x90] sm:$0xf] %v1391_v62  ;;  %1396 = vst [vmem:[#allocation2 + $0x98] sm:$0xf] %v1392_v24  ;;  %v1424_v6 = vpack.c.bf16 %v1412_v55, %v1408_v51  ;;  %v1423_v34 = vpack.c.bf16 %v1411_v36, %v1407_v60  ;;  %v1751_v51 = vld [vmem:[%s3617_s11] sm:$0xf] }
 0x453   :  { %1491 = vmatprep.subr.bf16.mxu1 %v1424_v6 }
 0x454   :  { %1492 = vmatpush1.bf16.msra.mxu1 %v1423_v34  ;;  %v1414_v39 = vld [vmem:[#allocation2 + $0x88] sm:$0xf]  ;;  %v1413_v58 = vld [vmem:[#allocation2 + $0x80] sm:$0xf] }
 0x455   :  { %v1426_v25 = vpack.c.bf16 %v1414_v39, %v1414_v39  ;;  %v1425_v53 = vpack.c.bf16 %v1413_v58, %v1413_v58  ;;  %v2408_v58 = vld [vmem:[%s3609_s1 + $0x46] ss:$8 sm:$0xf] }
 0x457   :  { %2393 = vmatprep.subr.msk.bf16.mxu0 %vm1435_vm3, %v1426_v25  ;;  %v1437_v46 = vsel %vm1435_vm3, %v1425_v53, 0 }
 0x458   :  { %1453 = vmatpush1.bf16.msra.mxu0 %v1437_v46  ;;  %v1416_v38 = vld [vmem:[#allocation2 + $0x98] sm:$0xf]  ;;  %v1415_v1 = vld [vmem:[#allocation2 + $0x90] sm:$0xf] }
 0x459   :  { %1533 = vmatprep.subr.bf16.mxu0 %v3226_v41  ;;  %v1428_v15 = vpack.c.bf16 %v1416_v38, %v1416_v38  ;;  %v1427_v26 = vpack.c.bf16 %v1415_v1, %v1415_v1  ;;  %v1429_v41 = vld [vmem:[%s3616_s5] sm:$0x3] }
 0x45b   :  { %2395 = vmatprep.subr.msk.bf16.mxu1 %vm1435_vm3, %v1428_v15  ;;  %2394 = vmatmul.mubr.msk.bf16.vlgmr.msra.gmra.mrb[8].mxu0 %vm1431_vm4, %v1430_v14  ;;  %v1443_v3 = vsel %vm1435_vm3, %v1427_v26, 0  ;;  %v1975_v26 = vrot.slane %v2408_v58, %v2634_v10 }
 0x45c   :  { %1494 = vmatpush1.bf16.msra.mxu1 %v1443_v3  ;;  %1534 = vmatpush1.bf16.msra.mxu0 %v3233_v16 }
 0x45d   :  { %1535 = vmatprep.subr.bf16.mxu0 %v1422_v42  ;;  %1574 = vmatprep.subr.bf16.mxu1 %v3271_v43 }
 0x45e   :  { %1565 = vmatprep.mubr.bf16.mxu0 %v3641_v7 }
 0x45f   :  { %2396 = vmatmul.mubr.msk.bf16.vlgmr.msra.gmra.mrb[8].mxu1 %vm1431_vm4, %v1430_v14 }
 0x460   :  { %1536 = vmatpush1.bf16.msra.mxu0 %v1421_v54  ;;  %1575 = vmatpush1.bf16.msra.mxu1 %v3273_v37 }
 0x461   :  { %2397 = vmatprep.subr.msk.bf16.mxu0 %vm1435_vm3, %v1426_v25  ;;  %1576 = vmatprep.subr.bf16.mxu1 %v1424_v6  ;;  %v1738_v6 = vld [vmem:[%s3618_s10] sm:$0xf]  ;;  %s2488_s10 = smov 64  }
 0x462   :  { %1606 = vmatprep.mubr.bf16.mxu1 %v3641_v7 }
 0x464   :  { %1538 = vmatpush1.bf16.msra.mxu0 %v1437_v46  ;;  %1577 = vmatpush1.bf16.msra.mxu1 %v1423_v34 }
 0x465   :  { %2399 = vmatprep.subr.msk.bf16.mxu1 %vm1435_vm3, %v1428_v15  ;;  %1628 = vmatprep.subr.bf16.mxu0 %v2728_v47  ;;  %v3645_v47 = vld [vmem:[#allocation5_spill] sm:$0xff]  ;;  %v1971_v15 = vrot.slane %v2408_v58, %v2638_v11 }
 0x467   :  { %2398 = vmatmul.mubr.msk.bf16.vlgmr.msra.gmra.mrb[4].mxu0 %vm1431_vm4, %v1429_v41 }
 0x468   :  { %1579 = vmatpush1.bf16.msra.mxu1 %v1443_v3  ;;  %1629 = vmatpush1.bf16.msra.mxu0 %v2741_v56  ;;  %v3647_v56 = vld [vmem:[#allocation6_spill] sm:$0xff]  ;;  %v1979_v3 = vrot.slane %v2408_v58, %v2655_v21 }
 0x469   :  { %1630 = vmatprep.subr.bf16.mxu0 %v2768_v18  ;;  %1669 = vmatprep.subr.bf16.mxu1 %v2755_v4  ;;  %v3648_v4 = vld [vmem:[#allocation9_spill] sm:$0xff] }
 0x46b   :  { %2400 = vmatmul.mubr.msk.bf16.vlgmr.msra.gmra.mrb[4].mxu1 %vm1431_vm4, %v1429_v41  ;;  %v1983_v41 = vrot.slane %v2408_v58, %v2651_v19 }
 0x46c   :  { %1631 = vmatpush1.bf16.msra.mxu0 %v2777_v35  ;;  %1670 = vmatpush1.bf16.msra.mxu1 %v2757_v5  ;;  %v3649_v5 = vld [vmem:[#allocation10_spill] sm:$0xff] }
 0x46d   :  { %1632 = vmatprep.subr.bf16.mxu0 %v2804_v61  ;;  %1671 = vmatprep.subr.bf16.mxu1 %v2791_v48 }
 0x470   :  { %1633 = vmatpush1.bf16.msra.mxu0 %v2813_v8  ;;  %1672 = vmatpush1.bf16.msra.mxu1 %v2793_v49 }
 0x471   :  { %1634 = vmatprep.subr.bf16.mxu0 %v2840_v44  ;;  %1673 = vmatprep.subr.bf16.mxu1 %v2827_v27 }
 0x474   :  { %1635 = vmatpush1.bf16.msra.mxu0 %v2849_v57  ;;  %1674 = vmatpush1.bf16.msra.mxu1 %v2829_v28 }
 0x475   :  { %1675 = vmatprep.subr.bf16.mxu1 %v2864_v9  ;;  %1636 = vmatprep.subr.bf16.mxu0 %v2653_v20  ;;  %v3642_v20 = vld [vmem:[#allocation4_spill] sm:$0xff] }
 0x478   :  { %1637 = vmatpush1.bf16.msra.mxu0 %v2657_v22  ;;  %1676 = vmatpush1.bf16.msra.mxu1 %v2866_v12  ;;  %v3643_v22 = vld [vmem:[#allocation3_spill] sm:$0xff] }
 0x479   :  { %1638 = vmatprep.subr.bf16.mxu0 %v2880_v33  ;;  %1677 = vmatprep.subr.bf16.mxu1 %v2667_v29  ;;  %v3644_v29 = vld [vmem:[#allocation7_spill] sm:$0xff] }
 0x47c   :  { %1639 = vmatpush1.bf16.msra.mxu0 %v2889_v45  ;;  %1678 = vmatpush1.bf16.msra.mxu1 %v2671_v30  ;;  %v3646_v30 = vld [vmem:[#allocation8_spill] sm:$0xff] }
 0x47d   :  { %1640 = vmatprep.subr.bf16.mxu0 %v2916_v23  ;;  %1679 = vmatprep.subr.bf16.mxu1 %v2903_v63 }
 0x480   :  { %1641 = vmatpush1.bf16.msra.mxu0 %v2925_v40  ;;  %1680 = vmatpush1.bf16.msra.mxu1 %v2905_v0 }
 0x481   :  { %1642 = vmatprep.subr.bf16.mxu0 %v2952_v17  ;;  %1681 = vmatprep.subr.bf16.mxu1 %v2939_v59 }
 0x484   :  { %1643 = vmatpush1.bf16.msra.mxu0 %v3642_v20  ;;  %1682 = vmatpush1.bf16.msra.mxu1 %v3643_v22 }
 0x485   :  { %1644 = vmatprep.subr.bf16.mxu0 %v3644_v29  ;;  %1683 = vmatprep.subr.bf16.mxu1 %v3645_v47 }
 0x488   :  { %1645 = vmatpush1.bf16.msra.mxu0 %v3646_v30  ;;  %1684 = vmatpush1.bf16.msra.mxu1 %v3647_v56 }
 0x489   :  { %1685 = vmatprep.subr.bf16.mxu1 %v3648_v4 }
 0x48c   :  { %1686 = vmatpush1.bf16.msra.mxu1 %v3649_v5 }
 0x53a   :  { %v1567_v18 = vpop.f32.mrb[4].mxu0 }
 0x53b   :  { %v1710_v35 = vsel %vm910_vm9, %v1567_v18, 0.0  ;;  %v1569_v48 = vpop.f32.mrb[5].mxu0 }
 0x53c   :  { %v1711_v49 = vsel %vm910_vm9, %v1569_v48, 0.0  ;;  %v1571_v61 = vpop.f32.mrb[6].mxu0 }
 0x53d   :  { %v1712_v8 = vadd.f32 %v1711_v49, %v1710_v35  ;;  %v1572_v27 = vpop.f32.mrb[7].mxu0 }
 0x53e   :  { %v1608_v28 = vpop.f32.mrb[4].mxu1 }
 0x53f   :  { %v1713_v44 = vsel %vm910_vm9, %v1608_v28, 0.0  ;;  %v1610_v57 = vpop.f32.mrb[5].mxu1 }
 0x540   :  { %v1714_v9 = vadd.f32 %v1713_v44, %v1712_v8  ;;  %v1715_v12 = vsel %vm910_vm9, %v1610_v57, 0.0  ;;  %v1612_v33 = vpop.f32.mrb[6].mxu1  ;;  %v2401_v44 = vld.sshfl [vmem:[%s3619_s4] sm:$0x33 pattern:$0x76325410] }
 0x541   :  { %v1613_v45 = vpop.f32.mrb[7].mxu1 }
 0x542   :  { %v1716_v63 = vadd.f32 %v1715_v12, %v1714_v9  ;;  %v3403_v9 = vld [vmem:[%s3609_s1 + $0x43] ss:$8 sm:$0xf]  ;;  %v3408_v12 = vld [vmem:[%s3609_s1 + $0x61] ss:$8 sm:$0xf] }
 0x543   :  { %v1832_v33 = vrot.slane %v3403_v9, %v2634_v10 }
 0x544   :  { %1717 = vadd.xlane.f32.xlu0 %v1716_v63  ;;  %v3420_v63 = vld [vmem:[%s3609_s1 + $0x45] ss:$8 sm:$0xf] }
 0x5d1   :  { %v1718_v0 = vpop.xlane.xlu0 %1717 }
 0x5d2   :  { %v1719_v23 = vmul.f32 0.001953125, %v1718_v0 }
 0x5d4   :  { %v1720_v40 = vsub.f32 %v1567_v18, %v1719_v23  ;;  %v1721_v59 = vsub.f32 %v1569_v48, %v1719_v23  ;;  %v1722_v17 = vsub.f32 %v1608_v28, %v1719_v23  ;;  %v1723_v16 = vsub.f32 %v1610_v57, %v1719_v23 }
 0x5d5   :  { %v1623_v57 = vcombine.high %v2401_v44, %v2401_v44 }
 0x5d6   :  { %v1724_v43 = vmul.f32 %v1720_v40, %v1720_v40  ;;  %v1725_v37 = vmul.f32 %v1721_v59, %v1721_v59  ;;  %v1726_v42 = vmul.f32 %v1722_v17, %v1722_v17  ;;  %v1727_v52 = vmul.f32 %v1723_v16, %v1723_v16 }
 0x5d7   :  { %2402 = vmatprep.mubr.msk.bf16.mxu0 %vm727_vm1, %v1623_v57  ;;  %2403 = vmatprep.mubr.msk.bf16.mxu1 %vm727_vm1, %v1623_v57  ;;  %vm1817_vm1 = vcmp.lt.s32.totalorder %v2695_v31, 64 }
 0x5d8   :  { %v1728_v50 = vsel %vm910_vm9, %v1724_v43, 0.0  ;;  %v1729_v2 = vsel %vm910_vm9, %v1725_v37, 0.0  ;;  %v1731_v13 = vsel %vm910_vm9, %v1726_v42, 0.0  ;;  %v1733_v62 = vsel %vm910_vm9, %v1727_v52, 0.0  ;;  %1661 = vmatmul.mubr.bf16.vlgmr.msra.gmra.mrb[8].mxu0 %v2401_v44  ;;  %1702 = vmatmul.mubr.bf16.vlgmr.msra.gmra.mrb[8].mxu1 %v2401_v44 }
 0x5d9   :  { %v1730_v54 = vadd.f32 %v1729_v2, %v1728_v50  ;;  %2237 = vmatprep.mubr.bf16.mxu0 %v3641_v7  ;;  %2278 = vmatprep.mubr.bf16.mxu1 %v3641_v7  ;;  %v2089_v7 = vrot.slane %v3408_v12, %v2638_v11  ;;  %v1928_v50 = vrot.slane %v3420_v63, %v2638_v11 }
 0x5db   :  { %v1732_v32 = vadd.f32 %v1731_v13, %v1730_v54  ;;  %v1828_v54 = vrot.slane %v3403_v9, %v2638_v11  ;;  %v2101_v13 = vrot.slane %v3408_v12, %v2651_v19 }
 0x5dd   :  { %v1734_v24 = vadd.f32 %v1733_v62, %v1732_v32  ;;  %v3444_v62 = vld [vmem:[%s3609_s1 + $0x42] ss:$8 sm:$0xf] }
 0x5de   :  { %v1788_v58 = vrot.slane %v3444_v62, %v2634_v10 }
 0x5df   :  { %1735 = vadd.xlane.f32.xlu1 %v1734_v24  ;;  %v3449_v24 = vld [vmem:[%s3609_s1 + $0x60] ss:$8 sm:$0xf] }
 0x5f0   :  { %1754 = vperm.xlu1 %2464, %v1751_v51  }
 0x66c   :  { %v1736_v55 = vpop.xlane.xlu1 %1735 }
 0x66d   :  { %v1737_v60 = vmul.f32 0.001953125, %v1736_v55 }
 0x66f   :  { %v1739_v36 = vadd.f32 1e-05, %v1737_v60 }
 0x670   :  { %v1755_v1 = vpop.permute.xlu1 %1754 }
 0x671   :  { %2467 = vrsqrt.f32 %v1739_v36 }
 0x67b   :  { %v2468_v34 = vpop.eup %2467 }
 0x67c   :  { %v1741_v39 = vmul.f32 %v2468_v34, %v1738_v6 }
 0x67e   :  { %1744 = vperm.xlu0 %2463, %v1741_v39  }
 0x6fd   :  { %v1745_v25 = vpop.permute.xlu0 %1744 }
 0x6fe   :  { %v1747_v53 = vmul.f32 %v1745_v25, %v1720_v40  ;;  %v1748_v46 = vmul.f32 %v1745_v25, %v1721_v59  ;;  %v1749_v38 = vmul.f32 %v1745_v25, %v1722_v17  ;;  %v1750_v14 = vmul.f32 %v1745_v25, %v1723_v16 }
 0x6ff   :  { %v1932_v17 = vrot.slane %v3420_v63, %v2634_v10  ;;  %v2058_v25 = vrot.slane %v3449_v24, %v2638_v11 }
 0x700   :  { %v1757_v20 = vadd.f32 %v1755_v1, %v1747_v53  ;;  %v1758_v22 = vadd.f32 %v1755_v1, %v1748_v46  ;;  %v1759_v29 = vadd.f32 %v1755_v1, %v1749_v38  ;;  %v1760_v47 = vadd.f32 %v1755_v1, %v1750_v14  ;;  %v3464_v53 = vld [vmem:[%s3609_s1 + $0x44] ss:$8 sm:$0xf]  ;;  %v3471_v14 = vld [vmem:[%s3609_s1 + $0x62] ss:$8 sm:$0xf] }
 0x702   :  { %v1761_v30 = vmax.f32 %v1757_v20, 0.0  ;;  %v1762_v56 = vmax.f32 %v1758_v22, 0.0  ;;  %v1763_v4 = vmax.f32 %v1759_v29, 0.0  ;;  %v1764_v5 = vmax.f32 %v1760_v47, 0.0 }
 0x703   :  { %v1888_v22 = vrot.slane %v3464_v53, %v2634_v10  ;;  %v2132_v29 = vrot.slane %v3471_v14, %v2638_v11 }
 0x704   :  { %v1988_v18 = vmul.f32 %v1971_v15, %v1761_v30  ;;  %v1989_v35 = vmul.f32 %v1975_v26, %v1762_v56  ;;  %v1990_v48 = vmul.f32 %v1979_v3, %v1763_v4  ;;  %v1991_v49 = vmul.f32 %v1983_v41, %v1764_v5  ;;  %1811 = vrot.lane.b32.xlu1 %v1762_v56, %s2488_s10 }
 0x705   :  { %v2350_v61 = vrot.slane %v1761_v30, 4  ;;  %v2351_v8 = vrot.slane %v1762_v56, 4  ;;  %v2352_v27 = vrot.slane %v1763_v4, 4  ;;  %v2353_v28 = vrot.slane %v1764_v5, 4  ;;  %1809 = vrot.lane.b32.xlu0 %v1761_v30, %s2488_s10 }
 0x706   :  { %1992 = vst [vmem:[#allocation2 + $0x40] sm:$0xf] %v1988_v18  ;;  %1993 = vst [vmem:[#allocation2 + $0x48] sm:$0xf] %v1989_v35  ;;  %v2093_v18 = vrot.slane %v3408_v12, %v2634_v10  ;;  %v2097_v35 = vrot.slane %v3408_v12, %v2655_v21  ;;  %v1940_v12 = vrot.slane %v3420_v63, %v2651_v19 }
 0x707   :  { %1994 = vst [vmem:[#allocation2 + $0x50] sm:$0xf] %v1990_v48  ;;  %1995 = vst [vmem:[#allocation2 + $0x58] sm:$0xf] %v1991_v49 }
 0x708   :  { %2358 = vst [vmem:[%s3613_s14] sm:$0xf0] %v2350_v61  ;;  %2359 = vst [vmem:[%s3613_s14 + $0x8] sm:$0xf0] %v2351_v8  ;;  %1911 = vrot.lane.b32.xlu1 %v1762_v56, %s2489_s15  ;;  %v1784_v8 = vrot.slane %v3444_v62, %v2638_v11 }
 0x709   :  { %2360 = vst [vmem:[%s3613_s14 + $0x10] sm:$0xf0] %v2352_v27  ;;  %2361 = vst [vmem:[%s3613_s14 + $0x18] sm:$0xf0] %v2353_v28  ;;  %1909 = vrot.lane.b32.xlu0 %v1761_v30, %s2489_s15  ;;  %v2070_v27 = vrot.slane %v3449_v24, %v2651_v19 }
 0x70c   :  { %1915 = vrot.lane.b32.xlu1 %v1764_v5, %s2489_s15 }
 0x70d   :  { %1815 = vrot.lane.b32.xlu0 %v1764_v5, %s2488_s10 }
 0x710   :  { %1767 = vrot.lane.b32.xlu1 %v1762_v56, %s2490_s16 }
 0x711   :  { %1765 = vrot.lane.b32.xlu0 %v1761_v30, %s2490_s16 }
 0x714   :  { %1867 = vrot.lane.b32.xlu1 %v1762_v56, %s2491_s17 }
 0x715   :  { %1865 = vrot.lane.b32.xlu0 %v1761_v30, %s2491_s17 }
 0x718   :  { %1813 = vrot.lane.b32.xlu1 %v1763_v4, %s2488_s10 }
 0x719   :  { %1771 = vrot.lane.b32.xlu0 %v1764_v5, %s2490_s16 }
 0x71c   :  { %1913 = vrot.lane.b32.xlu1 %v1763_v4, %s2489_s15 }
 0x71d   :  { %1871 = vrot.lane.b32.xlu0 %v1764_v5, %s2491_s17 }
 0x720   :  { %2000 = vrot.lane.b32.xlu1 %v1763_v4, %s2492_s20 }
 0x721   :  { %1998 = vrot.lane.b32.xlu0 %v1762_v56, %s2492_s20  ;;  %v1836_v56 = vrot.slane %v3403_v9, %v2655_v21 }
 0x724   :  { %1869 = vrot.lane.b32.xlu1 %v1763_v4, %s2491_s17 }
 0x725   :  { %1769 = vrot.lane.b32.xlu0 %v1763_v4, %s2490_s16 }
 0x728   :  { %2002 = vrot.lane.b32.xlu1 %v1764_v5, %s2492_s20  ;;  %v1840_v5 = vrot.slane %v3403_v9, %v2651_v19  ;;  %v1936_v9 = vrot.slane %v3420_v63, %v2655_v21 }
 0x729   :  { %1996 = vrot.lane.b32.xlu0 %v1761_v30, %s2492_s20 }
 0x776   :  { %v3415_v45 = vpop.permute.xlu1 %1811 }
 0x777   :  { %v1810_v0 = vpop.permute.xlu0 %1809 }
 0x778   :  { %v1820_v23 = vsel %vm1817_vm1, %v1810_v0, %v3415_v45 }
 0x779   :  { %v1846_v40 = vmul.f32 %v1832_v33, %v1820_v23  ;;  %v2106_v59 = vmul.f32 %v2089_v7, %v1820_v23 }
 0x77a   :  { %v3428_v16 = vpop.permute.xlu1 %1911 }
 0x77b   :  { %v1854_v43 = vrot.slane %v1846_v40, 4  ;;  %v2114_v37 = vrot.slane %v2106_v59, 4  ;;  %v1910_v42 = vpop.permute.xlu0 %1909  ;;  %v1884_v59 = vrot.slane %v3464_v53, %v2638_v11 }
 0x77c   :  { %v1920_v52 = vsel %vm1917_vm5, %v1910_v42, %v3428_v16 }
 0x77d   :  { %1862 = vst [vmem:[#allocation2 + $0x8] sm:$0xf0] %v1854_v43  ;;  %2122 = vst [vmem:[#allocation2 + $0x60] sm:$0xf0] %v2114_v37  ;;  %v1946_v2 = vmul.f32 %v1932_v17, %v1920_v52 }
 0x77e   :  { %v3439_v32 = vpop.permute.xlu1 %1915  ;;  %v3519_v17 = vld [vmem:[%s3609_s1 + $0x47] ss:$8 sm:$0xf] }
 0x77f   :  { %v1954_v51 = vrot.slane %v1946_v2, 4  ;;  %v1921_v55 = vsel %vm1917_vm5, %v3439_v32, %v1910_v42  ;;  %v1816_v60 = vpop.permute.xlu0 %1815 }
 0x780   :  { %v1945_v36 = vmul.f32 %v1928_v50, %v1921_v55  ;;  %v1821_v6 = vsel %vm1817_vm1, %v1816_v60, %v1810_v0 }
 0x781   :  { %1962 = vst [vmem:[#allocation2 + $0x28] sm:$0xf0] %v1954_v51  ;;  %v1845_v34 = vmul.f32 %v1828_v54, %v1821_v6  ;;  %v2109_v39 = vmul.f32 %v2101_v13, %v1821_v6 }
 0x782   :  { %v1953_v46 = vrot.slane %v1945_v36, 4  ;;  %v3466_v38 = vpop.permute.xlu1 %1767 }
 0x783   :  { %v1853_v1 = vrot.slane %v1845_v34, 4  ;;  %v2117_v15 = vrot.slane %v2109_v39, 4  ;;  %v1766_v26 = vpop.permute.xlu0 %1765 }
 0x784   :  { %1961 = vst [vmem:[#allocation2 + $0x20] sm:$0xf0] %v1953_v46  ;;  %v1776_v3 = vsel %vm1773_vm6, %v1766_v26, %v3466_v38 }
 0x785   :  { %1861 = vst [vmem:[#allocation2] sm:$0xf0] %v1853_v1  ;;  %2125 = vst [vmem:[#allocation2 + $0x78] sm:$0xf0] %v2117_v15  ;;  %v1802_v41 = vmul.f32 %v1788_v58, %v1776_v3  ;;  %v2075_v20 = vmul.f32 %v2058_v25, %v1776_v3 }
 0x786   :  { %v3481_v47 = vpop.permute.xlu1 %1867 }
 0x787   :  { %1806 = vst [vmem:[#allocation2 + $0x8] sm:$0xf] %v1802_v41  ;;  %2079 = vst [vmem:[#allocation2 + $0x60] sm:$0xf] %v2075_v20  ;;  %v1866_v30 = vpop.permute.xlu0 %1865  ;;  %v1896_v41 = vrot.slane %v3464_v53, %v2651_v19  ;;  %v2136_v20 = vrot.slane %v3471_v14, %v2634_v10 }
 0x788   :  { %v1876_v4 = vsel %vm1873_vm7, %v1866_v30, %v3481_v47 }
 0x789   :  { %v1902_v48 = vmul.f32 %v1888_v22, %v1876_v4  ;;  %v2149_v49 = vmul.f32 %v2132_v29, %v1876_v4  ;;  %v2140_v22 = vrot.slane %v3471_v14, %v2655_v21  ;;  %v1796_v4 = vrot.slane %v3444_v62, %v2651_v19 }
 0x78a   :  { %v1814_v61 = vpop.permute.xlu1 %1813 }
 0x78b   :  { %1906 = vst [vmem:[#allocation2 + $0x28] sm:$0xf] %v1902_v48  ;;  %2153 = vst [vmem:[#allocation2 + $0x80] sm:$0xf] %v2149_v49  ;;  %v1818_v28 = vsel %vm1817_vm1, %v1814_v61, %v1816_v60  ;;  %v1819_v44 = vsel %vm1817_vm1, %v3415_v45, %v1814_v61  ;;  %v3503_v57 = vpop.permute.xlu0 %1771  ;;  %v2144_v45 = vrot.slane %v3471_v14, %v2651_v19 }
 0x78c   :  { %v1847_v33 = vmul.f32 %v1836_v56, %v1819_v44  ;;  %v1848_v7 = vmul.f32 %v1840_v5, %v1818_v28  ;;  %v2107_v0 = vmul.f32 %v2093_v18, %v1819_v44  ;;  %v2108_v23 = vmul.f32 %v2097_v35, %v1818_v28 }
 0x78d   :  { %v1777_v40 = vsel %vm1773_vm6, %v3503_v57, %v1766_v26  ;;  %v1892_v26 = vrot.slane %v3464_v53, %v2655_v21  ;;  %v1792_v56 = vrot.slane %v3444_v62, %v2655_v21  ;;  %v2062_v5 = vrot.slane %v3449_v24, %v2634_v10 }
 0x78e   :  { %v1855_v63 = vrot.slane %v1847_v33, 4  ;;  %v1856_v43 = vrot.slane %v1848_v7, 4  ;;  %v2115_v37 = vrot.slane %v2107_v0, 4  ;;  %v2116_v42 = vrot.slane %v2108_v23, 4  ;;  %v1914_v52 = vpop.permute.xlu1 %1913  ;;  %v2158_v25 = vld [vmem:[#allocation2 + $0x8] sm:$0xff]  ;;  %v2169_v31 = vld [vmem:[#allocation2 + $0x60] sm:$0xff] }
 0x78f   :  { %v1801_v50 = vmul.f32 %v1784_v8, %v1777_v40  ;;  %v2078_v2 = vmul.f32 %v2070_v27, %v1777_v40  ;;  %v1918_v54 = vsel %vm1917_vm5, %v1914_v52, %v3439_v32  ;;  %v1919_v13 = vsel %vm1917_vm5, %v3428_v16, %v1914_v52  ;;  %v1872_v51 = vpop.permute.xlu0 %1871 }
 0x790   :  { %1863 = vst [vmem:[#allocation2 + $0x10] sm:$0xf0] %v1855_v63  ;;  %1864 = vst [vmem:[#allocation2 + $0x18] sm:$0xf0] %v1856_v43  ;;  %v1947_v55 = vmul.f32 %v1936_v9, %v1919_v13  ;;  %v1948_v60 = vmul.f32 %v1940_v12, %v1918_v54  ;;  %v1877_v36 = vsel %vm1873_vm7, %v1872_v51, %v1866_v30 }
 0x791   :  { %2123 = vst [vmem:[#allocation2 + $0x68] sm:$0xf0] %v2115_v37  ;;  %2124 = vst [vmem:[#allocation2 + $0x70] sm:$0xf0] %v2116_v42  ;;  %v1901_v6 = vmul.f32 %v1884_v59, %v1877_v36  ;;  %v2152_v34 = vmul.f32 %v2144_v45, %v1877_v36  ;;  %v2019_v32 = vrot.slane %v3519_v17, %v2634_v10 }
 0x792   :  { %1805 = vst [vmem:[#allocation2] sm:$0xf] %v1801_v50  ;;  %2082 = vst [vmem:[#allocation2 + $0x78] sm:$0xf] %v2078_v2  ;;  %v1955_v16 = vrot.slane %v1947_v55, 4  ;;  %v1956_v39 = vrot.slane %v1948_v60, 4  ;;  %v2001_v58 = vpop.permute.xlu1 %2000  ;;  %v2066_v53 = vrot.slane %v3449_v24, %v2655_v21  ;;  %v2023_v49 = vrot.slane %v3519_v17, %v2655_v21 }
 0x793   :  { %v2162_v46 = vld [vmem:[#allocation2 + $0x28] sm:$0xff]  ;;  %1905 = vst [vmem:[#allocation2 + $0x20] sm:$0xf] %v1901_v6  ;;  %2156 = vst [vmem:[#allocation2 + $0x98] sm:$0xf] %v2152_v34  ;;  %v1999_v1 = vpop.permute.xlu0 %1998  ;;  %v2027_v28 = vrot.slane %v3519_v17, %v2651_v19 }
 0x794   :  { %v2178_v15 = vpack.c.bf16 %v2162_v46, %v2158_v25  ;;  %1963 = vst [vmem:[#allocation2 + $0x30] sm:$0xf0] %v1955_v16  ;;  %1964 = vst [vmem:[#allocation2 + $0x38] sm:$0xf0] %v1956_v39  ;;  %v2006_v3 = vsel %vm2004_vm8, %v1999_v1, %v2001_v58  ;;  %v2173_v6 = vld [vmem:[#allocation2 + $0x80] sm:$0xf] }
 0x795   :  { %v2033_v29 = vmul.f32 %v2019_v32, %v2006_v3  ;;  %v2185_v3 = vpack.c.bf16 %v2173_v6, %v2173_v6 }
 0x796   :  { %2205 = vmatprep.subr.bf16.mxu0 %v2178_v15  ;;  %v1870_v30 = vpop.permute.xlu1 %1869 }
 0x797   :  { %v2041_v18 = vrot.slane %v2033_v29, 4  ;;  %v1874_v35 = vsel %vm1873_vm7, %v1870_v30, %v1872_v51  ;;  %v1875_v14 = vsel %vm1873_vm7, %v3481_v47, %v1870_v30  ;;  %v1770_v48 = vpop.permute.xlu0 %1769  ;;  %v2015_v47 = vrot.slane %v3519_v17, %v2638_v11  ;;  %v2189_v30 = vld [vmem:[%s3620_s7] sm:$0x3] }
 0x798   :  { %v1903_v61 = vmul.f32 %v1892_v26, %v1875_v14  ;;  %v1904_v62 = vmul.f32 %v1896_v41, %v1874_v35  ;;  %v2150_v8 = vmul.f32 %v2136_v20, %v1875_v14  ;;  %v2151_v27 = vmul.f32 %v2140_v22, %v1874_v35 }
 0x799   :  { %2049 = vst [vmem:[#allocation2 + $0x48] sm:$0xf0] %v2041_v18  ;;  %v1774_v10 = vsel %vm1773_vm6, %v1770_v48, %v3503_v57  ;;  %v1775_v24 = vsel %vm1773_vm6, %v3466_v38, %v1770_v48  ;;  %v2157_v57 = vld [vmem:[#allocation2] sm:$0xff]  ;;  %v2172_v60 = vld [vmem:[#allocation2 + $0x78] sm:$0xff]  ;;  %v2194_v22 = vsel %vm1435_vm3, %v2185_v3, 0 }
 0x79a   :  { %1907 = vst [vmem:[#allocation2 + $0x30] sm:$0xf] %v1903_v61  ;;  %1908 = vst [vmem:[#allocation2 + $0x38] sm:$0xf] %v1904_v62  ;;  %v1803_v21 = vmul.f32 %v1792_v56, %v1775_v24  ;;  %v1804_v44 = vmul.f32 %v1796_v4, %v1774_v10  ;;  %v2076_v9 = vmul.f32 %v2062_v5, %v1775_v24  ;;  %v2003_v33 = vpop.permute.xlu1 %2002  ;;  %v2161_v7 = vld [vmem:[#allocation2 + $0x20] sm:$0xff] }
 0x79b   :  { %2154 = vst [vmem:[#allocation2 + $0x88] sm:$0xf] %v2150_v8  ;;  %2155 = vst [vmem:[#allocation2 + $0x90] sm:$0xf] %v2151_v27  ;;  %v2077_v12 = vmul.f32 %v2066_v53, %v1774_v10  ;;  %v2005_v38 = vsel %vm2004_vm8, %v2001_v58, %v2003_v33  ;;  %v1997_v0 = vpop.permute.xlu0 %1996  ;;  %v2177_v23 = vpack.c.bf16 %v2161_v7, %v2157_v57  ;;  %v2176_v36 = vld [vmem:[#allocation2 + $0x98] sm:$0xf] }
 0x79c   :  { %1807 = vst [vmem:[#allocation2 + $0x10] sm:$0xf] %v1803_v21  ;;  %1808 = vst [vmem:[#allocation2 + $0x18] sm:$0xf] %v1804_v44  ;;  %v2034_v11 = vmul.f32 %v2023_v49, %v2005_v38  ;;  %v2007_v19 = vsel %vm2004_vm8, %v1997_v0, %v1999_v1  ;;  %v2008_v40 = vsel %vm2004_vm8, %v2003_v33, %v1997_v0 }
 0x79d   :  { %2080 = vst [vmem:[#allocation2 + $0x68] sm:$0xf] %v2076_v9  ;;  %2081 = vst [vmem:[#allocation2 + $0x70] sm:$0xf] %v2077_v12  ;;  %v2032_v59 = vmul.f32 %v2015_v47, %v2007_v19  ;;  %v2035_v45 = vmul.f32 %v2027_v28, %v2008_v40  ;;  %2206 = vmatpush1.bf16.msra.mxu0 %v2177_v23  ;;  %v2188_v41 = vpack.c.bf16 %v2176_v36, %v2176_v36 }
 0x79e   :  { %v2042_v17 = vrot.slane %v2034_v11, 4 }
 0x79f   :  { %v2040_v63 = vrot.slane %v2032_v59, 4  ;;  %v2043_v43 = vrot.slane %v2035_v45, 4 }
 0x7a0   :  { %2050 = vst [vmem:[#allocation2 + $0x50] sm:$0xf0] %v2042_v17  ;;  %v2166_v52 = vld [vmem:[#allocation2 + $0x48] sm:$0xff] }
 0x7a1   :  { %2048 = vst [vmem:[#allocation2 + $0x40] sm:$0xf0] %v2040_v63  ;;  %2051 = vst [vmem:[#allocation2 + $0x58] sm:$0xf0] %v2043_v43  ;;  %v2164_v37 = vld [vmem:[#allocation2 + $0x38] sm:$0xff]  ;;  %v2163_v42 = vld [vmem:[#allocation2 + $0x30] sm:$0xff] }
 0x7a2   :  { %v2174_v34 = vld [vmem:[#allocation2 + $0x88] sm:$0xf]  ;;  %v2175_v46 = vld [vmem:[#allocation2 + $0x90] sm:$0xf] }
 0x7a3   :  { %v2160_v2 = vld [vmem:[#allocation2 + $0x18] sm:$0xff]  ;;  %v2159_v54 = vld [vmem:[#allocation2 + $0x10] sm:$0xff]  ;;  %v2186_v26 = vpack.c.bf16 %v2174_v34, %v2174_v34  ;;  %v2187_v20 = vpack.c.bf16 %v2175_v46, %v2175_v46  ;;  %v2328_v17 = vld [vmem:[%s3621_s13] sm:$0xf] }
 0x7a4   :  { %v2170_v50 = vld [vmem:[#allocation2 + $0x68] sm:$0xff]  ;;  %v2180_v51 = vpack.c.bf16 %v2164_v37, %v2160_v2  ;;  %v2179_v55 = vpack.c.bf16 %v2163_v42, %v2159_v54  ;;  %v2171_v16 = vld [vmem:[#allocation2 + $0x70] sm:$0xff] }
 0x7a5   :  { %v2182_v13 = vpack.c.bf16 %v2170_v50, %v2166_v52  ;;  %v2200_v29 = vsel %vm1435_vm3, %v2187_v20, 0  ;;  %v2315_v42 = vld [vmem:[%s3622_s12] sm:$0xf] }
 0x7a6   :  { %2246 = vmatprep.subr.bf16.mxu1 %v2180_v51 }
 0x7a7   :  { %2207 = vmatprep.subr.bf16.mxu0 %v2182_v13  ;;  %2247 = vmatpush1.bf16.msra.mxu1 %v2179_v55  ;;  %v2167_v32 = vld [vmem:[#allocation2 + $0x50] sm:$0xff] }
 0x7a8   :  { %v2165_v39 = vld [vmem:[#allocation2 + $0x40] sm:$0xff]  ;;  %v2168_v58 = vld [vmem:[#allocation2 + $0x58] sm:$0xff]  ;;  %v2183_v25 = vpack.c.bf16 %v2171_v16, %v2167_v32 }
 0x7a9   :  { %v2181_v1 = vpack.c.bf16 %v2169_v31, %v2165_v39  ;;  %v2184_v15 = vpack.c.bf16 %v2172_v60, %v2168_v58 }
 0x7ab   :  { %2208 = vmatpush1.bf16.msra.mxu0 %v2181_v1  ;;  %2248 = vmatprep.subr.bf16.mxu1 %v2184_v15 }
 0x7ac   :  { %2413 = vmatprep.subr.msk.bf16.mxu0 %vm1435_vm3, %v2186_v26  ;;  %2249 = vmatpush1.bf16.msra.mxu1 %v2183_v25 }
 0x7ad   :  { %2415 = vmatprep.subr.msk.bf16.mxu1 %vm1435_vm3, %v2188_v41 }
 0x7af   :  { %2210 = vmatpush1.bf16.msra.mxu0 %v2194_v22 }
 0x7b0   :  { %2251 = vmatpush1.bf16.msra.mxu1 %v2200_v29 }
 0x7b2   :  { %2414 = vmatmul.mubr.msk.bf16.vlgmr.msra.gmra.mrb[8].mxu0 %vm1431_vm4, %v2189_v30 }
 0x7b3   :  { %2416 = vmatmul.mubr.msk.bf16.vlgmr.msra.gmra.mrb[8].mxu1 %vm1431_vm4, %v2189_v30 }
 0x885   :  { %v2239_v56 = vpop.f32.mrb[8].mxu0 }
 0x886   :  { %v2287_v4 = vsel %vm910_vm9, %v2239_v56, 0.0  ;;  %v2241_v5 = vpop.f32.mrb[9].mxu0  ;;  %v2280_v53 = vpop.f32.mrb[8].mxu1 }
 0x887   :  { %v2288_v18 = vsel %vm910_vm9, %v2241_v5, 0.0  ;;  %v2243_v35 = vpop.f32.mrb[10].mxu0  ;;  %v2282_v14 = vpop.f32.mrb[9].mxu1  ;;  %v2290_v62 = vsel %vm910_vm9, %v2280_v53, 0.0 }
 0x888   :  { %v2289_v48 = vadd.f32 %v2288_v18, %v2287_v4  ;;  %v2244_v49 = vpop.f32.mrb[11].mxu0  ;;  %v2284_v61 = vpop.f32.mrb[10].mxu1  ;;  %v2292_v10 = vsel %vm910_vm9, %v2282_v14, 0.0 }
 0x889   :  { %v2285_v8 = vpop.f32.mrb[11].mxu1 }
 0x88a   :  { %v2291_v27 = vadd.f32 %v2290_v62, %v2289_v48 }
 0x88c   :  { %v2293_v24 = vadd.f32 %v2292_v10, %v2291_v27 }
 0x88e   :  { %2294 = vadd.xlane.f32.xlu0 %v2293_v24 }
 0x91b   :  { %v2295_v47 = vpop.xlane.xlu0 %2294 }
 0x91c   :  { %v2296_v28 = vmul.f32 0.001953125, %v2295_v47 }
 0x91e   :  { %v2297_v21 = vsub.f32 %v2239_v56, %v2296_v28  ;;  %v2298_v44 = vsub.f32 %v2241_v5, %v2296_v28  ;;  %v2299_v9 = vsub.f32 %v2280_v53, %v2296_v28  ;;  %v2300_v12 = vsub.f32 %v2282_v14, %v2296_v28 }
 0x920   :  { %v2301_v33 = vmul.f32 %v2297_v21, %v2297_v21  ;;  %v2302_v57 = vmul.f32 %v2298_v44, %v2298_v44  ;;  %v2303_v7 = vmul.f32 %v2299_v9, %v2299_v9  ;;  %v2304_v38 = vmul.f32 %v2300_v12, %v2300_v12 }
 0x922   :  { %v2305_v0 = vsel %vm910_vm9, %v2301_v33, 0.0  ;;  %v2306_v23 = vsel %vm910_vm9, %v2302_v57, 0.0  ;;  %v2308_v19 = vsel %vm910_vm9, %v2303_v7, 0.0  ;;  %v2310_v59 = vsel %vm910_vm9, %v2304_v38, 0.0 }
 0x923   :  { %v2307_v11 = vadd.f32 %v2306_v23, %v2305_v0 }
 0x925   :  { %v2309_v40 = vadd.f32 %v2308_v19, %v2307_v11 }
 0x927   :  { %v2311_v45 = vadd.f32 %v2310_v59, %v2309_v40 }
 0x929   :  { %2312 = vadd.xlane.f32.xlu1 %v2311_v45 }
 0x93a   :  { %2331 = vperm.xlu1 %2464, %v2328_v17  }
 0x9b6   :  { %v2313_v63 = vpop.xlane.xlu1 %2312 }
 0x9b7   :  { %v2314_v43 = vmul.f32 0.001953125, %v2313_v63 }
 0x9b9   :  { %v2316_v37 = vadd.f32 1e-05, %v2314_v43 }
 0x9ba   :  { %v2332_v31 = vpop.permute.xlu1 %2331 }
 0x9bb   :  { %2469 = vrsqrt.f32 %v2316_v37 }
 0x9c5   :  { %v2470_v52 = vpop.eup %2469 }
 0x9c6   :  { %v2318_v50 = vmul.f32 %v2470_v52, %v2315_v42 }
 0x9c8   :  { %2321 = vperm.xlu0 %2463, %v2318_v50  }
 0xa47   :  { %v2322_v2 = vpop.permute.xlu0 %2321 }
 0xa48   :  { %v2324_v54 = vmul.f32 %v2322_v2, %v2297_v21  ;;  %v2325_v13 = vmul.f32 %v2322_v2, %v2298_v44  ;;  %v2326_v51 = vmul.f32 %v2322_v2, %v2299_v9  ;;  %v2327_v55 = vmul.f32 %v2322_v2, %v2300_v12 }
 0xa4a   :  { %v2334_v60 = vadd.f32 %v2332_v31, %v2324_v54  ;;  %v2335_v36 = vadd.f32 %v2332_v31, %v2325_v13  ;;  %v2336_v6 = vadd.f32 %v2332_v31, %v2326_v51  ;;  %v2337_v34 = vadd.f32 %v2332_v31, %v2327_v55 }
 0xa4c   :  { %v2338_v32 = vmax.f32 %v2334_v60, 0.0  ;;  %v2339_v16 = vmax.f32 %v2335_v36, 0.0  ;;  %v2340_v39 = vmax.f32 %v2336_v6, 0.0  ;;  %v2341_v58 = vmax.f32 %v2337_v34, 0.0 }
 0xa4e   :  { %2362 = vst [vmem:[%s3613_s14 + $0x20] sm:$0xf] %v2338_v32  ;;  %2363 = vst [vmem:[%s3613_s14 + $0x28] sm:$0xf] %v2339_v16 }
 0xa4f   :  { %2364 = vst [vmem:[%s3613_s14 + $0x30] sm:$0xf] %v2340_v39  ;;  %2365 = vst [vmem:[%s3613_s14 + $0x38] sm:$0xf] %v2341_v58 }

// kernel: d3_forward.2
= control target key start
LH: loop header
LB: loop body
LE: loop exit
PB: predicated region body
PF: predicated region fallthrough
CT: control target
= control target key end

     0   :  { %19 = vsyncpa [#allocation4], 0  ;;  %s3306_s0 = inlined_call_operand.vmem [shape: f32[4,512], index: 0, kind: input, shape index: {}]   ;;  %s3307_s1 = inlined_call_operand.vmem [shape: f32[27,512], index: 1, kind: input, shape index: {}]   ;;  %s3308_s2 = inlined_call_operand.vmem [shape: bf16[4,36], index: 2, kind: input, shape index: {}]   ;;  %s3309_s3 = inlined_call_operand.vmem [shape: bf16[4,36], index: 3, kind: input, shape index: {}]   ;;  %s3310_s4 = inlined_call_operand.vmem [shape: bf16[4,36], index: 4, kind: input, shape index: {}]   ;;  %s3311_s5 = inlined_call_operand.hbm [shape: bf16[4,36], index: 5, kind: input, shape index: {}]   ;;  %s3312_s6 = inlined_call_operand.hbm [shape: bf16[4,36], index: 6, kind: input, shape index: {}]   ;;  %s3313_s7 = inlined_call_operand.hbm [shape: bf16[4,36], index: 7, kind: input, shape index: {}]   ;;  %s3314_s8 = inlined_call_operand.vmem [shape: f32[4,1], index: 8, kind: input, shape index: {}]   ;;  %s3315_s9 = inlined_call_operand.vmem [shape: f32[4,1], index: 9, kind: input, shape index: {}]   ;;  %s3316_s10 = inlined_call_operand.vmem [shape: f32[4,1], index: 10, kind: input, shape index: {}]   ;;  %s3317_s11 = inlined_call_operand.vmem [shape: f32[4,1], index: 11, kind: input, shape index: {}]   ;;  %s3318_s12 = inlined_call_operand.vmem [shape: f32[4,1], index: 12, kind: input, shape index: {}]   ;;  %s3319_s13 = inlined_call_operand.vmem [shape: f32[4,1], index: 13, kind: input, shape index: {}]   ;;  %s3320_s14 = inlined_call_operand.vmem [shape: f32[12,512], index: 14, kind: output, shape index: {}]  }
   0x1   :  { %20 = vsyncpa [#allocation6], 0  ;;  %s2375_s29 = smov [#allocation5]   ;;  %s2376_s15 = smov [#allocation3]  }
   0x2   :  { %s47_s30 = sshll.u32 %s2375_s29, 4  ;;  %s37_s16 = sshll.u32 %s2376_s15, 4  ;;  %s48_s30 = int_to_ptr.vmem [resolvable:$true] %s47_s30  ;;  %s38_s16 = int_to_ptr.vmem [resolvable:$true] %s37_s16 }
   0x3   :  { %s2305_s19 = scalar_lea.hbm %s3312_s6, 32 }
   0x4   :  { %p2306_p0 = scmp.ne.s32.totalorder %s3312_s6, %s2305_s19  ;;  %p2309_p1 = scmp.lt.u32.totalorder %s2305_s19, %s3312_s6 }
   0x6   :  { %p2311_p2 = pnand %p2309_p1, %p2306_p0 }
   0x8   :  { %2314 = shalt.err (!%p2311_p2)
}
   0x9   :  { %s2315_s24 = scalar_lea.vmem %s48_s30, 32  ;;  %p2320_p4 = scmp.lt.s32.totalorder %s48_s30, %s48_s30 }
   0xa   :  { %p2316_p3 = scmp.ne.s32.totalorder %s48_s30, %s2315_s24  ;;  %p2321_p5 = scmp.lt.s32.totalorder %s2315_s24, %s2315_s24 }
   0xc   :  { %p2322_p6 = por %p2321_p5, %p2320_p4 }
   0xe   :  { %p2323_p7 = pnand %p2322_p6, %p2316_p3 }
  0x10   :  { %2326 = shalt.err (!%p2323_p7)
}
  0x11   :  { %50 = dma.hbm_to_vmem [thread:$0]  %s3312_s6, 32, %s48_s30, [#allocation6]  }
  0x12   :  { %s2327_s29 = scalar_lea.hbm %s3311_s5, 32 }
  0x13   :  { %p2328_p8 = scmp.ne.s32.totalorder %s3311_s5, %s2327_s29  ;;  %p2331_p9 = scmp.lt.u32.totalorder %s2327_s29, %s3311_s5 }
  0x15   :  { %p2333_p10 = pnand %p2331_p9, %p2328_p8 }
  0x17   :  { %2336 = shalt.err (!%p2333_p10)
}
  0x18   :  { %s2337_s20 = scalar_lea.vmem %s38_s16, 32  ;;  %p2342_p12 = scmp.lt.s32.totalorder %s38_s16, %s38_s16 }
  0x19   :  { %p2338_p11 = scmp.ne.s32.totalorder %s38_s16, %s2337_s20  ;;  %p2343_p13 = scmp.lt.s32.totalorder %s2337_s20, %s2337_s20 }
  0x1b   :  { %p2344_p0 = por %p2343_p13, %p2342_p12 }
  0x1d   :  { %p2345_p1 = pnand %p2344_p0, %p2338_p11 }
  0x1f   :  { %2348 = shalt.err (!%p2345_p1)
}
  0x20   :  { %40 = dma.hbm_to_vmem [thread:$0]  %s3311_s5, 32, %s38_s16, [#allocation4]  }
  0x21   :  { %s2377_s21 = smov [#allocation7]   ;;  %s2349_s25 = scalar_lea.hbm %s3313_s7, 32 }
  0x22   :  { %s57_s22 = sshll.u32 %s2377_s21, 4  ;;  %p2350_p2 = scmp.ne.s32.totalorder %s3313_s7, %s2349_s25  ;;  %s58_s22 = int_to_ptr.vmem [resolvable:$true] %s57_s22 }
  0x23   :  { %p2353_p3 = scmp.lt.u32.totalorder %s2349_s25, %s3313_s7 }
  0x25   :  { %p2355_p4 = pnand %p2353_p3, %p2350_p2 }
  0x27   :  { %2358 = shalt.err (!%p2355_p4)
}
  0x28   :  { %s2359_s15 = scalar_lea.vmem %s58_s22, 32  ;;  %p2364_p6 = scmp.lt.s32.totalorder %s58_s22, %s58_s22 }
  0x29   :  { %p2360_p5 = scmp.ne.s32.totalorder %s58_s22, %s2359_s15  ;;  %p2365_p7 = scmp.lt.s32.totalorder %s2359_s15, %s2359_s15 }
  0x2b   :  { %p2366_p8 = por %p2365_p7, %p2364_p6 }
  0x2d   :  { %p2367_p9 = pnand %p2366_p8, %p2360_p5 }
  0x2f   :  { %2370 = shalt.err (!%p2367_p9)
}
  0x30   :  { %60 = dma.hbm_to_vmem [thread:$0]  %s3313_s7, 32, %s58_s22, [#allocation6]  }
  0x31   :  { %2371 = dma.done.wait [#allocation4], 32  }
  0x32   :  { %2372 = vsyncadd [#allocation4], 4294967264 }
  0x33   :  { %2373 = dma.done.wait [#allocation6], 64  }
  0x34   :  { %2374 = vsyncadd [#allocation6], 4294967232  ;;  %v83_v0 = vld [vmem:[%s3306_s0] sm:$0xff]  ;;  %s2378_s19 = smov 1   ;;  %s2379_s20 = smov 16   ;;  %v84_v2 = vld [vmem:[%s3306_s0 + $0x8] sm:$0xff]  ;;  %v99_v3 = vlaneseq }
  0x35   :  { %236 = vrot.lane.b32.xlu1 %v83_v0, %s2378_s19  ;;  %136 = vrot.lane.b32.xlu0 %v83_v0, %s2379_s20  ;;  %v87_v1 = vcombine.high %v83_v0, %v83_v0  ;;  %v88_v4 = vcombine.high %v84_v2, %v84_v2  ;;  %s2380_s7 = smov 17   ;;  %v2199_v8 = vld [vmem:[%s3307_s1 + $0x4] ss:$8 sm:$0xf]  ;;  %s2381_s22 = smov 15   ;;  %v2386_v21 = vmov 0  }
  0x36   :  { %v109_v5 = vshrl.u32 %v99_v3, 7  ;;  %s2382_s23 = smov 127   ;;  %s2383_s24 = smov 112   ;;  %609 = vmatprep.mubr.bf16.mxu0 %v2386_v21  ;;  %650 = vmatprep.mubr.bf16.mxu1 %v2386_v21  ;;  %v2544_v22 = vand.u32 127, %v99_v3  ;;  %vm564_vm8 = vcmask 1041408   ;;  %vm560_vm9 = vcmask 293888  }
  0x37   :  { %s2384_s25 = smov 113   ;;  %s2385_s26 = smov 111   ;;  %2295 = vset.pattern.permute.xlu0 %v2386_v21  ;;  %2296 = vset.pattern.permute.xlu1 %v2386_v21  ;;  %v2549_v23 = vld [vmem:[%s3307_s1 + $0x3] ss:$8 sm:$0xf]  ;;  %vm746_vm10 = vcmask 1043456  }
  0x38   :  { %v2520_v6 = vsub.s32 1, %v109_v5  ;;  %v2522_v7 = vsub.s32 0, %v109_v5  ;;  %v2533_v14 = vsub.s32 2, %v109_v5  ;;  %v2535_v15 = vsub.s32 3, %v109_v5  ;;  %s2388_s6 = smov 32   ;;  %s2389_s30 = smov 30  }
  0x39   :  { %238 = vrot.lane.b32.xlu1 %v87_v1, %s2378_s19  ;;  %138 = vrot.lane.b32.xlu0 %v87_v1, %s2379_s20  ;;  %v2196_v24 = vld [vmem:[%s3307_s1 + $0x1] ss:$8 sm:$0xf]  ;;  %vm244_vm0 = vcmp.lt.s32.totalorder %v2544_v22, 1  ;;  %vm144_vm1 = vcmp.lt.s32.totalorder %v2544_v22, 16  ;;  %vm101_vm2 = vcmp.lt.s32.totalorder %v2544_v22, 17 }
  0x3a   :  { %v298_v9 = vrot.slane %v2199_v8, %v2522_v7  ;;  %v302_v10 = vrot.slane %v2199_v8, %v2520_v6  ;;  %v306_v16 = vrot.slane %v2199_v8, %v2533_v14  ;;  %v310_v17 = vrot.slane %v2199_v8, %v2535_v15  ;;  %v2569_v37 = vld [vmem:[%s3307_s1] ss:$8 sm:$0xf]  ;;  %v2581_v47 = vld [vmem:[%s3307_s1 + $0x2] ss:$8 sm:$0xf] }
  0x3b   :  { %v259_v27 = vrot.slane %v2549_v23, %v2520_v6  ;;  %v159_v28 = vrot.slane %v2196_v24, %v2520_v6  ;;  %v255_v35 = vrot.slane %v2549_v23, %v2522_v7  ;;  %v155_v36 = vrot.slane %v2196_v24, %v2522_v7  ;;  %s2391_s21 = smov 126   ;;  %s2392_s0 = smov 96  }
  0x3c   :  { %v311_v11 = vcombine.low %v298_v9, %v302_v10  ;;  %v312_v18 = vcombine.low %v306_v16, %v310_v17  ;;  %v115_v46 = vrot.slane %v2569_v37, %v2520_v6  ;;  %vm200_vm3 = vcmp.lt.s32.totalorder %v2544_v22, 15  ;;  %s2396_s29 = smov 4   ;;  %s2399_s16 = smov 124  }
  0x3d   :  { %242 = vrot.lane.b32.xlu1 %v88_v4, %s2378_s19  ;;  %142 = vrot.lane.b32.xlu0 %v88_v4, %s2379_s20  ;;  %v215_v54 = vrot.slane %v2581_v47, %v2520_v6  ;;  %v163_v59 = vrot.slane %v2196_v24, %v2533_v14  ;;  %v167_v60 = vrot.slane %v2196_v24, %v2535_v15  ;;  %vm335_vm4 = vcmp.lt.s32.totalorder %v2544_v22, 127 }
  0x3e   :  { %v315_v12 = vmul.f32 %v311_v11, %v83_v0  ;;  %v316_v19 = vmul.f32 %v312_v18, %v84_v2  ;;  %v111_v61 = vrot.slane %v2569_v37, %v2522_v7  ;;  %v211_v10 = vrot.slane %v2581_v47, %v2522_v7  ;;  %v2618_v11 = vld [vmem:[%s3307_s1 + $0x5] ss:$8 sm:$0xf] }
  0x3f   :  { %vm435_vm5 = vcmp.lt.s32.totalorder %v2544_v22, 112  ;;  %vm391_vm6 = vcmp.lt.s32.totalorder %v2544_v22, 113  ;;  %vm491_vm7 = vcmp.lt.s32.totalorder %v2544_v22, 111  ;;  %vm854_vm11 = vcmp.lt.s32.totalorder %v2544_v22, 32 }
  0x40   :  { %v319_v13 = vcombine.high %v315_v12, %v315_v12  ;;  %323 = vst [vmem:[#allocation2 + $0x40] sm:$0xf] %v315_v12  ;;  %325 = vst [vmem:[#allocation2 + $0x50] sm:$0xf] %v316_v19  ;;  %v320_v20 = vcombine.high %v316_v19, %v316_v19  ;;  %vm810_vm12 = vcmp.lt.s32.totalorder %v2544_v22, 34  ;;  %vm910_vm13 = vcmp.lt.s32.totalorder %v2544_v22, 30 }
  0x41   :  { %93 = vrot.lane.b32.xlu1 %v87_v1, %s2380_s7  ;;  %91 = vrot.lane.b32.xlu0 %v83_v0, %s2380_s7  ;;  %vm954_vm14 = vcmp.lt.s32.totalorder %v2544_v22, 2  ;;  %vm1041_vm15 = vcmp.lt.s32.totalorder %v2544_v22, 126 }
  0x42   :  { %324 = vst [vmem:[#allocation2 + $0x48] sm:$0xf] %v319_v13  ;;  %326 = vst [vmem:[#allocation2 + $0x58] sm:$0xf] %v320_v20 }
  0x45   :  { %194 = vrot.lane.b32.xlu1 %v87_v1, %s2381_s22  ;;  %192 = vrot.lane.b32.xlu0 %v83_v0, %s2381_s22 }
  0x49   :  { %140 = vrot.lane.b32.xlu1 %v84_v2, %s2379_s20  ;;  %97 = vrot.lane.b32.xlu0 %v88_v4, %s2380_s7  ;;  %s2387_s20 = smov 34  }
  0x4d   :  { %240 = vrot.lane.b32.xlu1 %v84_v2, %s2378_s19  ;;  %198 = vrot.lane.b32.xlu0 %v88_v4, %s2381_s22 }
  0x51   :  { %331 = vrot.lane.b32.xlu1 %v84_v2, %s2382_s23  ;;  %329 = vrot.lane.b32.xlu0 %v87_v1, %s2382_s23 }
  0x55   :  { %431 = vrot.lane.b32.xlu1 %v84_v2, %s2383_s24  ;;  %429 = vrot.lane.b32.xlu0 %v87_v1, %s2383_s24 }
  0x59   :  { %196 = vrot.lane.b32.xlu1 %v84_v2, %s2381_s22  ;;  %95 = vrot.lane.b32.xlu0 %v84_v2, %s2380_s7  ;;  %s2390_s7 = smov 2  }
  0x5d   :  { %427 = vrot.lane.b32.xlu1 %v83_v0, %s2383_s24  ;;  %327 = vrot.lane.b32.xlu0 %v83_v0, %s2382_s23 }
  0x61   :  { %387 = vrot.lane.b32.xlu1 %v84_v2, %s2384_s25  ;;  %385 = vrot.lane.b32.xlu0 %v87_v1, %s2384_s25 }
  0x65   :  { %383 = vrot.lane.b32.xlu1 %v83_v0, %s2384_s25  ;;  %333 = vrot.lane.b32.xlu0 %v88_v4, %s2382_s23 }
  0x69   :  { %389 = vrot.lane.b32.xlu1 %v88_v4, %s2384_s25  ;;  %433 = vrot.lane.b32.xlu0 %v88_v4, %s2383_s24  ;;  %s2393_s24 = smov 98  }
  0x6d   :  { %485 = vrot.lane.b32.xlu1 %v87_v1, %s2385_s26  ;;  %483 = vrot.lane.b32.xlu0 %v83_v0, %s2385_s26  ;;  %v263_v0 = vrot.slane %v2549_v23, %v2533_v14 }
  0x71   :  { %489 = vrot.lane.b32.xlu1 %v88_v4, %s2385_s26  ;;  %487 = vrot.lane.b32.xlu0 %v84_v2, %s2385_s26  ;;  %v267_v4 = vrot.slane %v2549_v23, %v2535_v15 }
  0xa7   :  { %v237_v25 = vpop.permute.xlu1 %236  ;;  %v137_v26 = vpop.permute.xlu0 %136 }
  0xab   :  { %v239_v29 = vpop.permute.xlu1 %238  ;;  %v139_v30 = vpop.permute.xlu0 %138 }
  0xac   :  { %v247_v31 = vsel %vm244_vm0, %v237_v25, %v239_v29  ;;  %v147_v32 = vsel %vm144_vm1, %v137_v26, %v139_v30 }
  0xad   :  { %v273_v33 = vmul.f32 %v259_v27, %v247_v31  ;;  %v173_v34 = vmul.f32 %v159_v28, %v147_v32 }
  0xaf   :  { %v281_v38 = vrot.slane %v273_v33, 4  ;;  %v181_v39 = vrot.slane %v173_v34, 4  ;;  %v243_v40 = vpop.permute.xlu1 %242  ;;  %v143_v41 = vpop.permute.xlu0 %142 }
  0xb0   :  { %v248_v42 = vsel %vm244_vm0, %v243_v40, %v237_v25  ;;  %v148_v43 = vsel %vm144_vm1, %v143_v41, %v137_v26  ;;  %v350_v26 = vrot.slane %v2618_v11, %v2520_v6 }
  0xb1   :  { %289 = vst [vmem:[#allocation2 + $0x28] sm:$0xf0] %v281_v38  ;;  %189 = vst [vmem:[#allocation2 + $0x8] sm:$0xf0] %v181_v39  ;;  %v272_v44 = vmul.f32 %v255_v35, %v248_v42  ;;  %v172_v45 = vmul.f32 %v155_v36, %v148_v43  ;;  %v219_v43 = vrot.slane %v2581_v47, %v2533_v14 }
  0xb3   :  { %v280_v48 = vrot.slane %v272_v44, 4  ;;  %v180_v49 = vrot.slane %v172_v45, 4  ;;  %v2583_v50 = vpop.permute.xlu1 %93  ;;  %v92_v51 = vpop.permute.xlu0 %91  ;;  %v223_v45 = vrot.slane %v2581_v47, %v2535_v15 }
  0xb4   :  { %v104_v52 = vsel %vm101_vm2, %v92_v51, %v2583_v50 }
  0xb5   :  { %288 = vst [vmem:[#allocation2 + $0x20] sm:$0xf0] %v280_v48  ;;  %188 = vst [vmem:[#allocation2] sm:$0xf0] %v180_v49  ;;  %v129_v53 = vmul.f32 %v115_v46, %v104_v52  ;;  %v119_v46 = vrot.slane %v2569_v37, %v2533_v14  ;;  %v123_v48 = vrot.slane %v2569_v37, %v2535_v15 }
  0xb7   :  { %133 = vst [vmem:[#allocation2 + $0x8] sm:$0xf] %v129_v53  ;;  %v2591_v55 = vpop.permute.xlu1 %194  ;;  %v193_v56 = vpop.permute.xlu0 %192 }
  0xb8   :  { %v203_v57 = vsel %vm200_vm3, %v193_v56, %v2591_v55 }
  0xb9   :  { %v229_v58 = vmul.f32 %v215_v54, %v203_v57 }
  0xbb   :  { %233 = vst [vmem:[#allocation2 + $0x28] sm:$0xf] %v229_v58  ;;  %v141_v62 = vpop.permute.xlu1 %140  ;;  %v2600_v63 = vpop.permute.xlu0 %97  ;;  %v346_v58 = vrot.slane %v2618_v11, %v2522_v7 }
  0xbc   :  { %v145_v1 = vsel %vm144_vm1, %v141_v62, %v143_v41  ;;  %v146_v2 = vsel %vm144_vm1, %v139_v30, %v141_v62  ;;  %v105_v3 = vsel %vm101_vm2, %v2600_v63, %v92_v51  ;;  %v2632_v30 = vld [vmem:[%s3307_s1 + $0x7] ss:$8 sm:$0xf]  ;;  %vm1097_vm1 = vcmp.lt.s32.totalorder %v2544_v22, 98 }
  0xbd   :  { %v174_v5 = vmul.f32 %v163_v59, %v146_v2  ;;  %v175_v8 = vmul.f32 %v167_v60, %v145_v1  ;;  %v128_v9 = vmul.f32 %v111_v61, %v105_v3  ;;  %v450_v38 = vrot.slane %v2632_v30, %v2520_v6  ;;  %v2201_v2 = vld [vmem:[%s3307_s1 + $0x6] ss:$8 sm:$0xf] }
  0xbe   :  { %v528_v27 = vld [vmem:[#allocation2 + $0x8] sm:$0xff]  ;;  %v446_v57 = vrot.slane %v2632_v30, %v2522_v7 }
  0xbf   :  { %v182_v12 = vrot.slane %v174_v5, 4  ;;  %v183_v13 = vrot.slane %v175_v8, 4  ;;  %132 = vst [vmem:[#allocation2] sm:$0xf] %v128_v9  ;;  %v241_v16 = vpop.permute.xlu1 %240  ;;  %v199_v17 = vpop.permute.xlu0 %198  ;;  %v406_v8 = vrot.slane %v2201_v2, %v2520_v6 }
  0xc0   :  { %v245_v18 = vsel %vm244_vm0, %v241_v16, %v243_v40  ;;  %v246_v19 = vsel %vm244_vm0, %v239_v29, %v241_v16  ;;  %v204_v20 = vsel %vm200_vm3, %v199_v17, %v193_v56  ;;  %vm1141_vm0 = vcmp.lt.s32.totalorder %v2544_v22, 96 }
  0xc1   :  { %190 = vst [vmem:[#allocation2 + $0x10] sm:$0xf0] %v182_v12  ;;  %191 = vst [vmem:[#allocation2 + $0x18] sm:$0xf0] %v183_v13  ;;  %v274_v23 = vmul.f32 %v263_v0, %v246_v19  ;;  %v275_v24 = vmul.f32 %v267_v4, %v245_v18  ;;  %v228_v25 = vmul.f32 %v211_v10, %v204_v20 }
  0xc2   :  { %v532_v28 = vld [vmem:[#allocation2 + $0x28] sm:$0xff]  ;;  %v402_v18 = vrot.slane %v2201_v2, %v2522_v7  ;;  %v354_v19 = vrot.slane %v2618_v11, %v2533_v14  ;;  %v358_v20 = vrot.slane %v2618_v11, %v2535_v15 }
  0xc3   :  { %v282_v29 = vrot.slane %v274_v23, 4  ;;  %v283_v31 = vrot.slane %v275_v24, 4  ;;  %232 = vst [vmem:[#allocation2 + $0x20] sm:$0xf] %v228_v25  ;;  %v2634_v32 = vpop.permute.xlu1 %331  ;;  %v330_v33 = vpop.permute.xlu0 %329  ;;  %v2636_v34 = vpack.c.bf16 %v532_v28, %v528_v27 }
  0xc4   :  { %v337_v35 = vsel %vm335_vm4, %v330_v33, %v2634_v32 }
  0xc5   :  { %290 = vst [vmem:[#allocation2 + $0x30] sm:$0xf0] %v282_v29  ;;  %291 = vst [vmem:[#allocation2 + $0x38] sm:$0xf0] %v283_v31  ;;  %v364_v36 = vmul.f32 %v350_v26, %v337_v35  ;;  %577 = vmatprep.subr.bf16.mxu0 %v2636_v34  ;;  %v410_v31 = vrot.slane %v2201_v2, %v2533_v14  ;;  %v454_v35 = vrot.slane %v2632_v30, %v2533_v14 }
  0xc6   :  { %v527_v49 = vld [vmem:[#allocation2] sm:$0xff] }
  0xc7   :  { %v372_v39 = vrot.slane %v364_v36, 4  ;;  %v2645_v40 = vpop.permute.xlu1 %431  ;;  %v430_v41 = vpop.permute.xlu0 %429 }
  0xc8   :  { %v437_v42 = vsel %vm435_vm5, %v430_v41, %v2645_v40 }
  0xc9   :  { %380 = vst [vmem:[#allocation2 + $0x48] sm:$0xf0] %v372_v39  ;;  %v464_v44 = vmul.f32 %v450_v38, %v437_v42 }
  0xca   :  { %v531_v51 = vld [vmem:[#allocation2 + $0x20] sm:$0xff] }
  0xcb   :  { %v472_v52 = vrot.slane %v464_v44, 4  ;;  %v197_v53 = vpop.permute.xlu1 %196  ;;  %v96_v54 = vpop.permute.xlu0 %95  ;;  %v2658_v56 = vpack.c.bf16 %v531_v51, %v527_v49 }
  0xcc   :  { %v201_v47 = vsel %vm200_vm3, %v197_v53, %v199_v17  ;;  %v202_v37 = vsel %vm200_vm3, %v2591_v55, %v197_v53  ;;  %v102_v59 = vsel %vm101_vm2, %v96_v54, %v2600_v63  ;;  %v103_v60 = vsel %vm101_vm2, %v2583_v50, %v96_v54 }
  0xcd   :  { %480 = vst [vmem:[#allocation2 + $0x68] sm:$0xf0] %v472_v52  ;;  %v230_v61 = vmul.f32 %v219_v43, %v202_v37  ;;  %v231_v62 = vmul.f32 %v223_v45, %v201_v47  ;;  %v130_v0 = vmul.f32 %v119_v46, %v103_v60  ;;  %v131_v1 = vmul.f32 %v123_v48, %v102_v59 }
  0xce   :  { %578 = vmatpush1.bf16.msra.mxu0 %v2658_v56  ;;  %v458_v45 = vrot.slane %v2632_v30, %v2535_v15  ;;  %vm1197_vm2 = vcmp.lt.s32.totalorder %v2544_v22, 94  ;;  %vm1641_vm3 = vcmp.lt.s32.totalorder %v2544_v22, 64 }
  0xcf   :  { %234 = vst [vmem:[#allocation2 + $0x30] sm:$0xf] %v230_v61  ;;  %235 = vst [vmem:[#allocation2 + $0x38] sm:$0xf] %v231_v62  ;;  %v428_v55 = vpop.permute.xlu1 %427  ;;  %v328_v63 = vpop.permute.xlu0 %327 }
  0xd0   :  { %134 = vst [vmem:[#allocation2 + $0x10] sm:$0xf] %v130_v0  ;;  %135 = vst [vmem:[#allocation2 + $0x18] sm:$0xf] %v131_v1  ;;  %v438_v50 = vsel %vm435_vm5, %v428_v55, %v430_v41  ;;  %v338_v3 = vsel %vm335_vm4, %v328_v63, %v330_v33  ;;  %v414_v33 = vrot.slane %v2201_v2, %v2535_v15  ;;  %v536_v59 = vld [vmem:[#allocation2 + $0x48] sm:$0xff] }
  0xd1   :  { %v463_v4 = vmul.f32 %v446_v57, %v438_v50  ;;  %v363_v5 = vmul.f32 %v346_v58, %v338_v3  ;;  %v2203_v41 = vld [vmem:[%s3307_s1 + $0x20] ss:$8 sm:$0xf] }
  0xd2   :  { %v502_v51 = vrot.slane %v2203_v41, %v2522_v7  ;;  %v506_v50 = vrot.slane %v2203_v41, %v2520_v6  ;;  %v510_v3 = vrot.slane %v2203_v41, %v2533_v14 }
  0xd3   :  { %v471_v9 = vrot.slane %v463_v4, 4  ;;  %v371_v10 = vrot.slane %v363_v5, 4  ;;  %v388_v12 = vpop.permute.xlu1 %387  ;;  %v386_v13 = vpop.permute.xlu0 %385 }
  0xd4   :  { %v393_v16 = vsel %vm391_vm6, %v386_v13, %v388_v12 }
  0xd5   :  { %479 = vst [vmem:[#allocation2 + $0x60] sm:$0xf0] %v471_v9  ;;  %379 = vst [vmem:[#allocation2 + $0x40] sm:$0xf0] %v371_v10  ;;  %v420_v17 = vmul.f32 %v406_v8, %v393_v16 }
  0xd6   :  { %v534_v24 = vld [vmem:[#allocation2 + $0x38] sm:$0xff]  ;;  %v533_v29 = vld [vmem:[#allocation2 + $0x30] sm:$0xff] }
  0xd7   :  { %v530_v23 = vld [vmem:[#allocation2 + $0x18] sm:$0xff]  ;;  %v529_v25 = vld [vmem:[#allocation2 + $0x10] sm:$0xff]  ;;  %424 = vst [vmem:[#allocation2 + $0x68] sm:$0xf] %v420_v17  ;;  %v384_v26 = vpop.permute.xlu1 %383  ;;  %v334_v27 = vpop.permute.xlu0 %333 }
  0xd8   :  { %v2692_v28 = vpack.c.bf16 %v534_v24, %v530_v23  ;;  %v394_v36 = vsel %vm391_vm6, %v384_v26, %v386_v13  ;;  %v336_v11 = vsel %vm335_vm4, %v2634_v32, %v334_v27  ;;  %v339_v38 = vsel %vm335_vm4, %v334_v27, %v328_v63 }
  0xd9   :  { %v2705_v39 = vpack.c.bf16 %v533_v29, %v529_v25  ;;  %v419_v42 = vmul.f32 %v402_v18, %v394_v36  ;;  %v365_v43 = vmul.f32 %v354_v19, %v336_v11  ;;  %v366_v44 = vmul.f32 %v358_v20, %v339_v38 }
  0xda   :  { %618 = vmatprep.subr.bf16.mxu1 %v2692_v28  ;;  %v514_v63 = vrot.slane %v2203_v41, %v2535_v15  ;;  %vm1741_vm4 = vcmp.lt.s32.totalorder %v2544_v22, 4 }
  0xdb   :  { %619 = vmatpush1.bf16.msra.mxu1 %v2705_v39  ;;  %423 = vst [vmem:[#allocation2 + $0x60] sm:$0xf] %v419_v42  ;;  %v373_v32 = vrot.slane %v365_v43, 4  ;;  %v374_v46 = vrot.slane %v366_v44, 4  ;;  %v390_v48 = vpop.permute.xlu1 %389  ;;  %v434_v49 = vpop.permute.xlu0 %433  ;;  %v559_v44 = vld [vmem:[%s3308_s2] sm:$0x3] }
  0xdc   :  { %v392_v52 = vsel %vm391_vm6, %v388_v12, %v390_v48  ;;  %v395_v53 = vsel %vm391_vm6, %v390_v48, %v384_v26  ;;  %v436_v30 = vsel %vm435_vm5, %v2645_v40, %v434_v49  ;;  %v439_v54 = vsel %vm435_vm5, %v434_v49, %v428_v55  ;;  %v535_v4 = vld [vmem:[#allocation2 + $0x40] sm:$0xff]  ;;  %s2394_s2 = smov 94  }
  0xdd   :  { %381 = vst [vmem:[#allocation2 + $0x50] sm:$0xf0] %v373_v32  ;;  %382 = vst [vmem:[#allocation2 + $0x58] sm:$0xf0] %v374_v46  ;;  %v421_v57 = vmul.f32 %v410_v31, %v392_v52  ;;  %v422_v58 = vmul.f32 %v414_v33, %v395_v53  ;;  %v465_v47 = vmul.f32 %v454_v35, %v436_v30  ;;  %vm1597_vm5 = vcmp.lt.s32.totalorder %v2544_v22, 68 }
  0xde   :  { %v466_v37 = vmul.f32 %v458_v45, %v439_v54  ;;  %v540_v60 = vld [vmem:[#allocation2 + $0x68] sm:$0xff]  ;;  %vm1697_vm6 = vcmp.lt.s32.totalorder %v2544_v22, 60 }
  0xdf   :  { %425 = vst [vmem:[#allocation2 + $0x70] sm:$0xf] %v421_v57  ;;  %426 = vst [vmem:[#allocation2 + $0x78] sm:$0xf] %v422_v58  ;;  %v473_v61 = vrot.slane %v465_v47, 4  ;;  %v486_v0 = vpop.permute.xlu1 %485  ;;  %v484_v1 = vpop.permute.xlu0 %483  ;;  %v2725_v2 = vpack.c.bf16 %v540_v60, %v536_v59 }
  0xe0   :  { %v474_v62 = vrot.slane %v466_v37, 4  ;;  %v494_v40 = vsel %vm491_vm7, %v484_v1, %v486_v0 }
  0xe1   :  { %481 = vst [vmem:[#allocation2 + $0x70] sm:$0xf0] %v473_v61  ;;  %v519_v55 = vmul.f32 %v502_v51, %v494_v40  ;;  %579 = vmatprep.subr.bf16.mxu0 %v2725_v2 }
  0xe2   :  { %482 = vst [vmem:[#allocation2 + $0x78] sm:$0xf0] %v474_v62  ;;  %v539_v5 = vld [vmem:[#allocation2 + $0x60] sm:$0xff] }
  0xe3   :  { %523 = vst [vmem:[#allocation2 + $0x80] sm:$0xf] %v519_v55  ;;  %v490_v8 = vpop.permute.xlu1 %489  ;;  %v488_v9 = vpop.permute.xlu0 %487  ;;  %v2733_v10 = vpack.c.bf16 %v539_v5, %v535_v4 }
  0xe4   :  { %v495_v12 = vsel %vm491_vm7, %v490_v8, %v484_v1  ;;  %v492_v13 = vsel %vm491_vm7, %v488_v9, %v490_v8  ;;  %v493_v16 = vsel %vm491_vm7, %v486_v0, %v488_v9  ;;  %v538_v20 = vld [vmem:[#allocation2 + $0x58] sm:$0xff]  ;;  %v537_v24 = vld [vmem:[#allocation2 + $0x50] sm:$0xff]  ;;  %vm1828_vm7 = vcmp.lt.s32.totalorder %v2544_v22, 124 }
  0xe5   :  { %v522_v17 = vmul.f32 %v514_v63, %v495_v12  ;;  %v520_v18 = vmul.f32 %v506_v50, %v493_v16  ;;  %v521_v19 = vmul.f32 %v510_v3, %v492_v13  ;;  %580 = vmatpush1.bf16.msra.mxu0 %v2733_v10 }
  0xe7   :  { %526 = vst [vmem:[#allocation2 + $0x98] sm:$0xf] %v522_v17  ;;  %524 = vst [vmem:[#allocation2 + $0x88] sm:$0xf] %v520_v18  ;;  %v788_v17 = vld [vmem:[%s3315_s9] sm:$0xf] }
  0xe8   :  { %525 = vst [vmem:[#allocation2 + $0x90] sm:$0xf] %v521_v19  ;;  %v541_v25 = vld [vmem:[#allocation2 + $0x70] sm:$0xff]  ;;  %s2398_s9 = smov 60  }
  0xe9   :  { %v542_v23 = vld [vmem:[#allocation2 + $0x78] sm:$0xff]  ;;  %v2744_v27 = vpack.c.bf16 %v541_v25, %v537_v24 }
  0xea   :  { %v2742_v26 = vpack.c.bf16 %v542_v23, %v538_v20  ;;  %v543_v29 = vld [vmem:[#allocation2 + $0x80] sm:$0xf]  ;;  %v775_v23 = vld [vmem:[%s3314_s8] sm:$0xf]  ;;  %s2397_s8 = smov 68  }
  0xeb   :  { %v555_v31 = vpack.c.bf16 %v543_v29, %v543_v29  ;;  %v2216_v29 = vld [vmem:[%s3307_s1 + $0x25] ss:$8 sm:$0xf] }
  0xec   :  { %620 = vmatprep.subr.bf16.mxu1 %v2742_v26 }
  0xed   :  { %621 = vmatpush1.bf16.msra.mxu1 %v2744_v27  ;;  %v2757_v42 = vsel %vm564_vm8, %v555_v31, 0 }
  0xee   :  { %v544_v33 = vld [vmem:[#allocation2 + $0x88] sm:$0xf]  ;;  %v546_v35 = vld [vmem:[#allocation2 + $0x98] sm:$0xf] }
  0xef   :  { %v545_v36 = vld [vmem:[#allocation2 + $0x90] sm:$0xf]  ;;  %v2748_v11 = vpack.c.bf16 %v544_v33, %v544_v33  ;;  %v2750_v38 = vpack.c.bf16 %v546_v35, %v546_v35 }
  0xf0   :  { %v557_v41 = vpack.c.bf16 %v545_v36, %v545_v36 }
  0xf1   :  { %2204 = vmatprep.subr.msk.bf16.mxu0 %vm564_vm8, %v2748_v11  ;;  %2206 = vmatprep.subr.msk.bf16.mxu1 %vm564_vm8, %v2750_v38 }
  0xf2   :  { %v2760_v43 = vsel %vm564_vm8, %v557_v41, 0  ;;  %582 = vmatpush1.bf16.msra.mxu0 %v2757_v42 }
  0xf3   :  { %623 = vmatpush1.bf16.msra.mxu1 %v2760_v43  ;;  %663 = vmatprep.subr.bf16.mxu0 %v2636_v34 }
  0xf4   :  { %704 = vmatprep.subr.bf16.mxu1 %v2692_v28 }
  0xf5   :  { %2205 = vmatmul.mubr.msk.bf16.vlgmr.msra.gmra.mrb[0].mxu0 %vm560_vm9, %v559_v44 }
  0xf6   :  { %2207 = vmatmul.mubr.msk.bf16.vlgmr.msra.gmra.mrb[0].mxu1 %vm560_vm9, %v559_v44  ;;  %664 = vmatpush1.bf16.msra.mxu0 %v2658_v56 }
  0xf7   :  { %705 = vmatpush1.bf16.msra.mxu1 %v2705_v39  ;;  %665 = vmatprep.subr.bf16.mxu0 %v2725_v2 }
  0xf8   :  { %706 = vmatprep.subr.bf16.mxu1 %v2742_v26  ;;  %695 = vmatprep.mubr.bf16.mxu0 %v2386_v21 }
  0xf9   :  { %736 = vmatprep.mubr.bf16.mxu1 %v2386_v21 }
  0xfa   :  { %666 = vmatpush1.bf16.msra.mxu0 %v2733_v10 }
  0xfb   :  { %707 = vmatpush1.bf16.msra.mxu1 %v2744_v27  ;;  %2208 = vmatprep.subr.msk.bf16.mxu0 %vm564_vm8, %v2748_v11 }
  0xfc   :  { %2210 = vmatprep.subr.msk.bf16.mxu1 %vm564_vm8, %v2750_v38 }
  0xfe   :  { %668 = vmatpush1.bf16.msra.mxu0 %v2757_v42 }
  0xff   :  { %709 = vmatpush1.bf16.msra.mxu1 %v2760_v43 }
 0x1c8   :  { %v611_v45 = vpop.f32.mrb[0].mxu0 }
 0x1c9   :  { %v652_v32 = vpop.f32.mrb[0].mxu1  ;;  %v747_v46 = vsel %vm746_vm10, %v611_v45, 0.0  ;;  %v613_v48 = vpop.f32.mrb[1].mxu0 }
 0x1ca   :  { %v654_v49 = vpop.f32.mrb[1].mxu1  ;;  %v750_v51 = vsel %vm746_vm10, %v652_v32, 0.0  ;;  %v748_v52 = vsel %vm746_vm10, %v613_v48, 0.0  ;;  %v615_v53 = vpop.f32.mrb[2].mxu0 }
 0x1cb   :  { %v656_v30 = vpop.f32.mrb[2].mxu1  ;;  %v749_v54 = vadd.f32 %v748_v52, %v747_v46  ;;  %v616_v57 = vpop.f32.mrb[3].mxu0  ;;  %v752_v37 = vsel %vm746_vm10, %v654_v49, 0.0  ;;  %v1020_v52 = vrot.slane %v2216_v29, %v2535_v15  ;;  %v1016_v53 = vrot.slane %v2216_v29, %v2533_v14 }
 0x1cc   :  { %v657_v58 = vpop.f32.mrb[3].mxu1 }
 0x1cd   :  { %v751_v47 = vadd.f32 %v750_v51, %v749_v54 }
 0x1cf   :  { %v753_v59 = vadd.f32 %v752_v37, %v751_v47 }
 0x1d1   :  { %754 = vadd.xlane.f32.xlu0 %v753_v59 }
 0x25e   :  { %v755_v60 = vpop.xlane.xlu0 %754 }
 0x25f   :  { %v756_v61 = vmul.f32 0.001953125, %v755_v60 }
 0x261   :  { %v757_v62 = vsub.f32 %v611_v45, %v756_v61  ;;  %v758_v0 = vsub.f32 %v613_v48, %v756_v61  ;;  %v759_v1 = vsub.f32 %v652_v32, %v756_v61  ;;  %v760_v40 = vsub.f32 %v654_v49, %v756_v61  ;;  %v659_v61 = vld [vmem:[%s3309_s3] sm:$0x3] }
 0x262   :  { %v1012_v45 = vrot.slane %v2216_v29, %v2520_v6  ;;  %v1008_v32 = vrot.slane %v2216_v29, %v2522_v7  ;;  %2209 = vmatmul.mubr.msk.bf16.vlgmr.msra.gmra.mrb[4].mxu0 %vm560_vm9, %v659_v61  ;;  %2211 = vmatmul.mubr.msk.bf16.vlgmr.msra.gmra.mrb[4].mxu1 %vm560_vm9, %v659_v61 }
 0x263   :  { %v761_v55 = vmul.f32 %v757_v62, %v757_v62  ;;  %v762_v63 = vmul.f32 %v758_v0, %v758_v0  ;;  %v763_v50 = vmul.f32 %v759_v1, %v759_v1  ;;  %v764_v3 = vmul.f32 %v760_v40, %v760_v40  ;;  %1314 = vmatprep.mubr.bf16.mxu0 %v2386_v21 }
 0x264   :  { %1355 = vmatprep.mubr.bf16.mxu1 %v2386_v21 }
 0x265   :  { %v765_v4 = vsel %vm746_vm10, %v761_v55, 0.0  ;;  %v766_v5 = vsel %vm746_vm10, %v762_v63, 0.0  ;;  %v768_v9 = vsel %vm746_vm10, %v763_v50, 0.0  ;;  %v770_v13 = vsel %vm746_vm10, %v764_v3, 0.0 }
 0x266   :  { %v767_v8 = vadd.f32 %v766_v5, %v765_v4  ;;  %v2212_v55 = vld [vmem:[%s3307_s1 + $0x21] ss:$8 sm:$0xf] }
 0x267   :  { %v821_v5 = vrot.slane %v2212_v55, %v2522_v7 }
 0x268   :  { %v769_v12 = vadd.f32 %v768_v9, %v767_v8  ;;  %v2856_v8 = vld [vmem:[%s3307_s1 + $0x23] ss:$8 sm:$0xf]  ;;  %v2861_v9 = vld [vmem:[%s3307_s1 + $0x24] ss:$8 sm:$0xf] }
 0x26a   :  { %v771_v16 = vadd.f32 %v770_v13, %v769_v12 }
 0x26c   :  { %772 = vadd.xlane.f32.xlu1 %v771_v16 }
 0x27d   :  { %791 = vperm.xlu1 %2296, %v788_v17  }
 0x2f9   :  { %v773_v18 = vpop.xlane.xlu1 %772 }
 0x2fa   :  { %v774_v19 = vmul.f32 0.001953125, %v773_v18 }
 0x2fc   :  { %v776_v20 = vadd.f32 1e-05, %v774_v19  ;;  %v921_v19 = vrot.slane %v2856_v8, %v2522_v7 }
 0x2fd   :  { %v792_v33 = vpop.permute.xlu1 %791 }
 0x2fe   :  { %2299 = vrsqrt.f32 %v776_v20  ;;  %v969_v20 = vrot.slane %v2861_v9, %v2520_v6 }
 0x308   :  { %v2300_v24 = vpop.eup %2299 }
 0x309   :  { %v778_v25 = vmul.f32 %v2300_v24, %v775_v23 }
 0x30b   :  { %781 = vperm.xlu0 %2295, %v778_v25  }
 0x38a   :  { %v782_v31 = vpop.permute.xlu0 %781 }
 0x38b   :  { %v784_v35 = vmul.f32 %v782_v31, %v757_v62  ;;  %v785_v36 = vmul.f32 %v782_v31, %v758_v0  ;;  %v786_v41 = vmul.f32 %v782_v31, %v759_v1  ;;  %v787_v44 = vmul.f32 %v782_v31, %v760_v40  ;;  %v2836_v62 = vld [vmem:[%s3307_s1 + $0x22] ss:$8 sm:$0xf] }
 0x38c   :  { %v869_v40 = vrot.slane %v2836_v62, %v2520_v6 }
 0x38d   :  { %v794_v46 = vadd.f32 %v792_v33, %v784_v35  ;;  %v795_v48 = vadd.f32 %v792_v33, %v785_v36  ;;  %v796_v49 = vadd.f32 %v792_v33, %v786_v41  ;;  %v797_v51 = vadd.f32 %v792_v33, %v787_v44 }
 0x38e   :  { %v865_v35 = vrot.slane %v2836_v62, %v2522_v7 }
 0x38f   :  { %v798_v30 = vmax.f32 %v794_v46, 0.0  ;;  %v799_v54 = vmax.f32 %v795_v48, 0.0  ;;  %v800_v57 = vmax.f32 %v796_v49, 0.0  ;;  %v801_v58 = vmax.f32 %v797_v51, 0.0 }
 0x390   :  { %v965_v46 = vrot.slane %v2861_v9, %v2522_v7 }
 0x391   :  { %2166 = vst [vmem:[%s3320_s14] sm:$0xf] %v798_v30  ;;  %2167 = vst [vmem:[%s3320_s14 + $0x8] sm:$0xf] %v799_v54  ;;  %802 = vrot.lane.b32.xlu0 %v798_v30, %s2387_s20  ;;  %846 = vrot.lane.b32.xlu1 %v798_v30, %s2388_s6  ;;  %v1026_v47 = vmul.f32 %v1012_v45, %v799_v54  ;;  %v1025_v37 = vmul.f32 %v1008_v32, %v798_v30 }
 0x392   :  { %2168 = vst [vmem:[%s3320_s14 + $0x10] sm:$0xf] %v800_v57  ;;  %2169 = vst [vmem:[%s3320_s14 + $0x18] sm:$0xf] %v801_v58  ;;  %v1028_v59 = vmul.f32 %v1020_v52, %v801_v58  ;;  %v1027_v60 = vmul.f32 %v1016_v53, %v800_v57 }
 0x393   :  { %1030 = vst [vmem:[#allocation2 + $0x48] sm:$0xf] %v1026_v47  ;;  %1029 = vst [vmem:[#allocation2 + $0x40] sm:$0xf] %v1025_v37 }
 0x394   :  { %1032 = vst [vmem:[#allocation2 + $0x58] sm:$0xf] %v1028_v59  ;;  %1031 = vst [vmem:[#allocation2 + $0x50] sm:$0xf] %v1027_v60 }
 0x395   :  { %902 = vrot.lane.b32.xlu0 %v798_v30, %s2389_s30  ;;  %848 = vrot.lane.b32.xlu1 %v799_v54, %s2388_s6 }
 0x399   :  { %808 = vrot.lane.b32.xlu0 %v801_v58, %s2387_s20  ;;  %946 = vrot.lane.b32.xlu1 %v798_v30, %s2390_s7 }
 0x39d   :  { %908 = vrot.lane.b32.xlu0 %v801_v58, %s2389_s30  ;;  %948 = vrot.lane.b32.xlu1 %v799_v54, %s2390_s7 }
 0x3a1   :  { %1035 = vrot.lane.b32.xlu0 %v799_v54, %s2391_s21  ;;  %852 = vrot.lane.b32.xlu1 %v801_v58, %s2388_s6 }
 0x3a5   :  { %1135 = vrot.lane.b32.xlu0 %v799_v54, %s2392_s0  ;;  %952 = vrot.lane.b32.xlu1 %v801_v58, %s2390_s7 }
 0x3a9   :  { %806 = vrot.lane.b32.xlu0 %v800_v57, %s2387_s20  ;;  %804 = vrot.lane.b32.xlu1 %v799_v54, %s2387_s20 }
 0x3ad   :  { %1033 = vrot.lane.b32.xlu0 %v798_v30, %s2391_s21  ;;  %904 = vrot.lane.b32.xlu1 %v799_v54, %s2389_s30 }
 0x3b1   :  { %1091 = vrot.lane.b32.xlu0 %v799_v54, %s2393_s24  ;;  %850 = vrot.lane.b32.xlu1 %v800_v57, %s2388_s6 }
 0x3b5   :  { %1039 = vrot.lane.b32.xlu0 %v801_v58, %s2391_s21  ;;  %950 = vrot.lane.b32.xlu1 %v800_v57, %s2390_s7 }
 0x3b9   :  { %1139 = vrot.lane.b32.xlu0 %v801_v58, %s2392_s0  ;;  %1037 = vrot.lane.b32.xlu1 %v800_v57, %s2391_s21 }
 0x3bd   :  { %1189 = vrot.lane.b32.xlu0 %v798_v30, %s2394_s2  ;;  %1137 = vrot.lane.b32.xlu1 %v800_v57, %s2392_s0 }
 0x3c1   :  { %1193 = vrot.lane.b32.xlu0 %v800_v57, %s2394_s2  ;;  %906 = vrot.lane.b32.xlu1 %v800_v57, %s2389_s30 }
 0x3c5   :  { %1133 = vrot.lane.b32.xlu1 %v798_v30, %s2392_s0 }
 0x3c9   :  { %1093 = vrot.lane.b32.xlu1 %v800_v57, %s2393_s24  ;;  %v829_v57 = vrot.slane %v2212_v55, %v2533_v14 }
 0x3cd   :  { %1089 = vrot.lane.b32.xlu1 %v798_v30, %s2393_s24  ;;  %v833_v30 = vrot.slane %v2212_v55, %v2535_v15 }
 0x3d1   :  { %1095 = vrot.lane.b32.xlu1 %v801_v58, %s2393_s24 }
 0x3d5   :  { %1191 = vrot.lane.b32.xlu1 %v799_v54, %s2394_s2  ;;  %v825_v54 = vrot.slane %v2212_v55, %v2520_v6 }
 0x3d9   :  { %1195 = vrot.lane.b32.xlu1 %v801_v58, %s2394_s2  ;;  %v2900_v58 = vld [vmem:[%s3307_s1 + $0x26] ss:$8 sm:$0xf] }
 0x403   :  { %v803_v0 = vpop.permute.xlu0 %802  ;;  %v847_v1 = vpop.permute.xlu1 %846 }
 0x407   :  { %v2844_v63 = vpop.permute.xlu0 %902  ;;  %v2846_v50 = vpop.permute.xlu1 %848 }
 0x408   :  { %v857_v3 = vsel %vm854_vm11, %v847_v1, %v2846_v50 }
 0x409   :  { %v883_v4 = vmul.f32 %v869_v40, %v857_v3  ;;  %v1052_v40 = vrot.slane %v2900_v58, %v2522_v7 }
 0x40b   :  { %v891_v12 = vrot.slane %v883_v4, 4  ;;  %v809_v13 = vpop.permute.xlu0 %808  ;;  %v947_v16 = vpop.permute.xlu1 %946 }
 0x40c   :  { %v814_v17 = vsel %vm810_vm12, %v809_v13, %v803_v0 }
 0x40d   :  { %899 = vst [vmem:[#allocation2 + $0x8] sm:$0xf0] %v891_v12  ;;  %v838_v18 = vmul.f32 %v821_v5, %v814_v17  ;;  %v925_v5 = vrot.slane %v2856_v8, %v2520_v6 }
 0x40f   :  { %842 = vst [vmem:[#allocation2] sm:$0xf] %v838_v18  ;;  %v2871_v23 = vpop.permute.xlu0 %908  ;;  %v2873_v24 = vpop.permute.xlu1 %948 }
 0x410   :  { %v914_v25 = vsel %vm910_vm13, %v2871_v23, %v2844_v63  ;;  %v957_v29 = vsel %vm954_vm14, %v947_v16, %v2873_v24 }
 0x411   :  { %v938_v31 = vmul.f32 %v921_v19, %v914_v25  ;;  %v983_v33 = vmul.f32 %v969_v20, %v957_v29  ;;  %v873_v19 = vrot.slane %v2836_v62, %v2533_v14  ;;  %v877_v20 = vrot.slane %v2836_v62, %v2535_v15 }
 0x412   :  { %v973_v62 = vrot.slane %v2861_v9, %v2533_v14 }
 0x413   :  { %942 = vst [vmem:[#allocation2 + $0x20] sm:$0xf] %v938_v31  ;;  %v991_v36 = vrot.slane %v983_v33, 4  ;;  %v2884_v41 = vpop.permute.xlu0 %1035  ;;  %v853_v44 = vpop.permute.xlu1 %852 }
 0x414   :  { %v858_v45 = vsel %vm854_vm11, %v853_v44, %v847_v1 }
 0x415   :  { %999 = vst [vmem:[#allocation2 + $0x28] sm:$0xf0] %v991_v36  ;;  %v882_v32 = vmul.f32 %v865_v35, %v858_v45  ;;  %v1064_v35 = vrot.slane %v2900_v58, %v2535_v15 }
 0x417   :  { %v890_v48 = vrot.slane %v882_v32, 4  ;;  %v2890_v49 = vpop.permute.xlu0 %1135  ;;  %v953_v51 = vpop.permute.xlu1 %952  ;;  %v977_v32 = vrot.slane %v2861_v9, %v2535_v15 }
 0x418   :  { %v958_v52 = vsel %vm954_vm14, %v953_v51, %v947_v16 }
 0x419   :  { %898 = vst [vmem:[#allocation2] sm:$0xf0] %v890_v48  ;;  %v982_v53 = vmul.f32 %v965_v46, %v958_v52 }
 0x41b   :  { %v990_v47 = vrot.slane %v982_v53, 4  ;;  %v807_v37 = vpop.permute.xlu0 %806  ;;  %v805_v59 = vpop.permute.xlu1 %804 }
 0x41c   :  { %v811_v60 = vsel %vm810_vm12, %v807_v37, %v809_v13  ;;  %v812_v61 = vsel %vm810_vm12, %v805_v59, %v807_v37  ;;  %v813_v1 = vsel %vm810_vm12, %v803_v0, %v805_v59  ;;  %v1060_v37 = vrot.slane %v2900_v58, %v2533_v14 }
 0x41d   :  { %998 = vst [vmem:[#allocation2 + $0x20] sm:$0xf0] %v990_v47  ;;  %v841_v55 = vmul.f32 %v833_v30, %v811_v60  ;;  %v839_v3 = vmul.f32 %v825_v54, %v813_v1  ;;  %v840_v4 = vmul.f32 %v829_v57, %v812_v61  ;;  %v1056_v54 = vrot.slane %v2900_v58, %v2520_v6 }
 0x41f   :  { %845 = vst [vmem:[#allocation2 + $0x18] sm:$0xf] %v841_v55  ;;  %843 = vst [vmem:[#allocation2 + $0x8] sm:$0xf] %v839_v3  ;;  %v1034_v12 = vpop.permute.xlu0 %1033  ;;  %v2913_v13 = vpop.permute.xlu1 %904 }
 0x420   :  { %844 = vst [vmem:[#allocation2 + $0x10] sm:$0xf] %v840_v4  ;;  %v1044_v0 = vsel %vm1041_vm15, %v1034_v12, %v2884_v41  ;;  %v913_v16 = vsel %vm910_vm13, %v2844_v63, %v2913_v13  ;;  %v1233_v4 = vld [vmem:[#allocation2] sm:$0xff] }
 0x421   :  { %v1069_v17 = vmul.f32 %v1052_v40, %v1044_v0  ;;  %v939_v18 = vmul.f32 %v925_v5, %v913_v16 }
 0x423   :  { %v1077_v25 = vrot.slane %v1069_v17, 4  ;;  %943 = vst [vmem:[#allocation2 + $0x28] sm:$0xf] %v939_v18  ;;  %v2926_v29 = vpop.permute.xlu0 %1091  ;;  %v851_v31 = vpop.permute.xlu1 %850 }
 0x424   :  { %v855_v33 = vsel %vm854_vm11, %v851_v31, %v853_v44  ;;  %v856_v63 = vsel %vm854_vm11, %v2846_v50, %v851_v31  ;;  %v1237_v59 = vld [vmem:[#allocation2 + $0x20] sm:$0xff] }
 0x425   :  { %1085 = vst [vmem:[#allocation2 + $0x40] sm:$0xf0] %v1077_v25  ;;  %v884_v36 = vmul.f32 %v873_v19, %v856_v63  ;;  %v885_v45 = vmul.f32 %v877_v20, %v855_v33 }
 0x426   :  { %v1234_v60 = vld [vmem:[#allocation2 + $0x8] sm:$0xff] }
 0x427   :  { %v892_v46 = vrot.slane %v884_v36, 4  ;;  %v893_v48 = vrot.slane %v885_v45, 4  ;;  %v1040_v52 = vpop.permute.xlu0 %1039  ;;  %v951_v44 = vpop.permute.xlu1 %950  ;;  %v929_v36 = vrot.slane %v2856_v8, %v2533_v14  ;;  %v933_v45 = vrot.slane %v2856_v8, %v2535_v15  ;;  %v2218_v8 = vld [vmem:[%s3307_s1 + $0x27] ss:$8 sm:$0xf] }
 0x428   :  { %v1045_v53 = vsel %vm1041_vm15, %v1040_v52, %v1034_v12  ;;  %v955_v50 = vsel %vm954_vm14, %v951_v44, %v953_v51  ;;  %v956_v30 = vsel %vm954_vm14, %v2873_v24, %v951_v44  ;;  %v2219_v51 = vld [vmem:[%s3307_s1 + $0x40] ss:$8 sm:$0xf]  ;;  %v2960_v12 = vpack.c.bf16 %v1237_v59, %v1233_v4 }
 0x429   :  { %900 = vst [vmem:[#allocation2 + $0x10] sm:$0xf0] %v892_v46  ;;  %901 = vst [vmem:[#allocation2 + $0x18] sm:$0xf0] %v893_v48  ;;  %v1072_v9 = vmul.f32 %v1064_v35, %v1045_v53  ;;  %v984_v57 = vmul.f32 %v973_v62, %v956_v30  ;;  %v985_v47 = vmul.f32 %v977_v32, %v955_v50 }
 0x42a   :  { %v1238_v61 = vld [vmem:[#allocation2 + $0x28] sm:$0xff]  ;;  %v1156_v17 = vrot.slane %v2219_v51, %v2520_v6  ;;  %v1160_v18 = vrot.slane %v2219_v51, %v2533_v14  ;;  %v1152_v50 = vrot.slane %v2219_v51, %v2522_v7  ;;  %v1164_v30 = vrot.slane %v2219_v51, %v2535_v15 }
 0x42b   :  { %v1080_v1 = vrot.slane %v1072_v9, 4  ;;  %v992_v24 = vrot.slane %v984_v57, 4  ;;  %v993_v40 = vrot.slane %v985_v47, 4  ;;  %v1038_v55 = vpop.permute.xlu1 %1037  ;;  %v2953_v3 = vpack.c.bf16 %v1238_v61, %v1234_v60  ;;  %v1140_v19 = vpop.permute.xlu0 %1139 }
 0x42c   :  { %v1042_v5 = vsel %vm1041_vm15, %v1038_v55, %v1040_v52  ;;  %v1043_v58 = vsel %vm1041_vm15, %v2884_v41, %v1038_v55  ;;  %v1112_v47 = vrot.slane %v2218_v8, %v2520_v6 }
 0x42d   :  { %1088 = vst [vmem:[#allocation2 + $0x58] sm:$0xf0] %v1080_v1  ;;  %1000 = vst [vmem:[#allocation2 + $0x30] sm:$0xf0] %v992_v24  ;;  %v1070_v0 = vmul.f32 %v1056_v54, %v1043_v58  ;;  %v1071_v16 = vmul.f32 %v1060_v37, %v1042_v5  ;;  %1282 = vmatprep.subr.bf16.mxu0 %v2953_v3 }
 0x42e   :  { %1001 = vst [vmem:[#allocation2 + $0x38] sm:$0xf0] %v993_v40  ;;  %1283 = vmatpush1.bf16.msra.mxu0 %v2960_v12 }
 0x42f   :  { %v1078_v20 = vrot.slane %v1070_v0, 4  ;;  %v1079_v41 = vrot.slane %v1071_v16, 4  ;;  %v1138_v25 = vpop.permute.xlu1 %1137  ;;  %v1190_v16 = vpop.permute.xlu0 %1189 }
 0x430   :  { %v1142_v31 = vsel %vm1141_vm0, %v1138_v25, %v1140_v19  ;;  %v1143_v33 = vsel %vm1141_vm0, %v2890_v49, %v1138_v25  ;;  %v1236_v1 = vld [vmem:[#allocation2 + $0x18] sm:$0xff]  ;;  %v1235_v40 = vld [vmem:[#allocation2 + $0x10] sm:$0xff] }
 0x431   :  { %1086 = vst [vmem:[#allocation2 + $0x48] sm:$0xf0] %v1078_v20  ;;  %1087 = vst [vmem:[#allocation2 + $0x50] sm:$0xf0] %v1079_v41  ;;  %v1170_v63 = vmul.f32 %v1156_v17, %v1143_v33  ;;  %v1171_v35 = vmul.f32 %v1160_v18, %v1142_v31  ;;  %v1116_v18 = vrot.slane %v2218_v8, %v2533_v14 }
 0x432   :  { %v2220_v20 = vld [vmem:[%s3307_s1 + $0x41] ss:$8 sm:$0xf] }
 0x433   :  { %v1178_v62 = vrot.slane %v1170_v63, 4  ;;  %v1179_v32 = vrot.slane %v1171_v35, 4  ;;  %v907_v46 = vpop.permute.xlu1 %906  ;;  %v1208_v63 = vrot.slane %v2220_v20, %v2522_v7  ;;  %v1212_v35 = vrot.slane %v2220_v20, %v2520_v6 }
 0x434   :  { %v911_v48 = vsel %vm910_vm13, %v907_v46, %v2871_v23  ;;  %v912_v52 = vsel %vm910_vm13, %v2913_v13, %v907_v46 }
 0x435   :  { %1186 = vst [vmem:[#allocation2 + $0x68] sm:$0xf0] %v1178_v62  ;;  %1187 = vst [vmem:[#allocation2 + $0x70] sm:$0xf0] %v1179_v32  ;;  %v940_v44 = vmul.f32 %v929_v36, %v912_v52  ;;  %v941_v53 = vmul.f32 %v933_v45, %v911_v48  ;;  %v1194_v62 = vpop.permute.xlu0 %1193 }
 0x437   :  { %944 = vst [vmem:[#allocation2 + $0x30] sm:$0xf] %v940_v44  ;;  %945 = vst [vmem:[#allocation2 + $0x38] sm:$0xf] %v941_v53  ;;  %v1134_v54 = vpop.permute.xlu1 %1133 }
 0x438   :  { %v1144_v23 = vsel %vm1141_vm0, %v1134_v54, %v2890_v49  ;;  %v1145_v13 = vsel %vm1141_vm0, %v1140_v19, %v1134_v54  ;;  %v1108_v49 = vrot.slane %v2218_v8, %v2522_v7  ;;  %v1120_v19 = vrot.slane %v2218_v8, %v2535_v15  ;;  %v1242_v36 = vld [vmem:[#allocation2 + $0x48] sm:$0xff]  ;;  %v1241_v8 = vld [vmem:[#allocation2 + $0x40] sm:$0xff] }
 0x439   :  { %v1169_v9 = vmul.f32 %v1152_v50, %v1144_v23  ;;  %v1172_v57 = vmul.f32 %v1164_v30, %v1145_v13  ;;  %v1216_v50 = vrot.slane %v2220_v20, %v2533_v14  ;;  %v1220_v30 = vrot.slane %v2220_v20, %v2535_v15 }
 0x43b   :  { %v1177_v37 = vrot.slane %v1169_v9, 4  ;;  %v1180_v59 = vrot.slane %v1172_v57, 4  ;;  %v1094_v60 = vpop.permute.xlu1 %1093 }
 0x43c   :  { %v1099_v61 = vsel %vm1097_vm1, %v2926_v29, %v1094_v60 }
 0x43d   :  { %1185 = vst [vmem:[#allocation2 + $0x60] sm:$0xf0] %v1177_v37  ;;  %1188 = vst [vmem:[#allocation2 + $0x78] sm:$0xf0] %v1180_v59  ;;  %v1126_v51 = vmul.f32 %v1112_v47, %v1099_v61  ;;  %v1244_v59 = vld [vmem:[#allocation2 + $0x58] sm:$0xff]  ;;  %v1243_v61 = vld [vmem:[#allocation2 + $0x50] sm:$0xff] }
 0x43e   :  { %v1240_v24 = vld [vmem:[#allocation2 + $0x38] sm:$0xff]  ;;  %v1239_v55 = vld [vmem:[#allocation2 + $0x30] sm:$0xff] }
 0x43f   :  { %1130 = vst [vmem:[#allocation2 + $0x68] sm:$0xf] %v1126_v51  ;;  %v1090_v4 = vpop.permute.xlu1 %1089  ;;  %v2998_v5 = vpack.c.bf16 %v1240_v24, %v1236_v1  ;;  %v3000_v58 = vpack.c.bf16 %v1239_v55, %v1235_v40 }
 0x440   :  { %v1100_v0 = vsel %vm1097_vm1, %v1090_v4, %v2926_v29 }
 0x441   :  { %v1125_v17 = vmul.f32 %v1108_v49, %v1100_v0  ;;  %1323 = vmatprep.subr.bf16.mxu1 %v2998_v5 }
 0x442   :  { %1324 = vmatpush1.bf16.msra.mxu1 %v3000_v58 }
 0x443   :  { %1129 = vst [vmem:[#allocation2 + $0x60] sm:$0xf] %v1125_v17  ;;  %v1096_v41 = vpop.permute.xlu1 %1095  ;;  %v1266_v17 = vld [vmem:[#allocation5] sm:$0x3] }
 0x444   :  { %v1098_v25 = vsel %vm1097_vm1, %v1094_v60, %v1096_v41  ;;  %v1101_v29 = vsel %vm1097_vm1, %v1096_v41, %v1090_v4 }
 0x445   :  { %v1127_v31 = vmul.f32 %v1116_v18, %v1098_v25  ;;  %v1128_v33 = vmul.f32 %v1120_v19, %v1101_v29 }
 0x446   :  { %v1246_v45 = vld [vmem:[#allocation2 + $0x68] sm:$0xff] }
 0x447   :  { %1131 = vst [vmem:[#allocation2 + $0x70] sm:$0xf] %v1127_v31  ;;  %1132 = vst [vmem:[#allocation2 + $0x78] sm:$0xf] %v1128_v33  ;;  %v1192_v32 = vpop.permute.xlu1 %1191  ;;  %v1258_v46 = vpack.c.bf16 %v1246_v45, %v1242_v36 }
 0x448   :  { %v1199_v48 = vsel %vm1197_vm2, %v1192_v32, %v1194_v62  ;;  %v1200_v52 = vsel %vm1197_vm2, %v1190_v16, %v1192_v32 }
 0x449   :  { %v1225_v44 = vmul.f32 %v1208_v63, %v1200_v52  ;;  %v1226_v53 = vmul.f32 %v1212_v35, %v1199_v48  ;;  %1284 = vmatprep.subr.bf16.mxu0 %v1258_v46 }
 0x44a   :  { %v1245_v54 = vld [vmem:[#allocation2 + $0x60] sm:$0xff] }
 0x44b   :  { %1229 = vst [vmem:[#allocation2 + $0x80] sm:$0xf] %v1225_v44  ;;  %1230 = vst [vmem:[#allocation2 + $0x88] sm:$0xf] %v1226_v53  ;;  %v1196_v23 = vpop.permute.xlu1 %1195  ;;  %v1257_v13 = vpack.c.bf16 %v1245_v54, %v1241_v8  ;;  %v1575_v8 = vld [vmem:[%s3317_s11] sm:$0xf] }
 0x44c   :  { %v1198_v9 = vsel %vm1197_vm2, %v1194_v62, %v1196_v23  ;;  %v1201_v57 = vsel %vm1197_vm2, %v1196_v23, %v1190_v16 }
 0x44d   :  { %v1227_v47 = vmul.f32 %v1216_v50, %v1198_v9  ;;  %v1228_v37 = vmul.f32 %v1220_v30, %v1201_v57  ;;  %1285 = vmatpush1.bf16.msra.mxu0 %v1257_v13  ;;  %v1562_v9 = vld [vmem:[%s3316_s10] sm:$0xf]  ;;  %s2395_s10 = smov 64  }
 0x44e   :  { %v1248_v60 = vld [vmem:[#allocation2 + $0x78] sm:$0xff]  ;;  %v1247_v51 = vld [vmem:[#allocation2 + $0x70] sm:$0xff] }
 0x44f   :  { %1231 = vst [vmem:[#allocation2 + $0x90] sm:$0xf] %v1227_v47  ;;  %1232 = vst [vmem:[#allocation2 + $0x98] sm:$0xf] %v1228_v37  ;;  %v1260_v49 = vpack.c.bf16 %v1248_v60, %v1244_v59  ;;  %v1259_v1 = vpack.c.bf16 %v1247_v51, %v1243_v61 }
 0x450   :  { %v2237_v37 = vld [vmem:[%s3307_s1 + $0x46] ss:$8 sm:$0xf] }
 0x451   :  { %1325 = vmatprep.subr.bf16.mxu1 %v1260_v49 }
 0x452   :  { %1326 = vmatpush1.bf16.msra.mxu1 %v1259_v1  ;;  %v1250_v24 = vld [vmem:[#allocation2 + $0x88] sm:$0xf]  ;;  %v1249_v40 = vld [vmem:[#allocation2 + $0x80] sm:$0xf] }
 0x453   :  { %v1262_v55 = vpack.c.bf16 %v1250_v24, %v1250_v24  ;;  %v1261_v4 = vpack.c.bf16 %v1249_v40, %v1249_v40  ;;  %v1795_v24 = vrot.slane %v2237_v37, %v2522_v7  ;;  %v1799_v40 = vrot.slane %v2237_v37, %v2520_v6 }
 0x455   :  { %2221 = vmatprep.subr.msk.bf16.mxu0 %vm564_vm8, %v1262_v55  ;;  %v1271_v0 = vsel %vm564_vm8, %v1261_v4, 0  ;;  %v1807_v4 = vrot.slane %v2237_v37, %v2535_v15 }
 0x456   :  { %1287 = vmatpush1.bf16.msra.mxu0 %v1271_v0  ;;  %v1252_v16 = vld [vmem:[#allocation2 + $0x98] sm:$0xf]  ;;  %v1251_v18 = vld [vmem:[#allocation2 + $0x90] sm:$0xf] }
 0x457   :  { %1367 = vmatprep.subr.bf16.mxu0 %v2953_v3  ;;  %v1264_v19 = vpack.c.bf16 %v1252_v16, %v1252_v16  ;;  %v1263_v20 = vpack.c.bf16 %v1251_v18, %v1251_v18  ;;  %v1265_v3 = vld [vmem:[#allocation3] sm:$0x3] }
 0x459   :  { %2223 = vmatprep.subr.msk.bf16.mxu1 %vm564_vm8, %v1264_v19  ;;  %2222 = vmatmul.mubr.msk.bf16.vlgmr.msra.gmra.mrb[8].mxu0 %vm560_vm9, %v1266_v17  ;;  %v1277_v41 = vsel %vm564_vm8, %v1263_v20, 0 }
 0x45a   :  { %1328 = vmatpush1.bf16.msra.mxu1 %v1277_v41  ;;  %1368 = vmatpush1.bf16.msra.mxu0 %v2960_v12 }
 0x45b   :  { %1369 = vmatprep.subr.bf16.mxu0 %v1258_v46  ;;  %1408 = vmatprep.subr.bf16.mxu1 %v2998_v5 }
 0x45c   :  { %1399 = vmatprep.mubr.bf16.mxu0 %v2386_v21 }
 0x45d   :  { %2224 = vmatmul.mubr.msk.bf16.vlgmr.msra.gmra.mrb[8].mxu1 %vm560_vm9, %v1266_v17 }
 0x45e   :  { %1370 = vmatpush1.bf16.msra.mxu0 %v1257_v13  ;;  %1409 = vmatpush1.bf16.msra.mxu1 %v3000_v58 }
 0x45f   :  { %2225 = vmatprep.subr.msk.bf16.mxu0 %vm564_vm8, %v1262_v55  ;;  %1410 = vmatprep.subr.bf16.mxu1 %v1260_v49  ;;  %v1803_v55 = vrot.slane %v2237_v37, %v2533_v14 }
 0x460   :  { %1440 = vmatprep.mubr.bf16.mxu1 %v2386_v21 }
 0x462   :  { %1372 = vmatpush1.bf16.msra.mxu0 %v1271_v0  ;;  %1411 = vmatpush1.bf16.msra.mxu1 %v1259_v1 }
 0x463   :  { %2227 = vmatprep.subr.msk.bf16.mxu1 %vm564_vm8, %v1264_v19  ;;  %1452 = vmatprep.subr.bf16.mxu0 %v2636_v34 }
 0x465   :  { %2226 = vmatmul.mubr.msk.bf16.vlgmr.msra.gmra.mrb[4].mxu0 %vm560_vm9, %v1265_v3 }
 0x466   :  { %1413 = vmatpush1.bf16.msra.mxu1 %v1277_v41  ;;  %1453 = vmatpush1.bf16.msra.mxu0 %v2658_v56 }
 0x467   :  { %1454 = vmatprep.subr.bf16.mxu0 %v2725_v2  ;;  %1493 = vmatprep.subr.bf16.mxu1 %v2692_v28 }
 0x468   :  { %1484 = vmatprep.mubr.bf16.mxu0 %v2386_v21 }
 0x469   :  { %2228 = vmatmul.mubr.msk.bf16.vlgmr.msra.gmra.mrb[4].mxu1 %vm560_vm9, %v1265_v3 }
 0x46a   :  { %1455 = vmatpush1.bf16.msra.mxu0 %v2733_v10  ;;  %1494 = vmatpush1.bf16.msra.mxu1 %v2705_v39 }
 0x46b   :  { %2229 = vmatprep.subr.msk.bf16.mxu0 %vm564_vm8, %v2748_v11  ;;  %1495 = vmatprep.subr.bf16.mxu1 %v2742_v26 }
 0x46c   :  { %1525 = vmatprep.mubr.bf16.mxu1 %v2386_v21 }
 0x46e   :  { %1457 = vmatpush1.bf16.msra.mxu0 %v2757_v42  ;;  %1496 = vmatpush1.bf16.msra.mxu1 %v2744_v27 }
 0x46f   :  { %2231 = vmatprep.subr.msk.bf16.mxu1 %vm564_vm8, %v2750_v38 }
 0x472   :  { %1498 = vmatpush1.bf16.msra.mxu1 %v2760_v43 }
 0x538   :  { %v1401_v34 = vpop.f32.mrb[4].mxu0 }
 0x539   :  { %v1534_v56 = vsel %vm746_vm10, %v1401_v34, 0.0  ;;  %v1403_v28 = vpop.f32.mrb[5].mxu0 }
 0x53a   :  { %v1535_v39 = vsel %vm746_vm10, %v1403_v28, 0.0  ;;  %v1405_v2 = vpop.f32.mrb[6].mxu0 }
 0x53b   :  { %v1536_v10 = vadd.f32 %v1535_v39, %v1534_v56  ;;  %v1406_v26 = vpop.f32.mrb[7].mxu0 }
 0x53c   :  { %v1442_v11 = vpop.f32.mrb[4].mxu1 }
 0x53d   :  { %v1537_v12 = vsel %vm746_vm10, %v1442_v11, 0.0  ;;  %v1444_v42 = vpop.f32.mrb[5].mxu1 }
 0x53e   :  { %v1538_v5 = vadd.f32 %v1537_v12, %v1536_v10  ;;  %v1539_v27 = vsel %vm746_vm10, %v1444_v42, 0.0  ;;  %v1446_v58 = vpop.f32.mrb[6].mxu1  ;;  %v745_v12 = vld [vmem:[%s3310_s4] sm:$0x3] }
 0x53f   :  { %v1447_v38 = vpop.f32.mrb[7].mxu1  ;;  %2230 = vmatmul.mubr.msk.bf16.vlgmr.msra.gmra.mrb[8].mxu0 %vm560_vm9, %v745_v12  ;;  %2232 = vmatmul.mubr.msk.bf16.vlgmr.msra.gmra.mrb[8].mxu1 %vm560_vm9, %v745_v12 }
 0x540   :  { %v1540_v25 = vadd.f32 %v1539_v27, %v1538_v5  ;;  %2061 = vmatprep.mubr.bf16.mxu0 %v2386_v21  ;;  %2102 = vmatprep.mubr.bf16.mxu1 %v2386_v21  ;;  %v3109_v5 = vld [vmem:[%s3307_s1 + $0x61] ss:$8 sm:$0xf]  ;;  %v3121_v38 = vld [vmem:[%s3307_s1 + $0x45] ss:$8 sm:$0xf] }
 0x541   :  { %v1913_v21 = vrot.slane %v3109_v5, %v2522_v7 }
 0x542   :  { %1541 = vadd.xlane.f32.xlu0 %v1540_v25 }
 0x5cf   :  { %v1542_v43 = vpop.xlane.xlu0 %1541 }
 0x5d0   :  { %v1543_v29 = vmul.f32 0.001953125, %v1542_v43 }
 0x5d2   :  { %v1544_v31 = vsub.f32 %v1401_v34, %v1543_v29  ;;  %v1545_v33 = vsub.f32 %v1403_v28, %v1543_v29  ;;  %v1546_v63 = vsub.f32 %v1442_v11, %v1543_v29  ;;  %v1547_v35 = vsub.f32 %v1444_v42, %v1543_v29  ;;  %v3104_v42 = vld [vmem:[%s3307_s1 + $0x43] ss:$8 sm:$0xf] }
 0x5d3   :  { %v1656_v27 = vrot.slane %v3104_v42, %v2520_v6 }
 0x5d4   :  { %v1548_v36 = vmul.f32 %v1544_v31, %v1544_v31  ;;  %v1549_v45 = vmul.f32 %v1545_v33, %v1545_v33  ;;  %v1550_v62 = vmul.f32 %v1546_v63, %v1546_v63  ;;  %v1551_v32 = vmul.f32 %v1547_v35, %v1547_v35 }
 0x5d6   :  { %v1552_v46 = vsel %vm746_vm10, %v1548_v36, 0.0  ;;  %v1553_v48 = vsel %vm746_vm10, %v1549_v45, 0.0  ;;  %v1555_v44 = vsel %vm746_vm10, %v1550_v62, 0.0  ;;  %v1557_v50 = vsel %vm746_vm10, %v1551_v32, 0.0 }
 0x5d7   :  { %v1554_v52 = vadd.f32 %v1553_v48, %v1552_v46  ;;  %v1752_v32 = vrot.slane %v3121_v38, %v2522_v7  ;;  %v1652_v48 = vrot.slane %v3104_v42, %v2522_v7 }
 0x5d9   :  { %v1556_v53 = vadd.f32 %v1555_v44, %v1554_v52  ;;  %v1925_v52 = vrot.slane %v3109_v5, %v2535_v15 }
 0x5db   :  { %v1558_v30 = vadd.f32 %v1557_v50, %v1556_v53  ;;  %v3145_v53 = vld [vmem:[%s3307_s1 + $0x42] ss:$8 sm:$0xf]  ;;  %v3150_v50 = vld [vmem:[%s3307_s1 + $0x60] ss:$8 sm:$0xf] }
 0x5dc   :  { %v1882_v37 = vrot.slane %v3150_v50, %v2522_v7 }
 0x5dd   :  { %1559 = vadd.xlane.f32.xlu1 %v1558_v30 }
 0x5ee   :  { %1578 = vperm.xlu1 %2296, %v1575_v8  }
 0x66a   :  { %v1560_v54 = vpop.xlane.xlu1 %1559 }
 0x66b   :  { %v1561_v23 = vmul.f32 0.001953125, %v1560_v54 }
 0x66d   :  { %v1563_v13 = vadd.f32 1e-05, %v1561_v23 }
 0x66e   :  { %v1579_v1 = vpop.permute.xlu1 %1578 }
 0x66f   :  { %2301 = vrsqrt.f32 %v1563_v13 }
 0x679   :  { %v2302_v57 = vpop.eup %2301 }
 0x67a   :  { %v1565_v47 = vmul.f32 %v2302_v57, %v1562_v9 }
 0x67c   :  { %1568 = vperm.xlu0 %2295, %v1565_v47   ;;  %v1612_v47 = vrot.slane %v3145_v53, %v2520_v6 }
 0x6fb   :  { %v1569_v59 = vpop.permute.xlu0 %1568 }
 0x6fc   :  { %v1571_v60 = vmul.f32 %v1569_v59, %v1544_v31  ;;  %v1572_v61 = vmul.f32 %v1569_v59, %v1545_v33  ;;  %v1573_v51 = vmul.f32 %v1569_v59, %v1546_v63  ;;  %v1574_v49 = vmul.f32 %v1569_v59, %v1547_v35  ;;  %v3165_v59 = vld [vmem:[%s3307_s1 + $0x44] ss:$8 sm:$0xf] }
 0x6fd   :  { %v1756_v33 = vrot.slane %v3121_v38, %v2520_v6 }
 0x6fe   :  { %v1581_v0 = vadd.f32 %v1579_v1, %v1571_v60  ;;  %v1582_v16 = vadd.f32 %v1579_v1, %v1572_v61  ;;  %v1583_v17 = vadd.f32 %v1579_v1, %v1573_v51  ;;  %v1584_v18 = vadd.f32 %v1579_v1, %v1574_v49  ;;  %v3172_v51 = vld [vmem:[%s3307_s1 + $0x62] ss:$8 sm:$0xf] }
 0x700   :  { %v1585_v19 = vmax.f32 %v1581_v0, 0.0  ;;  %v1586_v20 = vmax.f32 %v1582_v16, 0.0  ;;  %v1587_v41 = vmax.f32 %v1583_v17, 0.0  ;;  %v1588_v3 = vmax.f32 %v1584_v18, 0.0 }
 0x701   :  { %v1712_v0 = vrot.slane %v3165_v59, %v2520_v6  ;;  %v1956_v16 = vrot.slane %v3172_v51, %v2522_v7 }
 0x702   :  { %v1812_v34 = vmul.f32 %v1795_v24, %v1585_v19  ;;  %v1813_v56 = vmul.f32 %v1799_v40, %v1586_v20  ;;  %v1814_v28 = vmul.f32 %v1803_v55, %v1587_v41  ;;  %v1815_v39 = vmul.f32 %v1807_v4, %v1588_v3  ;;  %1635 = vrot.lane.b32.xlu1 %v1586_v20, %s2395_s10 }
 0x703   :  { %v2174_v2 = vrot.slane %v1585_v19, 4  ;;  %v2175_v10 = vrot.slane %v1586_v20, 4  ;;  %v2176_v26 = vrot.slane %v1587_v41, 4  ;;  %v2177_v11 = vrot.slane %v1588_v3, 4  ;;  %1633 = vrot.lane.b32.xlu0 %v1585_v19, %s2395_s10 }
 0x704   :  { %1816 = vst [vmem:[#allocation2 + $0x40] sm:$0xf] %v1812_v34  ;;  %1817 = vst [vmem:[#allocation2 + $0x48] sm:$0xf] %v1813_v56  ;;  %v1921_v34 = vrot.slane %v3109_v5, %v2533_v14 }
 0x705   :  { %1818 = vst [vmem:[#allocation2 + $0x50] sm:$0xf] %v1814_v28  ;;  %1819 = vst [vmem:[#allocation2 + $0x58] sm:$0xf] %v1815_v39 }
 0x706   :  { %2182 = vst [vmem:[%s3320_s14] sm:$0xf0] %v2174_v2  ;;  %2183 = vst [vmem:[%s3320_s14 + $0x8] sm:$0xf0] %v2175_v10  ;;  %1735 = vrot.lane.b32.xlu1 %v1586_v20, %s2396_s29  ;;  %v1608_v2 = vrot.slane %v3145_v53, %v2522_v7  ;;  %v1894_v10 = vrot.slane %v3150_v50, %v2535_v15 }
 0x707   :  { %2184 = vst [vmem:[%s3320_s14 + $0x10] sm:$0xf0] %v2176_v26  ;;  %2185 = vst [vmem:[%s3320_s14 + $0x18] sm:$0xf0] %v2177_v11  ;;  %1733 = vrot.lane.b32.xlu0 %v1585_v19, %s2396_s29 }
 0x70a   :  { %1739 = vrot.lane.b32.xlu1 %v1588_v3, %s2396_s29 }
 0x70b   :  { %1639 = vrot.lane.b32.xlu0 %v1588_v3, %s2395_s10 }
 0x70e   :  { %1591 = vrot.lane.b32.xlu1 %v1586_v20, %s2397_s8 }
 0x70f   :  { %1589 = vrot.lane.b32.xlu0 %v1585_v19, %s2397_s8 }
 0x712   :  { %1691 = vrot.lane.b32.xlu1 %v1586_v20, %s2398_s9 }
 0x713   :  { %1689 = vrot.lane.b32.xlu0 %v1585_v19, %s2398_s9 }
 0x716   :  { %1637 = vrot.lane.b32.xlu1 %v1587_v41, %s2395_s10 }
 0x717   :  { %1595 = vrot.lane.b32.xlu0 %v1588_v3, %s2397_s8 }
 0x71a   :  { %1737 = vrot.lane.b32.xlu1 %v1587_v41, %s2396_s29 }
 0x71b   :  { %1695 = vrot.lane.b32.xlu0 %v1588_v3, %s2398_s9 }
 0x71e   :  { %1824 = vrot.lane.b32.xlu1 %v1587_v41, %s2399_s16 }
 0x71f   :  { %1822 = vrot.lane.b32.xlu0 %v1586_v20, %s2399_s16 }
 0x722   :  { %1693 = vrot.lane.b32.xlu1 %v1587_v41, %s2398_s9 }
 0x723   :  { %1593 = vrot.lane.b32.xlu0 %v1587_v41, %s2397_s8  ;;  %v1664_v41 = vrot.slane %v3104_v42, %v2535_v15 }
 0x726   :  { %1826 = vrot.lane.b32.xlu1 %v1588_v3, %s2399_s16  ;;  %v1917_v3 = vrot.slane %v3109_v5, %v2520_v6  ;;  %v1764_v5 = vrot.slane %v3121_v38, %v2535_v15 }
 0x727   :  { %1820 = vrot.lane.b32.xlu0 %v1585_v19, %s2399_s16  ;;  %v1660_v19 = vrot.slane %v3104_v42, %v2533_v14  ;;  %v1760_v42 = vrot.slane %v3121_v38, %v2533_v14 }
 0x774   :  { %v3116_v58 = vpop.permute.xlu1 %1635 }
 0x775   :  { %v1634_v25 = vpop.permute.xlu0 %1633 }
 0x776   :  { %v1644_v43 = vsel %vm1641_vm3, %v1634_v25, %v3116_v58 }
 0x777   :  { %v1670_v29 = vmul.f32 %v1656_v27, %v1644_v43  ;;  %v1930_v31 = vmul.f32 %v1913_v21, %v1644_v43 }
 0x778   :  { %v3129_v63 = vpop.permute.xlu1 %1735 }
 0x779   :  { %v1678_v35 = vrot.slane %v1670_v29, 4  ;;  %v1938_v36 = vrot.slane %v1930_v31, 4  ;;  %v1734_v45 = vpop.permute.xlu0 %1733  ;;  %v1708_v31 = vrot.slane %v3165_v59, %v2522_v7 }
 0x77a   :  { %v1744_v62 = vsel %vm1741_vm4, %v1734_v45, %v3129_v63 }
 0x77b   :  { %1686 = vst [vmem:[#allocation2 + $0x8] sm:$0xf0] %v1678_v35  ;;  %1946 = vst [vmem:[#allocation2 + $0x60] sm:$0xf0] %v1938_v36  ;;  %v1770_v46 = vmul.f32 %v1756_v33, %v1744_v62 }
 0x77c   :  { %v3140_v44 = vpop.permute.xlu1 %1739  ;;  %v3220_v33 = vld [vmem:[%s3307_s1 + $0x47] ss:$8 sm:$0xf] }
 0x77d   :  { %v1778_v30 = vrot.slane %v1770_v46, 4  ;;  %v1745_v8 = vsel %vm1741_vm4, %v3140_v44, %v1734_v45  ;;  %v1640_v54 = vpop.permute.xlu0 %1639 }
 0x77e   :  { %v1769_v23 = vmul.f32 %v1752_v32, %v1745_v8  ;;  %v1645_v13 = vsel %vm1641_vm3, %v1640_v54, %v1634_v25 }
 0x77f   :  { %1786 = vst [vmem:[#allocation2 + $0x28] sm:$0xf0] %v1778_v30  ;;  %v1669_v9 = vmul.f32 %v1652_v48, %v1645_v13  ;;  %v1933_v57 = vmul.f32 %v1925_v52, %v1645_v13 }
 0x780   :  { %v1777_v60 = vrot.slane %v1769_v23, 4  ;;  %v3167_v61 = vpop.permute.xlu1 %1591 }
 0x781   :  { %v1677_v49 = vrot.slane %v1669_v9, 4  ;;  %v1941_v1 = vrot.slane %v1933_v57, 4  ;;  %v1590_v24 = vpop.permute.xlu0 %1589 }
 0x782   :  { %1785 = vst [vmem:[#allocation2 + $0x20] sm:$0xf0] %v1777_v60  ;;  %v1600_v40 = vsel %vm1597_vm5, %v1590_v24, %v3167_v61 }
 0x783   :  { %1685 = vst [vmem:[#allocation2] sm:$0xf0] %v1677_v49  ;;  %1949 = vst [vmem:[#allocation2 + $0x78] sm:$0xf0] %v1941_v1  ;;  %v1626_v55 = vmul.f32 %v1612_v47, %v1600_v40  ;;  %v1899_v4 = vmul.f32 %v1882_v37, %v1600_v40 }
 0x784   :  { %v3182_v17 = vpop.permute.xlu1 %1691 }
 0x785   :  { %1630 = vst [vmem:[#allocation2 + $0x8] sm:$0xf] %v1626_v55  ;;  %1903 = vst [vmem:[#allocation2 + $0x60] sm:$0xf] %v1899_v4  ;;  %v1690_v18 = vpop.permute.xlu0 %1689  ;;  %v1720_v55 = vrot.slane %v3165_v59, %v2535_v15  ;;  %v1960_v4 = vrot.slane %v3172_v51, %v2520_v6 }
 0x786   :  { %v1700_v20 = vsel %vm1697_vm6, %v1690_v18, %v3182_v17 }
 0x787   :  { %v1726_v56 = vmul.f32 %v1712_v0, %v1700_v20  ;;  %v1973_v28 = vmul.f32 %v1956_v16, %v1700_v20  ;;  %v1964_v0 = vrot.slane %v3172_v51, %v2533_v14  ;;  %v1620_v20 = vrot.slane %v3145_v53, %v2535_v15 }
 0x788   :  { %v1638_v39 = vpop.permute.xlu1 %1637 }
 0x789   :  { %1730 = vst [vmem:[#allocation2 + $0x28] sm:$0xf] %v1726_v56  ;;  %1977 = vst [vmem:[#allocation2 + $0x80] sm:$0xf] %v1973_v28  ;;  %v1642_v26 = vsel %vm1641_vm3, %v1638_v39, %v1640_v54  ;;  %v1643_v11 = vsel %vm1641_vm3, %v3116_v58, %v1638_v39  ;;  %v3204_v12 = vpop.permute.xlu0 %1595  ;;  %v1968_v58 = vrot.slane %v3172_v51, %v2535_v15 }
 0x78a   :  { %v1671_v27 = vmul.f32 %v1660_v19, %v1643_v11  ;;  %v1672_v21 = vmul.f32 %v1664_v41, %v1642_v26  ;;  %v1931_v25 = vmul.f32 %v1917_v3, %v1643_v11  ;;  %v1932_v43 = vmul.f32 %v1921_v34, %v1642_v26 }
 0x78b   :  { %v1601_v29 = vsel %vm1597_vm5, %v3204_v12, %v1590_v24  ;;  %v1716_v24 = vrot.slane %v3165_v59, %v2533_v14  ;;  %v1616_v19 = vrot.slane %v3145_v53, %v2533_v14  ;;  %v1886_v41 = vrot.slane %v3150_v50, %v2520_v6 }
 0x78c   :  { %v1679_v38 = vrot.slane %v1671_v27, 4  ;;  %v1680_v35 = vrot.slane %v1672_v21, 4  ;;  %v1939_v36 = vrot.slane %v1931_v25, 4  ;;  %v1940_v45 = vrot.slane %v1932_v43, 4  ;;  %v1738_v62 = vpop.permute.xlu1 %1737  ;;  %v1982_v37 = vld [vmem:[#allocation2 + $0x8] sm:$0xff]  ;;  %v1993_v22 = vld [vmem:[#allocation2 + $0x60] sm:$0xff] }
 0x78d   :  { %v1625_v32 = vmul.f32 %v1608_v2, %v1601_v29  ;;  %v1902_v46 = vmul.f32 %v1894_v10, %v1601_v29  ;;  %v1742_v48 = vsel %vm1741_vm4, %v1738_v62, %v3140_v44  ;;  %v1743_v52 = vsel %vm1741_vm4, %v3129_v63, %v1738_v62  ;;  %v1696_v30 = vpop.permute.xlu0 %1695 }
 0x78e   :  { %1687 = vst [vmem:[#allocation2 + $0x10] sm:$0xf0] %v1679_v38  ;;  %1688 = vst [vmem:[#allocation2 + $0x18] sm:$0xf0] %v1680_v35  ;;  %v1771_v8 = vmul.f32 %v1760_v42, %v1743_v52  ;;  %v1772_v54 = vmul.f32 %v1764_v5, %v1742_v48  ;;  %v1701_v23 = vsel %vm1697_vm6, %v1696_v30, %v1690_v18 }
 0x78f   :  { %1947 = vst [vmem:[#allocation2 + $0x68] sm:$0xf0] %v1939_v36  ;;  %1948 = vst [vmem:[#allocation2 + $0x70] sm:$0xf0] %v1940_v45  ;;  %v1725_v13 = vmul.f32 %v1708_v31, %v1701_v23  ;;  %v1976_v9 = vmul.f32 %v1968_v58, %v1701_v23  ;;  %v1843_v44 = vrot.slane %v3220_v33, %v2520_v6 }
 0x790   :  { %1629 = vst [vmem:[#allocation2] sm:$0xf] %v1625_v32  ;;  %1906 = vst [vmem:[#allocation2 + $0x78] sm:$0xf] %v1902_v46  ;;  %v1779_v63 = vrot.slane %v1771_v8, 4  ;;  %v1780_v57 = vrot.slane %v1772_v54, 4  ;;  %v1825_v47 = vpop.permute.xlu1 %1824  ;;  %v1890_v59 = vrot.slane %v3150_v50, %v2533_v14  ;;  %v1847_v28 = vrot.slane %v3220_v33, %v2533_v14 }
 0x791   :  { %v1986_v60 = vld [vmem:[#allocation2 + $0x28] sm:$0xff]  ;;  %1729 = vst [vmem:[#allocation2 + $0x20] sm:$0xf] %v1725_v13  ;;  %1980 = vst [vmem:[#allocation2 + $0x98] sm:$0xf] %v1976_v9  ;;  %v1823_v49 = vpop.permute.xlu0 %1822  ;;  %v1851_v26 = vrot.slane %v3220_v33, %v2535_v15 }
 0x792   :  { %v2002_v1 = vpack.c.bf16 %v1986_v60, %v1982_v37  ;;  %1787 = vst [vmem:[#allocation2 + $0x30] sm:$0xf0] %v1779_v63  ;;  %1788 = vst [vmem:[#allocation2 + $0x38] sm:$0xf0] %v1780_v57  ;;  %v1830_v40 = vsel %vm1828_vm7, %v1823_v49, %v1825_v47  ;;  %v1997_v13 = vld [vmem:[#allocation2 + $0x80] sm:$0xf] }
 0x793   :  { %v1857_v16 = vmul.f32 %v1843_v44, %v1830_v40  ;;  %v2009_v40 = vpack.c.bf16 %v1997_v13, %v1997_v13 }
 0x794   :  { %2029 = vmatprep.subr.bf16.mxu0 %v2002_v1  ;;  %v1694_v18 = vpop.permute.xlu1 %1693 }
 0x795   :  { %v1865_v3 = vrot.slane %v1857_v16, 4  ;;  %v1698_v34 = vsel %vm1697_vm6, %v1694_v18, %v1696_v30  ;;  %v1699_v51 = vsel %vm1697_vm6, %v3182_v17, %v1694_v18  ;;  %v1594_v56 = vpop.permute.xlu0 %1593  ;;  %v1839_v17 = vrot.slane %v3220_v33, %v2522_v7  ;;  %v2013_v18 = vld [vmem:[#allocation7] sm:$0x3] }
 0x796   :  { %v1727_v39 = vmul.f32 %v1716_v24, %v1699_v51  ;;  %v1728_v53 = vmul.f32 %v1720_v55, %v1698_v34  ;;  %v1974_v2 = vmul.f32 %v1960_v4, %v1699_v51  ;;  %v1975_v10 = vmul.f32 %v1964_v0, %v1698_v34 }
 0x797   :  { %1873 = vst [vmem:[#allocation2 + $0x48] sm:$0xf0] %v1865_v3  ;;  %v1598_v6 = vsel %vm1597_vm5, %v1594_v56, %v3204_v12  ;;  %v1599_v50 = vsel %vm1597_vm5, %v3167_v61, %v1594_v56  ;;  %v1981_v12 = vld [vmem:[#allocation2] sm:$0xff]  ;;  %v1996_v54 = vld [vmem:[#allocation2 + $0x78] sm:$0xff]  ;;  %v2018_v0 = vsel %vm564_vm8, %v2009_v40, 0 }
 0x798   :  { %1731 = vst [vmem:[#allocation2 + $0x30] sm:$0xf] %v1727_v39  ;;  %1732 = vst [vmem:[#allocation2 + $0x38] sm:$0xf] %v1728_v53  ;;  %v1627_v14 = vmul.f32 %v1616_v19, %v1599_v50  ;;  %v1628_v11 = vmul.f32 %v1620_v20, %v1598_v6  ;;  %v1900_v42 = vmul.f32 %v1886_v41, %v1599_v50  ;;  %v1827_v27 = vpop.permute.xlu1 %1826  ;;  %v1985_v21 = vld [vmem:[#allocation2 + $0x20] sm:$0xff] }
 0x799   :  { %1978 = vst [vmem:[#allocation2 + $0x88] sm:$0xf] %v1974_v2  ;;  %1979 = vst [vmem:[#allocation2 + $0x90] sm:$0xf] %v1975_v10  ;;  %v1901_v5 = vmul.f32 %v1890_v59, %v1598_v6  ;;  %v1829_v61 = vsel %vm1828_vm7, %v1825_v47, %v1827_v27  ;;  %v1821_v25 = vpop.permute.xlu0 %1820  ;;  %v2001_v43 = vpack.c.bf16 %v1985_v21, %v1981_v12  ;;  %v2000_v23 = vld [vmem:[#allocation2 + $0x98] sm:$0xf] }
 0x79a   :  { %1631 = vst [vmem:[#allocation2 + $0x10] sm:$0xf] %v1627_v14  ;;  %1632 = vst [vmem:[#allocation2 + $0x18] sm:$0xf] %v1628_v11  ;;  %v1858_v7 = vmul.f32 %v1847_v28, %v1829_v61  ;;  %v1831_v15 = vsel %vm1828_vm7, %v1821_v25, %v1823_v49  ;;  %v1832_v29 = vsel %vm1828_vm7, %v1827_v27, %v1821_v25 }
 0x79b   :  { %1904 = vst [vmem:[#allocation2 + $0x68] sm:$0xf] %v1900_v42  ;;  %1905 = vst [vmem:[#allocation2 + $0x70] sm:$0xf] %v1901_v5  ;;  %v1856_v31 = vmul.f32 %v1839_v17, %v1831_v15  ;;  %v1859_v58 = vmul.f32 %v1851_v26, %v1832_v29  ;;  %2030 = vmatpush1.bf16.msra.mxu0 %v2001_v43  ;;  %v2012_v55 = vpack.c.bf16 %v2000_v23, %v2000_v23 }
 0x79c   :  { %v1866_v33 = vrot.slane %v1858_v7, 4 }
 0x79d   :  { %v1864_v38 = vrot.slane %v1856_v31, 4  ;;  %v1867_v35 = vrot.slane %v1859_v58, 4 }
 0x79e   :  { %1874 = vst [vmem:[#allocation2 + $0x50] sm:$0xf0] %v1866_v33  ;;  %v1990_v62 = vld [vmem:[#allocation2 + $0x48] sm:$0xff] }
 0x79f   :  { %1872 = vst [vmem:[#allocation2 + $0x40] sm:$0xf0] %v1864_v38  ;;  %1875 = vst [vmem:[#allocation2 + $0x58] sm:$0xf0] %v1867_v35  ;;  %v1988_v36 = vld [vmem:[#allocation2 + $0x38] sm:$0xff]  ;;  %v1987_v45 = vld [vmem:[#allocation2 + $0x30] sm:$0xff] }
 0x7a0   :  { %v1998_v9 = vld [vmem:[#allocation2 + $0x88] sm:$0xf]  ;;  %v1999_v60 = vld [vmem:[#allocation2 + $0x90] sm:$0xf] }
 0x7a1   :  { %v1984_v46 = vld [vmem:[#allocation2 + $0x18] sm:$0xff]  ;;  %v1983_v48 = vld [vmem:[#allocation2 + $0x10] sm:$0xff]  ;;  %v2010_v24 = vpack.c.bf16 %v1998_v9, %v1998_v9  ;;  %v2011_v4 = vpack.c.bf16 %v1999_v60, %v1999_v60  ;;  %v2152_v33 = vld [vmem:[%s3319_s13] sm:$0xf] }
 0x7a2   :  { %v1994_v32 = vld [vmem:[#allocation2 + $0x68] sm:$0xff]  ;;  %v2004_v30 = vpack.c.bf16 %v1988_v36, %v1984_v46  ;;  %v2003_v8 = vpack.c.bf16 %v1987_v45, %v1983_v48  ;;  %v1995_v63 = vld [vmem:[#allocation2 + $0x70] sm:$0xff] }
 0x7a3   :  { %v2006_v52 = vpack.c.bf16 %v1994_v32, %v1990_v62  ;;  %v2024_v16 = vsel %vm564_vm8, %v2011_v4, 0  ;;  %v2139_v45 = vld [vmem:[%s3318_s12] sm:$0xf] }
 0x7a4   :  { %2070 = vmatprep.subr.bf16.mxu1 %v2004_v30 }
 0x7a5   :  { %2031 = vmatprep.subr.bf16.mxu0 %v2006_v52  ;;  %2071 = vmatpush1.bf16.msra.mxu1 %v2003_v8  ;;  %v1991_v44 = vld [vmem:[#allocation2 + $0x50] sm:$0xff] }
 0x7a6   :  { %v1989_v57 = vld [vmem:[#allocation2 + $0x40] sm:$0xff]  ;;  %v1992_v47 = vld [vmem:[#allocation2 + $0x58] sm:$0xff]  ;;  %v2007_v37 = vpack.c.bf16 %v1995_v63, %v1991_v44 }
 0x7a7   :  { %v2005_v49 = vpack.c.bf16 %v1993_v22, %v1989_v57  ;;  %v2008_v1 = vpack.c.bf16 %v1996_v54, %v1992_v47 }
 0x7a9   :  { %2032 = vmatpush1.bf16.msra.mxu0 %v2005_v49  ;;  %2072 = vmatprep.subr.bf16.mxu1 %v2008_v1 }
 0x7aa   :  { %2242 = vmatprep.subr.msk.bf16.mxu0 %vm564_vm8, %v2010_v24  ;;  %2073 = vmatpush1.bf16.msra.mxu1 %v2007_v37 }
 0x7ab   :  { %2244 = vmatprep.subr.msk.bf16.mxu1 %vm564_vm8, %v2012_v55 }
 0x7ad   :  { %2034 = vmatpush1.bf16.msra.mxu0 %v2018_v0 }
 0x7ae   :  { %2075 = vmatpush1.bf16.msra.mxu1 %v2024_v16 }
 0x7b0   :  { %2243 = vmatmul.mubr.msk.bf16.vlgmr.msra.gmra.mrb[8].mxu0 %vm560_vm9, %v2013_v18 }
 0x7b1   :  { %2245 = vmatmul.mubr.msk.bf16.vlgmr.msra.gmra.mrb[8].mxu1 %vm560_vm9, %v2013_v18 }
 0x883   :  { %v2063_v19 = vpop.f32.mrb[8].mxu0 }
 0x884   :  { %v2111_v20 = vsel %vm746_vm10, %v2063_v19, 0.0  ;;  %v2065_v41 = vpop.f32.mrb[9].mxu0  ;;  %v2104_v59 = vpop.f32.mrb[8].mxu1 }
 0x885   :  { %v2112_v3 = vsel %vm746_vm10, %v2065_v41, 0.0  ;;  %v2067_v34 = vpop.f32.mrb[10].mxu0  ;;  %v2106_v51 = vpop.f32.mrb[9].mxu1  ;;  %v2114_v53 = vsel %vm746_vm10, %v2104_v59, 0.0 }
 0x886   :  { %v2113_v56 = vadd.f32 %v2112_v3, %v2111_v20  ;;  %v2068_v28 = vpop.f32.mrb[11].mxu0  ;;  %v2108_v39 = vpop.f32.mrb[10].mxu1  ;;  %v2116_v6 = vsel %vm746_vm10, %v2106_v51, 0.0 }
 0x887   :  { %v2109_v2 = vpop.f32.mrb[11].mxu1 }
 0x888   :  { %v2115_v10 = vadd.f32 %v2114_v53, %v2113_v56 }
 0x88a   :  { %v2117_v50 = vadd.f32 %v2116_v6, %v2115_v10 }
 0x88c   :  { %2118 = vadd.xlane.f32.xlu0 %v2117_v50 }
 0x919   :  { %v2119_v17 = vpop.xlane.xlu0 %2118 }
 0x91a   :  { %v2120_v26 = vmul.f32 0.001953125, %v2119_v17 }
 0x91c   :  { %v2121_v14 = vsub.f32 %v2063_v19, %v2120_v26  ;;  %v2122_v11 = vsub.f32 %v2065_v41, %v2120_v26  ;;  %v2123_v42 = vsub.f32 %v2104_v59, %v2120_v26  ;;  %v2124_v5 = vsub.f32 %v2106_v51, %v2120_v26 }
 0x91e   :  { %v2125_v27 = vmul.f32 %v2121_v14, %v2121_v14  ;;  %v2126_v12 = vmul.f32 %v2122_v11, %v2122_v11  ;;  %v2127_v21 = vmul.f32 %v2123_v42, %v2123_v42  ;;  %v2128_v61 = vmul.f32 %v2124_v5, %v2124_v5 }
 0x920   :  { %v2129_v25 = vsel %vm746_vm10, %v2125_v27, 0.0  ;;  %v2130_v43 = vsel %vm746_vm10, %v2126_v12, 0.0  ;;  %v2132_v15 = vsel %vm746_vm10, %v2127_v21, 0.0  ;;  %v2134_v31 = vsel %vm746_vm10, %v2128_v61, 0.0 }
 0x921   :  { %v2131_v7 = vadd.f32 %v2130_v43, %v2129_v25 }
 0x923   :  { %v2133_v29 = vadd.f32 %v2132_v15, %v2131_v7 }
 0x925   :  { %v2135_v58 = vadd.f32 %v2134_v31, %v2133_v29 }
 0x927   :  { %2136 = vadd.xlane.f32.xlu1 %v2135_v58 }
 0x938   :  { %2155 = vperm.xlu1 %2296, %v2152_v33  }
 0x9b4   :  { %v2137_v38 = vpop.xlane.xlu1 %2136 }
 0x9b5   :  { %v2138_v35 = vmul.f32 0.001953125, %v2137_v38 }
 0x9b7   :  { %v2140_v36 = vadd.f32 1e-05, %v2138_v35 }
 0x9b8   :  { %v2156_v22 = vpop.permute.xlu1 %2155 }
 0x9b9   :  { %2303 = vrsqrt.f32 %v2140_v36 }
 0x9c3   :  { %v2304_v62 = vpop.eup %2303 }
 0x9c4   :  { %v2142_v32 = vmul.f32 %v2304_v62, %v2139_v45 }
 0x9c6   :  { %2145 = vperm.xlu0 %2295, %v2142_v32  }
 0xa45   :  { %v2146_v46 = vpop.permute.xlu0 %2145 }
 0xa46   :  { %v2148_v48 = vmul.f32 %v2146_v46, %v2121_v14  ;;  %v2149_v52 = vmul.f32 %v2146_v46, %v2122_v11  ;;  %v2150_v30 = vmul.f32 %v2146_v46, %v2123_v42  ;;  %v2151_v8 = vmul.f32 %v2146_v46, %v2124_v5 }
 0xa48   :  { %v2158_v54 = vadd.f32 %v2156_v22, %v2148_v48  ;;  %v2159_v23 = vadd.f32 %v2156_v22, %v2149_v52  ;;  %v2160_v13 = vadd.f32 %v2156_v22, %v2150_v30  ;;  %v2161_v9 = vadd.f32 %v2156_v22, %v2151_v8 }
 0xa4a   :  { %v2162_v44 = vmax.f32 %v2158_v54, 0.0  ;;  %v2163_v63 = vmax.f32 %v2159_v23, 0.0  ;;  %v2164_v57 = vmax.f32 %v2160_v13, 0.0  ;;  %v2165_v47 = vmax.f32 %v2161_v9, 0.0 }
 0xa4c   :  { %2186 = vst [vmem:[%s3320_s14 + $0x20] sm:$0xf] %v2162_v44  ;;  %2187 = vst [vmem:[%s3320_s14 + $0x28] sm:$0xf] %v2163_v63 }
 0xa4d   :  { %2188 = vst [vmem:[%s3320_s14 + $0x30] sm:$0xf] %v2164_v57  ;;  %2189 = vst [vmem:[%s3320_s14 + $0x38] sm:$0xf] %v2165_v47 }
 0xa4e   :  { %2194 = vsyncpa [#allocation4], 1 }
 0xa4f   :  { %2195 = vsyncpa [#allocation6], 1 }

</bundles_post_ra>
